<compile_context>
chip_gen: v7x
topology: tpu7x:2x2x1
jax: 0.10.0
libtpu: 0.0.40
codegen_flags: <defaults>
</compile_context>

<pallas_src>
import math

import jax
import jax.numpy as jnp
from jax.experimental import pallas as pl
from jax.experimental.pallas import tpu as pltpu

# ---- module hyper-parameters (as in Classifier6.__init__) -------------------
D_MODEL = 256          # d_model default
N_HEAD = 8             # nhead=8
HEAD_DIM = D_MODEL // N_HEAD
DIM_FF = 512           # dim_feedforward=512
N_LAYERS = 6           # num_layers=6
N_SPKS = 600           # n_spks default
N_SPKS_PAD = 640       # 5*128 -> lane-dense logits, sliced to 600 outside
FEAT = 40              # prenet = Linear(40, d_model)
LN_EPS = 1e-5
BN_EPS = 1e-5


def _layer_norm(x, gamma, beta):
    # One-pass variance (E[x^2] - mu^2): two independent cross-lane reductions
    # instead of a dependent second pass over (x - mu)^2.
    mu = jnp.mean(x, axis=-1, keepdims=True)
    msq = jnp.mean(x * x, axis=-1, keepdims=True)
    var = jnp.maximum(msq - mu * mu, 0.0)
    return (x - mu) * jax.lax.rsqrt(var + LN_EPS) * gamma + beta


# ---------------------------------------------------------------------------
# Fused forward kernel: grid=(num_batch_tiles, N_LAYERS), activation resident
# in VMEM scratch across the layer axis.
# ---------------------------------------------------------------------------
def _make_fused_kernel(TB, S):
    scale = 1.0 / math.sqrt(HEAD_DIM)

    def kernel(mels_ref, pw_ref, pb_ref,
               wqkv_ref, bqkv_ref, wo_ref, bo_ref, g1_ref, be1_ref,
               w1_ref, b1_ref, w2_ref, b2_ref, g2_ref, be2_ref,
               pw1_ref, pb1_ref, bng_ref, bnb_ref, bnm_ref, bnv_ref,
               pw2_ref, pb2_ref, o_ref, act_ref):
        layer = pl.program_id(1)

        # ---- prenet: only on the first layer step of this batch tile --------
        @pl.when(layer == 0)
        def _():
            act_ref[...] = (
                jnp.dot(mels_ref[...], pw_ref[...],
                        preferred_element_type=jnp.float32) + pb_ref[...])

        x = act_ref[...]                                   # (TB*S, D) f32
        x_bf = x.astype(jnp.bfloat16)

        # ---- multi-head self attention (head-batched) ------------------------
        qkv = (jnp.dot(x_bf, wqkv_ref[...], preferred_element_type=jnp.float32)
               + bqkv_ref[...])                            # (TB*S, 3D) f32

        # (TB*S, 3D) -> (TB, S, 3D): O(TB) full-width (lane-aligned) row slices.
        qkv3 = jnp.stack([qkv[b * S:(b + 1) * S, :] for b in range(TB)], axis=0)
        q3 = (qkv3[:, :, :D_MODEL] * scale).astype(jnp.bfloat16)       # (TB,S,D)
        k3 = qkv3[:, :, D_MODEL:2 * D_MODEL].astype(jnp.bfloat16)
        v3 = qkv3[:, :, 2 * D_MODEL:].astype(jnp.bfloat16)

        # Per-head batched scores (O(H) lane slices, batched over TB), stacked
        # on the leading (batch) axis -> (H*TB, S, S).
        s = jnp.concatenate([
            jax.lax.dot_general(
                q3[:, :, h * HEAD_DIM:(h + 1) * HEAD_DIM],
                k3[:, :, h * HEAD_DIM:(h + 1) * HEAD_DIM],
                (((2,), (2,)), ((0,), (0,))),
                preferred_element_type=jnp.float32)
            for h in range(N_HEAD)], axis=0)

        # ONE softmax over all heads/batches; divide goes to the EUP.
        s = s - jnp.max(s, axis=-1, keepdims=True)
        e = jnp.exp(s)
        p = e * pl.reciprocal(jnp.sum(e, axis=-1, keepdims=True), approx=True)

        v_b = jnp.concatenate([v3[:, :, h * HEAD_DIM:(h + 1) * HEAD_DIM]
                               for h in range(N_HEAD)], axis=0)   # (H*TB,S,hd)
        ctx = jax.lax.dot_general(p.astype(jnp.bfloat16), v_b,
                                  (((2,), (1,)), ((0,), (0,))),
                                  preferred_element_type=jnp.float32)  # (H*TB,S,hd)

        # merge heads: (H*TB,S,hd) -> (TB,S,D) -> (TB*S, D)
        ctx3 = jnp.concatenate([ctx[h * TB:(h + 1) * TB]
                                for h in range(N_HEAD)], axis=-1)
        ctx2d = jnp.concatenate([ctx3[b] for b in range(TB)], axis=0)

        attn = (jnp.dot(ctx2d.astype(jnp.bfloat16), wo_ref[...],
                        preferred_element_type=jnp.float32) + bo_ref[...])

        # residual + LayerNorm1 (dropout = identity in eval)
        h1 = _layer_norm(x + attn, g1_ref[...], be1_ref[...])

        # feed-forward: Linear -> ReLU -> Linear
        f = (jnp.dot(h1.astype(jnp.bfloat16), w1_ref[...],
                     preferred_element_type=jnp.float32) + b1_ref[...])
        f = jnp.maximum(f, 0.0)
        f = (jnp.dot(f.astype(jnp.bfloat16), w2_ref[...],
                     preferred_element_type=jnp.float32) + b2_ref[...])

        # residual + LayerNorm2
        h2 = _layer_norm(h1 + f, g2_ref[...], be2_ref[...])
        act_ref[...] = h2

        # ---- mean pooling + pred_layer: only on the last layer step ---------
        @pl.when(layer == pl.num_programs(1) - 1)
        def _():
            stats = jnp.concatenate(
                [jnp.sum(h2[b * S:(b + 1) * S, :], axis=0, keepdims=True)
                 for b in range(TB)], axis=0) * (1.0 / S)      # (TB, D)
            hh = (jnp.dot(stats.astype(jnp.bfloat16), pw1_ref[...],
                          preferred_element_type=jnp.float32) + pb1_ref[...])
            # BatchNorm1d eval mode: running stats
            hh = ((hh - bnm_ref[...]) * jax.lax.rsqrt(bnv_ref[...] + BN_EPS)
                  * bng_ref[...] + bnb_ref[...])
            hh = jnp.maximum(hh, 0.0)
            # TODO(synk): training-mode Dropout / BatchNorm batch-stat update
            #             not implemented; inference semantics only.
            o_ref[...] = (jnp.dot(hh.astype(jnp.bfloat16), pw2_ref[...],
                                  preferred_element_type=jnp.float32)
                          + pb2_ref[...]).astype(o_ref.dtype)

    return kernel


def _choose_tb(B, S, max_rows=512):
    """Batch-tile size: divides B, BlockSpec-legal (== B or multiple of 8),
    rows bounded so the per-tile working set stays well inside v7x's 64 MiB
    VMEM while giving the MXU as many rows as the batch allows."""
    candidates = [tb for tb in range(1, B + 1)
                  if B % tb == 0 and (tb == B or tb % 8 == 0)]
    fitting = [tb for tb in candidates if tb * S <= max_rows]
    return max(fitting) if fitting else min(candidates)


# ---------------------------------------------------------------------------
# Wrapper: stack per-layer weights, cast matmul weights/mels to bf16, pad
# logits to a lane-dense 640 columns.
# ---------------------------------------------------------------------------
@jax.jit
def classifier6_forward(mels, params):
    B, S, F = mels.shape
    TB = _choose_tb(B, S)
    n_bt = B // TB
    R = TB * S
    bf = jnp.bfloat16

    # bf16 mels halves the only activation-sized HBM->VMEM DMA.
    mels2d = mels.reshape(B * S, F).astype(bf)
    pw = params["prenet_w"].astype(bf)
    pb = params["prenet_b"]

    L = params["layers"]

    def stack(name, dt=None):
        a = jnp.stack([lp[name] for lp in L], axis=0)
        return a.astype(dt) if dt is not None else a

    # NOTE: wqkv is (D, 3D) with [Q|K|V] column order; real PyTorch
    # in_proj_weight (3D, D) must be transposed/reordered before use here.
    per_layer = (stack("wqkv", bf), stack("bqkv"), stack("wo", bf), stack("bo"),
                 stack("ln1_g"), stack("ln1_b"),
                 stack("w1", bf), stack("b1"), stack("w2", bf), stack("b2"),
                 stack("ln2_g"), stack("ln2_b"))

    pr = params["pred"]
    pw2 = jnp.zeros((D_MODEL, N_SPKS_PAD), jnp.float32)
    pw2 = pw2.at[:, :N_SPKS].set(pr["w2"]).astype(bf)
    pb2 = jnp.zeros((1, N_SPKS_PAD), jnp.float32).at[:, :N_SPKS].set(pr["b2"])

    const_pre = (mels2d, pw, pb)
    const_post = (pr["w1"].astype(bf), pr["b1"], pr["bn_g"], pr["bn_b"],
                  pr["bn_rm"], pr["bn_rv"], pw2, pb2)
    args = const_pre + per_layer + const_post

    # Constants keep the default buffer depth for portability; they could use
    # pipeline_mode=pl.Buffered(1) to halve their VMEM footprint on v7x.
    def const_spec(a):
        nd = a.ndim
        return pl.BlockSpec(a.shape, lambda bt, l, _nd=nd: (0,) * _nd)

    in_specs = ([pl.BlockSpec((R, F), lambda bt, l: (bt, 0))]
                + [const_spec(a) for a in const_pre[1:]]
                + [pl.BlockSpec((None,) + a.shape[1:],        # layer dim squeezed
                                lambda bt, l: (l, 0, 0))
                   for a in per_layer]
                + [const_spec(a) for a in const_post])

    # advisory cost estimate for the whole fused forward
    BS = B * S
    flops_layer = (2 * BS * D_MODEL * 3 * D_MODEL
                   + 2 * B * N_HEAD * S * S * HEAD_DIM * 2
                   + 2 * BS * D_MODEL * D_MODEL
                   + 2 * BS * D_MODEL * DIM_FF * 2)
    flops = (2 * BS * F * D_MODEL + N_LAYERS * flops_layer
             + 2 * B * D_MODEL * D_MODEL + 2 * B * D_MODEL * N_SPKS_PAD)
    transcendentals = N_LAYERS * (B * N_HEAD * S * S + 2 * BS) + B * D_MODEL
    weight_bytes = sum(int(a.size) * a.dtype.itemsize
                       for a in (const_pre[1:] + per_layer + const_post))
    bytes_accessed = (int(mels2d.size) * mels2d.dtype.itemsize
                      + n_bt * weight_bytes + B * N_SPKS_PAD * 4)

    out = pl.pallas_call(
        _make_fused_kernel(TB, S),
        out_shape=jax.ShapeDtypeStruct((B, N_SPKS_PAD), jnp.float32),
        grid_spec=pltpu.PrefetchScalarGridSpec(
            num_scalar_prefetch=0,
            grid=(n_bt, N_LAYERS),                 # layer axis innermost
            in_specs=in_specs,
            out_specs=pl.BlockSpec((TB, N_SPKS_PAD), lambda bt, l: (bt, 0)),
            scratch_shapes=[pltpu.VMEM((R, D_MODEL), jnp.float32)]),
        compiler_params=pltpu.CompilerParams(
            dimension_semantics=("parallel", "arbitrary"),  # batch tiles -> 2 TCs on v7x
            vmem_limit_bytes=32 * 1024 * 1024),
        cost_estimate=pl.CostEstimate(
            flops=flops, transcendentals=transcendentals,
            bytes_accessed=bytes_accessed),
    )(*args)

    return out[:, :N_SPKS]


# ---------------------------------------------------------------------------
# Parameters (deterministic, synthetic)
# ---------------------------------------------------------------------------
def init_params(key):
    keys = iter(jax.random.split(key, 40))

    def dense(shape, scale=0.02):
        return scale * jax.random.normal(next(keys), shape, dtype=jnp.float32)

    params = {
        "prenet_w": dense((FEAT, D_MODEL)),
        "prenet_b": jnp.zeros((1, D_MODEL), jnp.float32),
        "layers": [],
    }
    for _ in range(N_LAYERS):
        params["layers"].append({
            "wqkv": dense((D_MODEL, 3 * D_MODEL)),
            "bqkv": jnp.zeros((1, 3 * D_MODEL), jnp.float32),
            "wo":   dense((D_MODEL, D_MODEL)),
            "bo":   jnp.zeros((1, D_MODEL), jnp.float32),
            "ln1_g": jnp.ones((1, D_MODEL), jnp.float32),
            "ln1_b": jnp.zeros((1, D_MODEL), jnp.float32),
            "w1":   dense((D_MODEL, DIM_FF)),
            "b1":   jnp.zeros((1, DIM_FF), jnp.float32),
            "w2":   dense((DIM_FF, D_MODEL)),
            "b2":   jnp.zeros((1, D_MODEL), jnp.float32),
            "ln2_g": jnp.ones((1, D_MODEL), jnp.float32),
            "ln2_b": jnp.zeros((1, D_MODEL), jnp.float32),
        })
    params["pred"] = {
        "w1": dense((D_MODEL, D_MODEL)),
        "b1": jnp.zeros((1, D_MODEL), jnp.float32),
        "bn_g": jnp.ones((1, D_MODEL), jnp.float32),
        "bn_b": jnp.zeros((1, D_MODEL), jnp.float32),
        "bn_rm": jnp.zeros((1, D_MODEL), jnp.float32),
        "bn_rv": jnp.ones((1, D_MODEL), jnp.float32),
        "w2": dense((D_MODEL, N_SPKS)),
        "b2": jnp.zeros((1, N_SPKS), jnp.float32),
    }
    return params


if __name__ == "__main__":
    key = jax.random.PRNGKey(0)
    pkey, xkey = jax.random.split(key)
    params = init_params(pkey)

    B, S = 2, 8
    mels = jax.random.normal(xkey, (B, S, FEAT), dtype=jnp.float32)

    logits = classifier6_forward(mels, params)
    jax.block_until_ready(logits)
    assert logits.shape == (B, N_SPKS), logits.shape
    assert bool(jnp.all(jnp.isfinite(logits)))
    print("KERNEL_OK")
</pallas_src>

<mosaic_0001>
module attributes {stable_mosaic.version = 11 : i64} {
  func.func @kernel(%arg0: i32, %arg1: i32, %arg2: memref<16x40xbf16, #tpu.memory_space<vmem>>, %arg3: memref<40x256xbf16, #tpu.memory_space<vmem>>, %arg4: memref<1x256xf32, #tpu.memory_space<vmem>>, %arg5: memref<1x256x768xbf16, #tpu.memory_space<vmem>>, %arg6: memref<1x1x768xf32, #tpu.memory_space<vmem>>, %arg7: memref<1x256x256xbf16, #tpu.memory_space<vmem>>, %arg8: memref<1x1x256xf32, #tpu.memory_space<vmem>>, %arg9: memref<1x1x256xf32, #tpu.memory_space<vmem>>, %arg10: memref<1x1x256xf32, #tpu.memory_space<vmem>>, %arg11: memref<1x256x512xbf16, #tpu.memory_space<vmem>>, %arg12: memref<1x1x512xf32, #tpu.memory_space<vmem>>, %arg13: memref<1x512x256xbf16, #tpu.memory_space<vmem>>, %arg14: memref<1x1x256xf32, #tpu.memory_space<vmem>>, %arg15: memref<1x1x256xf32, #tpu.memory_space<vmem>>, %arg16: memref<1x1x256xf32, #tpu.memory_space<vmem>>, %arg17: memref<256x256xbf16, #tpu.memory_space<vmem>>, %arg18: memref<1x256xf32, #tpu.memory_space<vmem>>, %arg19: memref<1x256xf32, #tpu.memory_space<vmem>>, %arg20: memref<1x256xf32, #tpu.memory_space<vmem>>, %arg21: memref<1x256xf32, #tpu.memory_space<vmem>>, %arg22: memref<1x256xf32, #tpu.memory_space<vmem>>, %arg23: memref<256x640xbf16, #tpu.memory_space<vmem>>, %arg24: memref<1x640xf32, #tpu.memory_space<vmem>>, %arg25: memref<2x640xf32, #tpu.memory_space<vmem>>, %arg26: memref<16x256xf32, #tpu.memory_space<vmem>>) attributes {dimension_semantics = [#tpu.dimension_semantics<parallel>, #tpu.dimension_semantics<arbitrary>], iteration_bounds = array<i64: 1, 6>, scalar_prefetch = 0 : i64, scratch_operands = 1 : i64, tpu.core_type = #tpu.core_type<tc>, window_params = [{transform_indices = @transform_0, window_bounds = array<i64: 16, 40>}, {pipeline_mode = #tpu.pipeline_mode<synchronous>, transform_indices = @transform_1, window_bounds = array<i64: 40, 256>}, {pipeline_mode = #tpu.pipeline_mode<synchronous>, transform_indices = @transform_2, window_bounds = array<i64: 1, 256>}, {transform_indices = @transform_3, window_bounds = array<i64: 1, 256, 768>}, {transform_indices = @transform_4, window_bounds = array<i64: 1, 1, 768>}, {transform_indices = @transform_5, window_bounds = array<i64: 1, 256, 256>}, {transform_indices = @transform_6, window_bounds = array<i64: 1, 1, 256>}, {transform_indices = @transform_7, window_bounds = array<i64: 1, 1, 256>}, {transform_indices = @transform_8, window_bounds = array<i64: 1, 1, 256>}, {transform_indices = @transform_9, window_bounds = array<i64: 1, 256, 512>}, {transform_indices = @transform_10, window_bounds = array<i64: 1, 1, 512>}, {transform_indices = @transform_11, window_bounds = array<i64: 1, 512, 256>}, {transform_indices = @transform_12, window_bounds = array<i64: 1, 1, 256>}, {transform_indices = @transform_13, window_bounds = array<i64: 1, 1, 256>}, {transform_indices = @transform_14, window_bounds = array<i64: 1, 1, 256>}, {pipeline_mode = #tpu.pipeline_mode<synchronous>, transform_indices = @transform_15, window_bounds = array<i64: 256, 256>}, {pipeline_mode = #tpu.pipeline_mode<synchronous>, transform_indices = @transform_16, window_bounds = array<i64: 1, 256>}, {pipeline_mode = #tpu.pipeline_mode<synchronous>, transform_indices = @transform_17, window_bounds = array<i64: 1, 256>}, {pipeline_mode = #tpu.pipeline_mode<synchronous>, transform_indices = @transform_18, window_bounds = array<i64: 1, 256>}, {pipeline_mode = #tpu.pipeline_mode<synchronous>, transform_indices = @transform_19, window_bounds = array<i64: 1, 256>}, {pipeline_mode = #tpu.pipeline_mode<synchronous>, transform_indices = @transform_20, window_bounds = array<i64: 1, 256>}, {pipeline_mode = #tpu.pipeline_mode<synchronous>, transform_indices = @transform_21, window_bounds = array<i64: 256, 640>}, {pipeline_mode = #tpu.pipeline_mode<synchronous>, transform_indices = @transform_22, window_bounds = array<i64: 1, 640>}, {transform_indices = @transform_23, window_bounds = array<i64: 2, 640>}]} {
    %c0_i32 = arith.constant 0 : i32
    %0 = arith.cmpi eq, %arg1, %c0_i32 : i32
    %1 = arith.extui %0 : i1 to i32
    %c0_i32_0 = arith.constant 0 : i32
    %2 = arith.cmpi ne, %1, %c0_i32_0 : i32
    scf.if %2 {
      %c0_69 = arith.constant 0 : index
      %c0_70 = arith.constant 0 : index
      %173 = vector.load %arg2[%c0_69, %c0_70] : memref<16x40xbf16, #tpu.memory_space<vmem>>, vector<16x40xbf16>
      %c0_71 = arith.constant 0 : index
      %c0_72 = arith.constant 0 : index
      %174 = vector.load %arg3[%c0_71, %c0_72] : memref<40x256xbf16, #tpu.memory_space<vmem>>, vector<40x256xbf16>
      %cst_73 = arith.constant dense<0.000000e+00> : vector<16x256xf32>
      %175 = tpu.matmul %173, %174, %cst_73 {dimension_numbers = #tpu.dot_dimension_numbers<[1], [0], [0], [1], [0, 0, 1, 1], [], []>} : vector<16x40xbf16>, vector<40x256xbf16>, vector<16x256xf32> -> vector<16x256xf32>
      %c0_74 = arith.constant 0 : index
      %c0_75 = arith.constant 0 : index
      %176 = vector.load %arg4[%c0_74, %c0_75] : memref<1x256xf32, #tpu.memory_space<vmem>>, vector<1x256xf32>
      %177 = vector.broadcast %176 : vector<1x256xf32> to vector<16x256xf32>
      %178 = arith.addf %175, %177 : vector<16x256xf32>
      %c0_76 = arith.constant 0 : index
      %c0_77 = arith.constant 0 : index
      %179 = vector.load %arg26[%c0_76, %c0_77] : memref<16x256xf32, #tpu.memory_space<vmem>>, vector<16x256xf32>
      tpu.vector_store %arg26[%c0_76, %c0_77], %178 {strides = array<i32>} : memref<16x256xf32, #tpu.memory_space<vmem>>, vector<16x256xf32>,
    } else {
    }
    %c0 = arith.constant 0 : index
    %c0_1 = arith.constant 0 : index
    %3 = vector.load %arg26[%c0, %c0_1] : memref<16x256xf32, #tpu.memory_space<vmem>>, vector<16x256xf32>
    %4 = arith.truncf %3 : vector<16x256xf32> to vector<16x256xbf16>
    %c0_2 = arith.constant 0 : index
    %c0_3 = arith.constant 0 : index
    %c0_4 = arith.constant 0 : index
    %5 = vector.load %arg5[%c0_2, %c0_3, %c0_4] : memref<1x256x768xbf16, #tpu.memory_space<vmem>>, vector<1x256x768xbf16>
    %6 = vector.shape_cast %5 : vector<1x256x768xbf16> to vector<256x768xbf16>
    %cst = arith.constant dense<0.000000e+00> : vector<16x768xf32>
    %7 = tpu.matmul %4, %6, %cst {dimension_numbers = #tpu.dot_dimension_numbers<[1], [0], [0], [1], [0, 0, 1, 1], [], []>} : vector<16x256xbf16>, vector<256x768xbf16>, vector<16x768xf32> -> vector<16x768xf32>
    %c0_5 = arith.constant 0 : index
    %c0_6 = arith.constant 0 : index
    %c0_7 = arith.constant 0 : index
    %8 = vector.load %arg6[%c0_5, %c0_6, %c0_7] : memref<1x1x768xf32, #tpu.memory_space<vmem>>, vector<1x1x768xf32>
    %9 = vector.shape_cast %8 : vector<1x1x768xf32> to vector<1x768xf32>
    %10 = vector.broadcast %9 : vector<1x768xf32> to vector<16x768xf32>
    %11 = arith.addf %7, %10 : vector<16x768xf32>
    %12 = vector.extract_strided_slice %11 {offsets = [0, 0], sizes = [8, 768], strides = [1, 1]} : vector<16x768xf32> to vector<8x768xf32>
    %13 = vector.extract_strided_slice %11 {offsets = [8, 0], sizes = [8, 768], strides = [1, 1]} : vector<16x768xf32> to vector<8x768xf32>
    %14 = vector.shape_cast %12 : vector<8x768xf32> to vector<1x8x768xf32>
    %15 = vector.shape_cast %13 : vector<8x768xf32> to vector<1x8x768xf32>
    %16 = tpu.concatenate %14, %15 in 0 : vector<1x8x768xf32>, vector<1x8x768xf32> -> vector<2x8x768xf32>
    %17 = vector.extract_strided_slice %16 {offsets = [0, 0, 0], sizes = [2, 8, 256], strides = [1, 1, 1]} : vector<2x8x768xf32> to vector<2x8x256xf32>
    %cst_8 = arith.constant 0.176776692 : f32
    %18 = vector.broadcast %cst_8 : f32 to vector<2x8x256xf32>
    %19 = arith.mulf %17, %18 : vector<2x8x256xf32>
    %20 = arith.truncf %19 : vector<2x8x256xf32> to vector<2x8x256xbf16>
    %21 = vector.extract_strided_slice %16 {offsets = [0, 0, 256], sizes = [2, 8, 256], strides = [1, 1, 1]} : vector<2x8x768xf32> to vector<2x8x256xf32>
    %22 = arith.truncf %21 : vector<2x8x256xf32> to vector<2x8x256xbf16>
    %23 = vector.extract_strided_slice %16 {offsets = [0, 0, 512], sizes = [2, 8, 256], strides = [1, 1, 1]} : vector<2x8x768xf32> to vector<2x8x256xf32>
    %24 = arith.truncf %23 : vector<2x8x256xf32> to vector<2x8x256xbf16>
    %25 = vector.extract_strided_slice %20 {offsets = [0, 0, 0], sizes = [2, 8, 32], strides = [1, 1, 1]} : vector<2x8x256xbf16> to vector<2x8x32xbf16>
    %26 = vector.extract_strided_slice %22 {offsets = [0, 0, 0], sizes = [2, 8, 32], strides = [1, 1, 1]} : vector<2x8x256xbf16> to vector<2x8x32xbf16>
    %cst_9 = arith.constant dense<0.000000e+00> : vector<2x8x8xf32>
    %27 = tpu.matmul %25, %26, %cst_9 {dimension_numbers = #tpu.dot_dimension_numbers<[2], [2], [1], [1], [0, 0, 0, 1, 1, 1], [0], [0]>} : vector<2x8x32xbf16>, vector<2x8x32xbf16>, vector<2x8x8xf32> -> vector<2x8x8xf32>
    %28 = vector.extract_strided_slice %20 {offsets = [0, 0, 32], sizes = [2, 8, 32], strides = [1, 1, 1]} : vector<2x8x256xbf16> to vector<2x8x32xbf16>
    %29 = vector.extract_strided_slice %22 {offsets = [0, 0, 32], sizes = [2, 8, 32], strides = [1, 1, 1]} : vector<2x8x256xbf16> to vector<2x8x32xbf16>
    %cst_10 = arith.constant dense<0.000000e+00> : vector<2x8x8xf32>
    %30 = tpu.matmul %28, %29, %cst_10 {dimension_numbers = #tpu.dot_dimension_numbers<[2], [2], [1], [1], [0, 0, 0, 1, 1, 1], [0], [0]>} : vector<2x8x32xbf16>, vector<2x8x32xbf16>, vector<2x8x8xf32> -> vector<2x8x8xf32>
    %31 = vector.extract_strided_slice %20 {offsets = [0, 0, 64], sizes = [2, 8, 32], strides = [1, 1, 1]} : vector<2x8x256xbf16> to vector<2x8x32xbf16>
    %32 = vector.extract_strided_slice %22 {offsets = [0, 0, 64], sizes = [2, 8, 32], strides = [1, 1, 1]} : vector<2x8x256xbf16> to vector<2x8x32xbf16>
    %cst_11 = arith.constant dense<0.000000e+00> : vector<2x8x8xf32>
    %33 = tpu.matmul %31, %32, %cst_11 {dimension_numbers = #tpu.dot_dimension_numbers<[2], [2], [1], [1], [0, 0, 0, 1, 1, 1], [0], [0]>} : vector<2x8x32xbf16>, vector<2x8x32xbf16>, vector<2x8x8xf32> -> vector<2x8x8xf32>
    %34 = vector.extract_strided_slice %20 {offsets = [0, 0, 96], sizes = [2, 8, 32], strides = [1, 1, 1]} : vector<2x8x256xbf16> to vector<2x8x32xbf16>
    %35 = vector.extract_strided_slice %22 {offsets = [0, 0, 96], sizes = [2, 8, 32], strides = [1, 1, 1]} : vector<2x8x256xbf16> to vector<2x8x32xbf16>
    %cst_12 = arith.constant dense<0.000000e+00> : vector<2x8x8xf32>
    %36 = tpu.matmul %34, %35, %cst_12 {dimension_numbers = #tpu.dot_dimension_numbers<[2], [2], [1], [1], [0, 0, 0, 1, 1, 1], [0], [0]>} : vector<2x8x32xbf16>, vector<2x8x32xbf16>, vector<2x8x8xf32> -> vector<2x8x8xf32>
    %37 = vector.extract_strided_slice %20 {offsets = [0, 0, 128], sizes = [2, 8, 32], strides = [1, 1, 1]} : vector<2x8x256xbf16> to vector<2x8x32xbf16>
    %38 = vector.extract_strided_slice %22 {offsets = [0, 0, 128], sizes = [2, 8, 32], strides = [1, 1, 1]} : vector<2x8x256xbf16> to vector<2x8x32xbf16>
    %cst_13 = arith.constant dense<0.000000e+00> : vector<2x8x8xf32>
    %39 = tpu.matmul %37, %38, %cst_13 {dimension_numbers = #tpu.dot_dimension_numbers<[2], [2], [1], [1], [0, 0, 0, 1, 1, 1], [0], [0]>} : vector<2x8x32xbf16>, vector<2x8x32xbf16>, vector<2x8x8xf32> -> vector<2x8x8xf32>
    %40 = vector.extract_strided_slice %20 {offsets = [0, 0, 160], sizes = [2, 8, 32], strides = [1, 1, 1]} : vector<2x8x256xbf16> to vector<2x8x32xbf16>
    %41 = vector.extract_strided_slice %22 {offsets = [0, 0, 160], sizes = [2, 8, 32], strides = [1, 1, 1]} : vector<2x8x256xbf16> to vector<2x8x32xbf16>
    %cst_14 = arith.constant dense<0.000000e+00> : vector<2x8x8xf32>
    %42 = tpu.matmul %40, %41, %cst_14 {dimension_numbers = #tpu.dot_dimension_numbers<[2], [2], [1], [1], [0, 0, 0, 1, 1, 1], [0], [0]>} : vector<2x8x32xbf16>, vector<2x8x32xbf16>, vector<2x8x8xf32> -> vector<2x8x8xf32>
    %43 = vector.extract_strided_slice %20 {offsets = [0, 0, 192], sizes = [2, 8, 32], strides = [1, 1, 1]} : vector<2x8x256xbf16> to vector<2x8x32xbf16>
    %44 = vector.extract_strided_slice %22 {offsets = [0, 0, 192], sizes = [2, 8, 32], strides = [1, 1, 1]} : vector<2x8x256xbf16> to vector<2x8x32xbf16>
    %cst_15 = arith.constant dense<0.000000e+00> : vector<2x8x8xf32>
    %45 = tpu.matmul %43, %44, %cst_15 {dimension_numbers = #tpu.dot_dimension_numbers<[2], [2], [1], [1], [0, 0, 0, 1, 1, 1], [0], [0]>} : vector<2x8x32xbf16>, vector<2x8x32xbf16>, vector<2x8x8xf32> -> vector<2x8x8xf32>
    %46 = vector.extract_strided_slice %20 {offsets = [0, 0, 224], sizes = [2, 8, 32], strides = [1, 1, 1]} : vector<2x8x256xbf16> to vector<2x8x32xbf16>
    %47 = vector.extract_strided_slice %22 {offsets = [0, 0, 224], sizes = [2, 8, 32], strides = [1, 1, 1]} : vector<2x8x256xbf16> to vector<2x8x32xbf16>
    %cst_16 = arith.constant dense<0.000000e+00> : vector<2x8x8xf32>
    %48 = tpu.matmul %46, %47, %cst_16 {dimension_numbers = #tpu.dot_dimension_numbers<[2], [2], [1], [1], [0, 0, 0, 1, 1, 1], [0], [0]>} : vector<2x8x32xbf16>, vector<2x8x32xbf16>, vector<2x8x8xf32> -> vector<2x8x8xf32>
    %49 = tpu.concatenate %27, %30, %33, %36, %39, %42, %45, %48 in 0 : vector<2x8x8xf32>, vector<2x8x8xf32>, vector<2x8x8xf32>, vector<2x8x8xf32>, vector<2x8x8xf32>, vector<2x8x8xf32>, vector<2x8x8xf32>, vector<2x8x8xf32> -> vector<16x8x8xf32>
    %cst_17 = arith.constant dense<0xFF800000> : vector<16x8xf32>
    %50 = vector.multi_reduction <maximumf>, %49, %cst_17 [2] : vector<16x8x8xf32> to vector<16x8xf32>
    %51 = vector.shape_cast %50 : vector<16x8xf32> to vector<16x8x1xf32>
    %52 = vector.broadcast %51 : vector<16x8x1xf32> to vector<16x8x8xf32>
    %53 = arith.subf %49, %52 : vector<16x8x8xf32>
    %54 = math.exp %53 : vector<16x8x8xf32>
    %cst_18 = arith.constant dense<0.000000e+00> : vector<16x8xf32>
    %55 = vector.multi_reduction <add>, %54, %cst_18 [2] : vector<16x8x8xf32> to vector<16x8xf32>
    %56 = vector.shape_cast %55 : vector<16x8xf32> to vector<16x8x1xf32>
    %57 = tpu.reciprocal %56 {approx = true} : vector<16x8x1xf32> -> vector<16x8x1xf32>
    %58 = vector.broadcast %57 : vector<16x8x1xf32> to vector<16x8x8xf32>
    %59 = arith.mulf %54, %58 : vector<16x8x8xf32>
    %60 = vector.extract_strided_slice %24 {offsets = [0, 0, 0], sizes = [2, 8, 32], strides = [1, 1, 1]} : vector<2x8x256xbf16> to vector<2x8x32xbf16>
    %61 = vector.extract_strided_slice %24 {offsets = [0, 0, 32], sizes = [2, 8, 32], strides = [1, 1, 1]} : vector<2x8x256xbf16> to vector<2x8x32xbf16>
    %62 = vector.extract_strided_slice %24 {offsets = [0, 0, 64], sizes = [2, 8, 32], strides = [1, 1, 1]} : vector<2x8x256xbf16> to vector<2x8x32xbf16>
    %63 = vector.extract_strided_slice %24 {offsets = [0, 0, 96], sizes = [2, 8, 32], strides = [1, 1, 1]} : vector<2x8x256xbf16> to vector<2x8x32xbf16>
    %64 = vector.extract_strided_slice %24 {offsets = [0, 0, 128], sizes = [2, 8, 32], strides = [1, 1, 1]} : vector<2x8x256xbf16> to vector<2x8x32xbf16>
    %65 = vector.extract_strided_slice %24 {offsets = [0, 0, 160], sizes = [2, 8, 32], strides = [1, 1, 1]} : vector<2x8x256xbf16> to vector<2x8x32xbf16>
    %66 = vector.extract_strided_slice %24 {offsets = [0, 0, 192], sizes = [2, 8, 32], strides = [1, 1, 1]} : vector<2x8x256xbf16> to vector<2x8x32xbf16>
    %67 = vector.extract_strided_slice %24 {offsets = [0, 0, 224], sizes = [2, 8, 32], strides = [1, 1, 1]} : vector<2x8x256xbf16> to vector<2x8x32xbf16>
    %68 = tpu.concatenate %60, %61, %62, %63, %64, %65, %66, %67 in 0 : vector<2x8x32xbf16>, vector<2x8x32xbf16>, vector<2x8x32xbf16>, vector<2x8x32xbf16>, vector<2x8x32xbf16>, vector<2x8x32xbf16>, vector<2x8x32xbf16>, vector<2x8x32xbf16> -> vector<16x8x32xbf16>
    %69 = arith.truncf %59 : vector<16x8x8xf32> to vector<16x8x8xbf16>
    %cst_19 = arith.constant dense<0.000000e+00> : vector<16x8x32xf32>
    %70 = tpu.matmul %69, %68, %cst_19 {dimension_numbers = #tpu.dot_dimension_numbers<[2], [1], [1], [2], [0, 0, 0, 1, 1, 2], [0], [0]>} : vector<16x8x8xbf16>, vector<16x8x32xbf16>, vector<16x8x32xf32> -> vector<16x8x32xf32>
    %71 = vector.extract_strided_slice %70 {offsets = [0, 0, 0], sizes = [2, 8, 32], strides = [1, 1, 1]} : vector<16x8x32xf32> to vector<2x8x32xf32>
    %72 = vector.extract_strided_slice %70 {offsets = [2, 0, 0], sizes = [2, 8, 32], strides = [1, 1, 1]} : vector<16x8x32xf32> to vector<2x8x32xf32>
    %73 = vector.extract_strided_slice %70 {offsets = [4, 0, 0], sizes = [2, 8, 32], strides = [1, 1, 1]} : vector<16x8x32xf32> to vector<2x8x32xf32>
    %74 = vector.extract_strided_slice %70 {offsets = [6, 0, 0], sizes = [2, 8, 32], strides = [1, 1, 1]} : vector<16x8x32xf32> to vector<2x8x32xf32>
    %75 = vector.extract_strided_slice %70 {offsets = [8, 0, 0], sizes = [2, 8, 32], strides = [1, 1, 1]} : vector<16x8x32xf32> to vector<2x8x32xf32>
    %76 = vector.extract_strided_slice %70 {offsets = [10, 0, 0], sizes = [2, 8, 32], strides = [1, 1, 1]} : vector<16x8x32xf32> to vector<2x8x32xf32>
    %77 = vector.extract_strided_slice %70 {offsets = [12, 0, 0], sizes = [2, 8, 32], strides = [1, 1, 1]} : vector<16x8x32xf32> to vector<2x8x32xf32>
    %78 = vector.extract_strided_slice %70 {offsets = [14, 0, 0], sizes = [2, 8, 32], strides = [1, 1, 1]} : vector<16x8x32xf32> to vector<2x8x32xf32>
    %79 = tpu.concatenate %71, %72, %73, %74, %75, %76, %77, %78 in 2 : vector<2x8x32xf32>, vector<2x8x32xf32>, vector<2x8x32xf32>, vector<2x8x32xf32>, vector<2x8x32xf32>, vector<2x8x32xf32>, vector<2x8x32xf32>, vector<2x8x32xf32> -> vector<2x8x256xf32>
    %80 = vector.extract_strided_slice %79 {offsets = [0, 0, 0], sizes = [1, 8, 256], strides = [1, 1, 1]} : vector<2x8x256xf32> to vector<1x8x256xf32>
    %81 = vector.shape_cast %80 : vector<1x8x256xf32> to vector<8x256xf32>
    %82 = vector.extract_strided_slice %79 {offsets = [1, 0, 0], sizes = [1, 8, 256], strides = [1, 1, 1]} : vector<2x8x256xf32> to vector<1x8x256xf32>
    %83 = vector.shape_cast %82 : vector<1x8x256xf32> to vector<8x256xf32>
    %84 = tpu.concatenate %81, %83 in 0 : vector<8x256xf32>, vector<8x256xf32> -> vector<16x256xf32>
    %85 = arith.truncf %84 : vector<16x256xf32> to vector<16x256xbf16>
    %c0_20 = arith.constant 0 : index
    %c0_21 = arith.constant 0 : index
    %c0_22 = arith.constant 0 : index
    %86 = vector.load %arg7[%c0_20, %c0_21, %c0_22] : memref<1x256x256xbf16, #tpu.memory_space<vmem>>, vector<1x256x256xbf16>
    %87 = vector.shape_cast %86 : vector<1x256x256xbf16> to vector<256x256xbf16>
    %cst_23 = arith.constant dense<0.000000e+00> : vector<16x256xf32>
    %88 = tpu.matmul %85, %87, %cst_23 {dimension_numbers = #tpu.dot_dimension_numbers<[1], [0], [0], [1], [0, 0, 1, 1], [], []>} : vector<16x256xbf16>, vector<256x256xbf16>, vector<16x256xf32> -> vector<16x256xf32>
    %c0_24 = arith.constant 0 : index
    %c0_25 = arith.constant 0 : index
    %c0_26 = arith.constant 0 : index
    %89 = vector.load %arg8[%c0_24, %c0_25, %c0_26] : memref<1x1x256xf32, #tpu.memory_space<vmem>>, vector<1x1x256xf32>
    %90 = vector.shape_cast %89 : vector<1x1x256xf32> to vector<1x256xf32>
    %91 = vector.broadcast %90 : vector<1x256xf32> to vector<16x256xf32>
    %92 = arith.addf %88, %91 : vector<16x256xf32>
    %93 = arith.addf %3, %92 : vector<16x256xf32>
    %c0_27 = arith.constant 0 : index
    %c0_28 = arith.constant 0 : index
    %c0_29 = arith.constant 0 : index
    %94 = vector.load %arg9[%c0_27, %c0_28, %c0_29] : memref<1x1x256xf32, #tpu.memory_space<vmem>>, vector<1x1x256xf32>
    %95 = vector.shape_cast %94 : vector<1x1x256xf32> to vector<1x256xf32>
    %c0_30 = arith.constant 0 : index
    %c0_31 = arith.constant 0 : index
    %c0_32 = arith.constant 0 : index
    %96 = vector.load %arg10[%c0_30, %c0_31, %c0_32] : memref<1x1x256xf32, #tpu.memory_space<vmem>>, vector<1x1x256xf32>
    %97 = vector.shape_cast %96 : vector<1x1x256xf32> to vector<1x256xf32>
    %cst_33 = arith.constant dense<0.000000e+00> : vector<16xf32>
    %98 = vector.multi_reduction <add>, %93, %cst_33 [1] : vector<16x256xf32> to vector<16xf32>
    %99 = vector.shape_cast %98 : vector<16xf32> to vector<16x1xf32>
    %cst_34 = arith.constant 2.560000e+02 : f32
    %100 = vector.broadcast %cst_34 : f32 to vector<16x1xf32>
    %101 = arith.divf %99, %100 : vector<16x1xf32>
    %102 = arith.mulf %93, %93 : vector<16x256xf32>
    %cst_35 = arith.constant dense<0.000000e+00> : vector<16xf32>
    %103 = vector.multi_reduction <add>, %102, %cst_35 [1] : vector<16x256xf32> to vector<16xf32>
    %104 = vector.shape_cast %103 : vector<16xf32> to vector<16x1xf32>
    %cst_36 = arith.constant 2.560000e+02 : f32
    %105 = vector.broadcast %cst_36 : f32 to vector<16x1xf32>
    %106 = arith.divf %104, %105 : vector<16x1xf32>
    %107 = arith.mulf %101, %101 : vector<16x1xf32>
    %108 = arith.subf %106, %107 : vector<16x1xf32>
    %cst_37 = arith.constant 0.000000e+00 : f32
    %109 = vector.broadcast %cst_37 : f32 to vector<16x1xf32>
    %110 = arith.maximumf %108, %109 : vector<16x1xf32>
    %111 = vector.broadcast %101 : vector<16x1xf32> to vector<16x256xf32>
    %112 = arith.subf %93, %111 : vector<16x256xf32>
    %cst_38 = arith.constant 9.99999974E-6 : f32
    %113 = vector.broadcast %cst_38 : f32 to vector<16x1xf32>
    %114 = arith.addf %110, %113 : vector<16x1xf32>
    %115 = math.rsqrt %114 : vector<16x1xf32>
    %116 = vector.broadcast %115 : vector<16x1xf32> to vector<16x256xf32>
    %117 = arith.mulf %112, %116 : vector<16x256xf32>
    %118 = vector.broadcast %95 : vector<1x256xf32> to vector<16x256xf32>
    %119 = arith.mulf %117, %118 : vector<16x256xf32>
    %120 = vector.broadcast %97 : vector<1x256xf32> to vector<16x256xf32>
    %121 = arith.addf %119, %120 : vector<16x256xf32>
    %122 = arith.truncf %121 : vector<16x256xf32> to vector<16x256xbf16>
    %c0_39 = arith.constant 0 : index
    %c0_40 = arith.constant 0 : index
    %c0_41 = arith.constant 0 : index
    %123 = vector.load %arg11[%c0_39, %c0_40, %c0_41] : memref<1x256x512xbf16, #tpu.memory_space<vmem>>, vector<1x256x512xbf16>
    %124 = vector.shape_cast %123 : vector<1x256x512xbf16> to vector<256x512xbf16>
    %cst_42 = arith.constant dense<0.000000e+00> : vector<16x512xf32>
    %125 = tpu.matmul %122, %124, %cst_42 {dimension_numbers = #tpu.dot_dimension_numbers<[1], [0], [0], [1], [0, 0, 1, 1], [], []>} : vector<16x256xbf16>, vector<256x512xbf16>, vector<16x512xf32> -> vector<16x512xf32>
    %c0_43 = arith.constant 0 : index
    %c0_44 = arith.constant 0 : index
    %c0_45 = arith.constant 0 : index
    %126 = vector.load %arg12[%c0_43, %c0_44, %c0_45] : memref<1x1x512xf32, #tpu.memory_space<vmem>>, vector<1x1x512xf32>
    %127 = vector.shape_cast %126 : vector<1x1x512xf32> to vector<1x512xf32>
    %128 = vector.broadcast %127 : vector<1x512xf32> to vector<16x512xf32>
    %129 = arith.addf %125, %128 : vector<16x512xf32>
    %cst_46 = arith.constant 0.000000e+00 : f32
    %130 = vector.broadcast %cst_46 : f32 to vector<16x512xf32>
    %131 = arith.maximumf %129, %130 : vector<16x512xf32>
    %132 = arith.truncf %131 : vector<16x512xf32> to vector<16x512xbf16>
    %c0_47 = arith.constant 0 : index
    %c0_48 = arith.constant 0 : index
    %c0_49 = arith.constant 0 : index
    %133 = vector.load %arg13[%c0_47, %c0_48, %c0_49] : memref<1x512x256xbf16, #tpu.memory_space<vmem>>, vector<1x512x256xbf16>
    %134 = vector.shape_cast %133 : vector<1x512x256xbf16> to vector<512x256xbf16>
    %cst_50 = arith.constant dense<0.000000e+00> : vector<16x256xf32>
    %135 = tpu.matmul %132, %134, %cst_50 {dimension_numbers = #tpu.dot_dimension_numbers<[1], [0], [0], [1], [0, 0, 1, 1], [], []>} : vector<16x512xbf16>, vector<512x256xbf16>, vector<16x256xf32> -> vector<16x256xf32>
    %c0_51 = arith.constant 0 : index
    %c0_52 = arith.constant 0 : index
    %c0_53 = arith.constant 0 : index
    %136 = vector.load %arg14[%c0_51, %c0_52, %c0_53] : memref<1x1x256xf32, #tpu.memory_space<vmem>>, vector<1x1x256xf32>
    %137 = vector.shape_cast %136 : vector<1x1x256xf32> to vector<1x256xf32>
    %138 = vector.broadcast %137 : vector<1x256xf32> to vector<16x256xf32>
    %139 = arith.addf %135, %138 : vector<16x256xf32>
    %140 = arith.addf %121, %139 : vector<16x256xf32>
    %c0_54 = arith.constant 0 : index
    %c0_55 = arith.constant 0 : index
    %c0_56 = arith.constant 0 : index
    %141 = vector.load %arg15[%c0_54, %c0_55, %c0_56] : memref<1x1x256xf32, #tpu.memory_space<vmem>>, vector<1x1x256xf32>
    %142 = vector.shape_cast %141 : vector<1x1x256xf32> to vector<1x256xf32>
    %c0_57 = arith.constant 0 : index
    %c0_58 = arith.constant 0 : index
    %c0_59 = arith.constant 0 : index
    %143 = vector.load %arg16[%c0_57, %c0_58, %c0_59] : memref<1x1x256xf32, #tpu.memory_space<vmem>>, vector<1x1x256xf32>
    %144 = vector.shape_cast %143 : vector<1x1x256xf32> to vector<1x256xf32>
    %cst_60 = arith.constant dense<0.000000e+00> : vector<16xf32>
    %145 = vector.multi_reduction <add>, %140, %cst_60 [1] : vector<16x256xf32> to vector<16xf32>
    %146 = vector.shape_cast %145 : vector<16xf32> to vector<16x1xf32>
    %cst_61 = arith.constant 2.560000e+02 : f32
    %147 = vector.broadcast %cst_61 : f32 to vector<16x1xf32>
    %148 = arith.divf %146, %147 : vector<16x1xf32>
    %149 = arith.mulf %140, %140 : vector<16x256xf32>
    %cst_62 = arith.constant dense<0.000000e+00> : vector<16xf32>
    %150 = vector.multi_reduction <add>, %149, %cst_62 [1] : vector<16x256xf32> to vector<16xf32>
    %151 = vector.shape_cast %150 : vector<16xf32> to vector<16x1xf32>
    %cst_63 = arith.constant 2.560000e+02 : f32
    %152 = vector.broadcast %cst_63 : f32 to vector<16x1xf32>
    %153 = arith.divf %151, %152 : vector<16x1xf32>
    %154 = arith.mulf %148, %148 : vector<16x1xf32>
    %155 = arith.subf %153, %154 : vector<16x1xf32>
    %cst_64 = arith.constant 0.000000e+00 : f32
    %156 = vector.broadcast %cst_64 : f32 to vector<16x1xf32>
    %157 = arith.maximumf %155, %156 : vector<16x1xf32>
    %158 = vector.broadcast %148 : vector<16x1xf32> to vector<16x256xf32>
    %159 = arith.subf %140, %158 : vector<16x256xf32>
    %cst_65 = arith.constant 9.99999974E-6 : f32
    %160 = vector.broadcast %cst_65 : f32 to vector<16x1xf32>
    %161 = arith.addf %157, %160 : vector<16x1xf32>
    %162 = math.rsqrt %161 : vector<16x1xf32>
    %163 = vector.broadcast %162 : vector<16x1xf32> to vector<16x256xf32>
    %164 = arith.mulf %159, %163 : vector<16x256xf32>
    %165 = vector.broadcast %142 : vector<1x256xf32> to vector<16x256xf32>
    %166 = arith.mulf %164, %165 : vector<16x256xf32>
    %167 = vector.broadcast %144 : vector<1x256xf32> to vector<16x256xf32>
    %168 = arith.addf %166, %167 : vector<16x256xf32>
    %c0_66 = arith.constant 0 : index
    %c0_67 = arith.constant 0 : index
    %169 = vector.load %arg26[%c0_66, %c0_67] : memref<16x256xf32, #tpu.memory_space<vmem>>, vector<16x256xf32>
    tpu.vector_store %arg26[%c0_66, %c0_67], %168 {strides = array<i32>} : memref<16x256xf32, #tpu.memory_space<vmem>>, vector<16x256xf32>,
    %c5_i32 = arith.constant 5 : i32
    %170 = arith.cmpi eq, %arg1, %c5_i32 : i32
    %171 = arith.extui %170 : i1 to i32
    %c0_i32_68 = arith.constant 0 : i32
    %172 = arith.cmpi ne, %171, %c0_i32_68 : i32
    scf.if %172 {
      %173 = vector.extract_strided_slice %168 {offsets = [0, 0], sizes = [8, 256], strides = [1, 1]} : vector<16x256xf32> to vector<8x256xf32>
      %cst_69 = arith.constant dense<0.000000e+00> : vector<256xf32>
      %174 = vector.multi_reduction <add>, %173, %cst_69 [0] : vector<8x256xf32> to vector<256xf32>
      %175 = vector.shape_cast %174 : vector<256xf32> to vector<1x256xf32>
      %176 = vector.extract_strided_slice %168 {offsets = [8, 0], sizes = [8, 256], strides = [1, 1]} : vector<16x256xf32> to vector<8x256xf32>
      %cst_70 = arith.constant dense<0.000000e+00> : vector<256xf32>
      %177 = vector.multi_reduction <add>, %176, %cst_70 [0] : vector<8x256xf32> to vector<256xf32>
      %178 = vector.shape_cast %177 : vector<256xf32> to vector<1x256xf32>
      %179 = tpu.concatenate %175, %178 in 0 : vector<1x256xf32>, vector<1x256xf32> -> vector<2x256xf32>
      %cst_71 = arith.constant 1.250000e-01 : f32
      %180 = vector.broadcast %cst_71 : f32 to vector<2x256xf32>
      %181 = arith.mulf %179, %180 : vector<2x256xf32>
      %182 = arith.truncf %181 : vector<2x256xf32> to vector<2x256xbf16>
      %c0_72 = arith.constant 0 : index
      %c0_73 = arith.constant 0 : index
      %183 = vector.load %arg17[%c0_72, %c0_73] : memref<256x256xbf16, #tpu.memory_space<vmem>>, vector<256x256xbf16>
      %cst_74 = arith.constant dense<0.000000e+00> : vector<2x256xf32>
      %184 = tpu.matmul %182, %183, %cst_74 {dimension_numbers = #tpu.dot_dimension_numbers<[1], [0], [0], [1], [0, 0, 1, 1], [], []>} : vector<2x256xbf16>, vector<256x256xbf16>, vector<2x256xf32> -> vector<2x256xf32>
      %c0_75 = arith.constant 0 : index
      %c0_76 = arith.constant 0 : index
      %185 = vector.load %arg18[%c0_75, %c0_76] : memref<1x256xf32, #tpu.memory_space<vmem>>, vector<1x256xf32>
      %186 = vector.broadcast %185 : vector<1x256xf32> to vector<2x256xf32>
      %187 = arith.addf %184, %186 : vector<2x256xf32>
      %c0_77 = arith.constant 0 : index
      %c0_78 = arith.constant 0 : index
      %188 = vector.load %arg21[%c0_77, %c0_78] : memref<1x256xf32, #tpu.memory_space<vmem>>, vector<1x256xf32>
      %189 = vector.broadcast %188 : vector<1x256xf32> to vector<2x256xf32>
      %190 = arith.subf %187, %189 : vector<2x256xf32>
      %c0_79 = arith.constant 0 : index
      %c0_80 = arith.constant 0 : index
      %191 = vector.load %arg22[%c0_79, %c0_80] : memref<1x256xf32, #tpu.memory_space<vmem>>, vector<1x256xf32>
      %cst_81 = arith.constant 9.99999974E-6 : f32
      %192 = vector.broadcast %cst_81 : f32 to vector<1x256xf32>
      %193 = arith.addf %191, %192 : vector<1x256xf32>
      %194 = math.rsqrt %193 : vector<1x256xf32>
      %195 = vector.broadcast %194 : vector<1x256xf32> to vector<2x256xf32>
      %196 = arith.mulf %190, %195 : vector<2x256xf32>
      %c0_82 = arith.constant 0 : index
      %c0_83 = arith.constant 0 : index
      %197 = vector.load %arg19[%c0_82, %c0_83] : memref<1x256xf32, #tpu.memory_space<vmem>>, vector<1x256xf32>
      %198 = vector.broadcast %197 : vector<1x256xf32> to vector<2x256xf32>
      %199 = arith.mulf %196, %198 : vector<2x256xf32>
      %c0_84 = arith.constant 0 : index
      %c0_85 = arith.constant 0 : index
      %200 = vector.load %arg20[%c0_84, %c0_85] : memref<1x256xf32, #tpu.memory_space<vmem>>, vector<1x256xf32>
      %201 = vector.broadcast %200 : vector<1x256xf32> to vector<2x256xf32>
      %202 = arith.addf %199, %201 : vector<2x256xf32>
      %cst_86 = arith.constant 0.000000e+00 : f32
      %203 = vector.broadcast %cst_86 : f32 to vector<2x256xf32>
      %204 = arith.maximumf %202, %203 : vector<2x256xf32>
      %205 = arith.truncf %204 : vector<2x256xf32> to vector<2x256xbf16>
      %c0_87 = arith.constant 0 : index
      %c0_88 = arith.constant 0 : index
      %206 = vector.load %arg23[%c0_87, %c0_88] : memref<256x640xbf16, #tpu.memory_space<vmem>>, vector<256x640xbf16>
      %cst_89 = arith.constant dense<0.000000e+00> : vector<2x640xf32>
      %207 = tpu.matmul %205, %206, %cst_89 {dimension_numbers = #tpu.dot_dimension_numbers<[1], [0], [0], [1], [0, 0, 1, 1], [], []>} : vector<2x256xbf16>, vector<256x640xbf16>, vector<2x640xf32> -> vector<2x640xf32>
      %c0_90 = arith.constant 0 : index
      %c0_91 = arith.constant 0 : index
      %208 = vector.load %arg24[%c0_90, %c0_91] : memref<1x640xf32, #tpu.memory_space<vmem>>, vector<1x640xf32>
      %209 = vector.broadcast %208 : vector<1x640xf32> to vector<2x640xf32>
      %210 = arith.addf %207, %209 : vector<2x640xf32>
      %c0_92 = arith.constant 0 : index
      %c0_93 = arith.constant 0 : index
      %211 = vector.load %arg25[%c0_92, %c0_93] : memref<2x640xf32, #tpu.memory_space<vmem>>, vector<2x640xf32>
      tpu.vector_store %arg25[%c0_92, %c0_93], %210 {strides = array<i32>} : memref<2x640xf32, #tpu.memory_space<vmem>>, vector<2x640xf32>,
    } else {
    }
    return
  }
  func.func @transform_0(%arg0: i32, %arg1: i32) -> (i32, i32) {
    %c0_i32 = arith.constant 0 : i32
    %c0_i32_0 = arith.constant 0 : i32
    return %arg0, %c0_i32 : i32, i32
  }
  func.func @transform_1(%arg0: i32, %arg1: i32) -> (i32, i32) {
    %c0_i32 = arith.constant 0 : i32
    %c0_i32_0 = arith.constant 0 : i32
    %c0_i32_1 = arith.constant 0 : i32
    return %c0_i32, %c0_i32_0 : i32, i32
  }
  func.func @transform_2(%arg0: i32, %arg1: i32) -> (i32, i32) {
    %c0_i32 = arith.constant 0 : i32
    %c0_i32_0 = arith.constant 0 : i32
    %c0_i32_1 = arith.constant 0 : i32
    return %c0_i32, %c0_i32_0 : i32, i32
  }
  func.func @transform_3(%arg0: i32, %arg1: i32) -> (i32, i32, i32) {
    %c0_i32 = arith.constant 0 : i32
    %c0_i32_0 = arith.constant 0 : i32
    %c0_i32_1 = arith.constant 0 : i32
    return %arg1, %c0_i32, %c0_i32_0 : i32, i32, i32
  }
  func.func @transform_4(%arg0: i32, %arg1: i32) -> (i32, i32, i32) {
    %c0_i32 = arith.constant 0 : i32
    %c0_i32_0 = arith.constant 0 : i32
    %c0_i32_1 = arith.constant 0 : i32
    return %arg1, %c0_i32, %c0_i32_0 : i32, i32, i32
  }
  func.func @transform_5(%arg0: i32, %arg1: i32) -> (i32, i32, i32) {
    %c0_i32 = arith.constant 0 : i32
    %c0_i32_0 = arith.constant 0 : i32
    %c0_i32_1 = arith.constant 0 : i32
    return %arg1, %c0_i32, %c0_i32_0 : i32, i32, i32
  }
  func.func @transform_6(%arg0: i32, %arg1: i32) -> (i32, i32, i32) {
    %c0_i32 = arith.constant 0 : i32
    %c0_i32_0 = arith.constant 0 : i32
    %c0_i32_1 = arith.constant 0 : i32
    return %arg1, %c0_i32, %c0_i32_0 : i32, i32, i32
  }
  func.func @transform_7(%arg0: i32, %arg1: i32) -> (i32, i32, i32) {
    %c0_i32 = arith.constant 0 : i32
    %c0_i32_0 = arith.constant 0 : i32
    %c0_i32_1 = arith.constant 0 : i32
    return %arg1, %c0_i32, %c0_i32_0 : i32, i32, i32
  }
  func.func @transform_8(%arg0: i32, %arg1: i32) -> (i32, i32, i32) {
    %c0_i32 = arith.constant 0 : i32
    %c0_i32_0 = arith.constant 0 : i32
    %c0_i32_1 = arith.constant 0 : i32
    return %arg1, %c0_i32, %c0_i32_0 : i32, i32, i32
  }
  func.func @transform_9(%arg0: i32, %arg1: i32) -> (i32, i32, i32) {
    %c0_i32 = arith.constant 0 : i32
    %c0_i32_0 = arith.constant 0 : i32
    %c0_i32_1 = arith.constant 0 : i32
    return %arg1, %c0_i32, %c0_i32_0 : i32, i32, i32
  }
  func.func @transform_10(%arg0: i32, %arg1: i32) -> (i32, i32, i32) {
    %c0_i32 = arith.constant 0 : i32
    %c0_i32_0 = arith.constant 0 : i32
    %c0_i32_1 = arith.constant 0 : i32
    return %arg1, %c0_i32, %c0_i32_0 : i32, i32, i32
  }
  func.func @transform_11(%arg0: i32, %arg1: i32) -> (i32, i32, i32) {
    %c0_i32 = arith.constant 0 : i32
    %c0_i32_0 = arith.constant 0 : i32
    %c0_i32_1 = arith.constant 0 : i32
    return %arg1, %c0_i32, %c0_i32_0 : i32, i32, i32
  }
  func.func @transform_12(%arg0: i32, %arg1: i32) -> (i32, i32, i32) {
    %c0_i32 = arith.constant 0 : i32
    %c0_i32_0 = arith.constant 0 : i32
    %c0_i32_1 = arith.constant 0 : i32
    return %arg1, %c0_i32, %c0_i32_0 : i32, i32, i32
  }
  func.func @transform_13(%arg0: i32, %arg1: i32) -> (i32, i32, i32) {
    %c0_i32 = arith.constant 0 : i32
    %c0_i32_0 = arith.constant 0 : i32
    %c0_i32_1 = arith.constant 0 : i32
    return %arg1, %c0_i32, %c0_i32_0 : i32, i32, i32
  }
  func.func @transform_14(%arg0: i32, %arg1: i32) -> (i32, i32, i32) {
    %c0_i32 = arith.constant 0 : i32
    %c0_i32_0 = arith.constant 0 : i32
    %c0_i32_1 = arith.constant 0 : i32
    return %arg1, %c0_i32, %c0_i32_0 : i32, i32, i32
  }
  func.func @transform_15(%arg0: i32, %arg1: i32) -> (i32, i32) {
    %c0_i32 = arith.constant 0 : i32
    %c0_i32_0 = arith.constant 0 : i32
    %c0_i32_1 = arith.constant 0 : i32
    return %c0_i32, %c0_i32_0 : i32, i32
  }
  func.func @transform_16(%arg0: i32, %arg1: i32) -> (i32, i32) {
    %c0_i32 = arith.constant 0 : i32
    %c0_i32_0 = arith.constant 0 : i32
    %c0_i32_1 = arith.constant 0 : i32
    return %c0_i32, %c0_i32_0 : i32, i32
  }
  func.func @transform_17(%arg0: i32, %arg1: i32) -> (i32, i32) {
    %c0_i32 = arith.constant 0 : i32
    %c0_i32_0 = arith.constant 0 : i32
    %c0_i32_1 = arith.constant 0 : i32
    return %c0_i32, %c0_i32_0 : i32, i32
  }
  func.func @transform_18(%arg0: i32, %arg1: i32) -> (i32, i32) {
    %c0_i32 = arith.constant 0 : i32
    %c0_i32_0 = arith.constant 0 : i32
    %c0_i32_1 = arith.constant 0 : i32
    return %c0_i32, %c0_i32_0 : i32, i32
  }
  func.func @transform_19(%arg0: i32, %arg1: i32) -> (i32, i32) {
    %c0_i32 = arith.constant 0 : i32
    %c0_i32_0 = arith.constant 0 : i32
    %c0_i32_1 = arith.constant 0 : i32
    return %c0_i32, %c0_i32_0 : i32, i32
  }
  func.func @transform_20(%arg0: i32, %arg1: i32) -> (i32, i32) {
    %c0_i32 = arith.constant 0 : i32
    %c0_i32_0 = arith.constant 0 : i32
    %c0_i32_1 = arith.constant 0 : i32
    return %c0_i32, %c0_i32_0 : i32, i32
  }
  func.func @transform_21(%arg0: i32, %arg1: i32) -> (i32, i32) {
    %c0_i32 = arith.constant 0 : i32
    %c0_i32_0 = arith.constant 0 : i32
    %c0_i32_1 = arith.constant 0 : i32
    return %c0_i32, %c0_i32_0 : i32, i32
  }
  func.func @transform_22(%arg0: i32, %arg1: i32) -> (i32, i32) {
    %c0_i32 = arith.constant 0 : i32
    %c0_i32_0 = arith.constant 0 : i32
    %c0_i32_1 = arith.constant 0 : i32
    return %c0_i32, %c0_i32_0 : i32, i32
  }
  func.func @transform_23(%arg0: i32, %arg1: i32) -> (i32, i32) {
    %c0_i32 = arith.constant 0 : i32
    %c0_i32_0 = arith.constant 0 : i32
    return %arg0, %c0_i32 : i32, i32
  }
}

</mosaic_0001>

<bundles_post_ra>
// kernel: classifier6_forward.1
= control target key start
LH: loop header
LB: loop body
LE: loop exit
PB: predicated region body
PF: predicated region fallthrough
CT: control target
= control target key end

     0   :  { %s9226_s0 = inlined_call_operand.vmem [shape: bf16[16,40], index: 0, kind: input, shape index: {}]   ;;  %s9227_s1 = inlined_call_operand.vmem [shape: bf16[40,256], index: 1, kind: input, shape index: {}]   ;;  %s9228_s2 = inlined_call_operand.vmem [shape: f32[1,256], index: 2, kind: input, shape index: {}]   ;;  %s9229_s3 = inlined_call_operand.vmem [shape: bf16[6,256,768], index: 3, kind: input, shape index: {}]   ;;  %s9230_s4 = inlined_call_operand.vmem [shape: f32[6,1,768], index: 4, kind: input, shape index: {}]   ;;  %s9231_s5 = inlined_call_operand.vmem [shape: bf16[6,256,256], index: 5, kind: input, shape index: {}]   ;;  %s9232_s6 = inlined_call_operand.vmem [shape: f32[6,1,256], index: 6, kind: input, shape index: {}]   ;;  %s9233_s7 = inlined_call_operand.vmem [shape: f32[6,1,256], index: 7, kind: input, shape index: {}]   ;;  %s9234_s8 = inlined_call_operand.vmem [shape: f32[6,1,256], index: 8, kind: input, shape index: {}]   ;;  %s9235_s9 = inlined_call_operand.vmem [shape: bf16[6,256,512], index: 9, kind: input, shape index: {}]   ;;  %s9236_s10 = inlined_call_operand.vmem [shape: f32[6,1,512], index: 10, kind: input, shape index: {}]   ;;  %s9237_s11 = inlined_call_operand.vmem [shape: bf16[6,512,256], index: 11, kind: input, shape index: {}]   ;;  %s9238_s12 = inlined_call_operand.vmem [shape: f32[6,1,256], index: 12, kind: input, shape index: {}]   ;;  %s9239_s13 = inlined_call_operand.vmem [shape: f32[6,1,256], index: 13, kind: input, shape index: {}]   ;;  %s9240_s14 = inlined_call_operand.vmem [shape: f32[6,1,256], index: 14, kind: input, shape index: {}]   ;;  %s9241_s15 = inlined_call_operand.vmem [shape: bf16[256,256], index: 15, kind: input, shape index: {}]   ;;  %s9242_s16 = inlined_call_operand.vmem [shape: f32[1,256], index: 16, kind: input, shape index: {}]   ;;  %s9243_s17 = inlined_call_operand.vmem [shape: f32[1,256], index: 17, kind: input, shape index: {}]   ;;  %s9244_s18 = inlined_call_operand.vmem [shape: f32[1,256], index: 18, kind: input, shape index: {}]   ;;  %s9245_s19 = inlined_call_operand.vmem [shape: f32[1,256], index: 19, kind: input, shape index: {}]   ;;  %s9246_s20 = inlined_call_operand.vmem [shape: f32[1,256], index: 20, kind: input, shape index: {}]   ;;  %s9247_s21 = inlined_call_operand.vmem [shape: bf16[256,640], index: 21, kind: input, shape index: {}]   ;;  %s9248_s22 = inlined_call_operand.vmem [shape: f32[1,640], index: 22, kind: input, shape index: {}]   ;;  %s9249_s23 = inlined_call_operand.hbm [shape: f32[2,640], index: 23, kind: output, shape index: {}]  }
   0x1   :  { %9256 = sst [smem:[#allocation9_spill]] %s9226_s0 }
   0x2   :  { %9257 = sst [smem:[#allocation10_spill]] %s9227_s1 }
   0x3   :  { %9258 = sst [smem:[#allocation11_spill]] %s9228_s2 }
   0x4   :  { %9259 = sst [smem:[#allocation12_spill]] %s9229_s3 }
   0x5   :  { %9260 = sst [smem:[#allocation13_spill]] %s9230_s4 }
   0x6   :  { %9261 = sst [smem:[#allocation14_spill]] %s9231_s5 }
   0x7   :  { %9262 = sst [smem:[#allocation15_spill]] %s9232_s6 }
   0x8   :  { %9263 = sst [smem:[#allocation16_spill]] %s9233_s7 }
   0x9   :  { %9264 = sst [smem:[#allocation17_spill]] %s9241_s15 }
   0xa   :  { %9265 = sst [smem:[#allocation18_spill]] %s9242_s16 }
   0xb   :  { %9266 = sst [smem:[#allocation19_spill]] %s9243_s17 }
   0xc   :  { %9267 = sst [smem:[#allocation20_spill]] %s9244_s18 }
   0xd   :  { %9268 = sst [smem:[#allocation21_spill]] %s9245_s19 }
   0xe   :  { %9269 = sst [smem:[#allocation22_spill]] %s9246_s20 }
   0xf   :  { %9270 = sst [smem:[#allocation23_spill]] %s9247_s21 }
  0x10   :  { %9271 = sst [smem:[#allocation24_spill]] %s9248_s22 }
  0x11   :  { %9272 = sst [smem:[#allocation25_spill]] %s9249_s23 }
  0x12   :  { %28 = vsyncpa [#allocation4], 0  ;;  %s7856_s4 = smov 0   ;;  %s7858_s30 = smov 0  }
  0x13   :  { %s7860_s24 = smov 0  }
  0x14 LB: > { %9273 = sst [smem:[#allocation6_spill]] %s7722_s30  ;;  %s43_s5 = sadd.s32 1, %s7722_s30  ;;  %s7726_s24 = sphi %s7860_s24, %s34_s24   ;;  %s7722_s30 = sphi %s7858_s30, %s9303_s30   ;;  %s7718_s4 = sphi %s7856_s4, %s9302_s4  }
  0x15   : > { %9274 = sst [smem:[#allocation7_spill]] %s7726_s24  ;;  %p44_p0 = scmp.ge.s32.totalorder %s43_s5, 6 }
  0x16   : > { %p6253_p1 = scmp.ge.s32.totalorder %s7726_s24, 1  ;;  %p763_p2 = scmp.lt.s32.totalorder %s7726_s24, 7 }
  0x17   : > { %s9305_s5 = smov (%p44_p0, %s43_s5), 0 }
  0x18   : > { %9275 = sst [smem:[#allocation8_spill]] %s9305_s5  ;;  %p764_p3 = pnand %p6253_p1, %p763_p2 }
  0x19   : > { %p880_p4 = scmp.lt.s32.totalorder (!%p764_p3), %s7718_s4, 5  ;;  %s9276_s28 = sld [smem:[#allocation14_spill]] (!%p764_p3) }
  0x1a   : > { %767 = sbr.rel (%p764_p3) target bundleno = 3276 (0xccc), region = 112  ;;  %s9277_s25 = sld [smem:[#allocation12_spill]] (!%p764_p3) }
  0x1b   : > { %s9278_s22 = sld [smem:[#allocation13_spill]] (!%p764_p3)  ;;  %s9279_s7 = sld [smem:[#allocation15_spill]] (!%p764_p3) }
  0x1c   : > { %p6268_p5 = scmp.ne.s32.totalorder (!%p764_p3), %s7718_s4, 0 }
  0x21   : > { %s881_s1 = scalar_select %p880_p4, %s7718_s4, 5 }
  0x22   : > { %v7728_v2 = vmov (!%p6268_p5), 0   ;;  %vm990_vm0 = vcmask (!%p6268_p5), 1043456   ;;  %vm986_vm1 = vcmask (!%p6268_p5), 326656   ;;  %v946_v10 = vlaneseq (!%p6268_p5) }
  0x23   : > { %s6973_s26 = smul.u32 768, %s881_s1  ;;  %s6684_s2 = sshll.u32 %s881_s1, 8  ;;  %1029 = vmatprep.mubr.bf16.mxu0 (!%p6268_p5), %v7728_v2 }
  0x24   : > { %s6974_s6 = smul.u32 6, %s881_s1  ;;  %s7882_s29 = scalar_lea.vmem %s9276_s28, %s6684_s2  ;;  %v947_v11 = vshrl.u32 (!%p6268_p5), %v946_v10, 7 }
  0x25   : > { %s7887_s30 = scalar_lea.vmem %s9277_s25, %s6973_s26  ;;  %s7889_s5 = sshll.u32 %s881_s1, 1 }
  0x26   : > { %s7894_s18 = scalar_lea.vmem %s9278_s22, %s6974_s6  ;;  %s897_s28 = scalar_lea.vmem %s9279_s7, %s7889_s5  ;;  %v948_v12 = vsub.s32 (!%p6268_p5), 0, %v947_v11  ;;  %v952_v14 = vsub.s32 (!%p6268_p5), 1, %v947_v11 }
  0x27   : > { %s6685_s24 = sshll.u32 %s881_s1, 9  ;;  %s6262_s16 = sshll.u32 %s881_s1, 2 }
  0x28   : > { %s7911_s15 = scalar_lea.vmem %s9235_s9, %s6685_s24  ;;  %s7916_s2 = scalar_lea.vmem %s9236_s10, %s6262_s16 }
  0x29   : > { %s7921_s3 = scalar_lea.vmem %s9237_s11, %s6685_s24  ;;  %s923_s19 = scalar_lea.vmem %s9238_s12, %s7889_s5 }
  0x2a   : > { %s927_s20 = scalar_lea.vmem %s9239_s13, %s7889_s5  ;;  %s931_s0 = scalar_lea.vmem %s9240_s14, %s7889_s5 }
  0x2b   : > { %936 = sbr.rel (%p6268_p5) target bundleno = 280 (0x118), region = 116  ;;  %s9281_s6 = sld [smem:[#allocation10_spill]] (!%p6268_p5) }
  0x2c   : > { %s9282_s22 = sld [smem:[#allocation9_spill]] (!%p6268_p5)  ;;  %s9283_s7 = sld [smem:[#allocation11_spill]] (!%p6268_p5) }
  0x31   : > { %v7013_v0 = vld [vmem:[%s9281_s6 + $0x4] ss:$8 sps:$4 sm:$0xff] (!%p6268_p5)   ;;  %v7015_v1 = vld [vmem:[%s9281_s6] ss:$8 sps:$4 sm:$0xff] (!%p6268_p5)   ;;  %v7016_v3 = vld [vmem:[%s9281_s6 + $0x14] ss:$8 sps:$4 sm:$0xff] (!%p6268_p5)  }
  0x32   : > { %997 = vmatprep.subr.bf16.mxu0 %v7013_v0  ;;  %v943_v4 = vld [vmem:[%s9281_s6 + $0x20] sm:$0xff]  ;;  %v7018_v5 = vld [vmem:[%s9281_s6 + $0x10] ss:$8 sps:$4 sm:$0xff]  }
  0x33   : > { %998 = vmatpush1.bf16.msra.mxu0 %v7015_v1  ;;  %v6275_v6 = vcombine.high %v943_v4, %v943_v4  ;;  %v6274_v7 = vcombine.low %v943_v4, %v943_v4  ;;  %v7021_v9 = vld [vmem:[%s9282_s22] sm:$0xff]  }
  0x34   : > { %999 = vmatprep.subr.bf16.mxu0 %v7016_v3  ;;  %v944_v13 = vld [vmem:[%s9283_s7] sm:$0x3] }
  0x35   : > { %v992_v8 = vsel %vm990_vm0, %v6274_v7, 0  ;;  %v949_v15 = vrot.slane %v944_v13, %v948_v12  ;;  %v953_v16 = vrot.slane %v944_v13, %v952_v14 }
  0x37   : > { %1000 = vmatpush1.bf16.msra.mxu0 %v7018_v5 }
  0x38   : > { %6276 = vmatprep.subr.msk.bf16.mxu0 %vm990_vm0, %v6275_v6 }
  0x3b   : > { %1002 = vmatpush1.bf16.msra.mxu0 %v992_v8 }
  0x3e   : > { %6277 = vmatmul.mubr.msk.bf16.vlgmr.msra.gmra.mrb[0].mxu0 %vm986_vm1, %v7021_v9 }
 0x111   : > { %v1031_v17 = vpop.f32.mrb[0].mxu0 }
 0x112   : > { %v1032_v18 = vadd.f32 %v1031_v17, %v949_v15  ;;  %v1033_v19 = vpop.f32.mrb[1].mxu0 }
 0x113   : > { %v1034_v20 = vadd.f32 %v1033_v19, %v953_v16  ;;  %v1035_v21 = vpop.f32.mrb[2].mxu0 }
 0x114   : > { %1040 = vst [vmem:[#allocation2] sm:$0xff] %v1032_v18  ;;  %v1036_v22 = vadd.f32 %v1035_v21, %v949_v15  ;;  %v1037_v23 = vpop.f32.mrb[3].mxu0 }
 0x115   : > { %1041 = vst [vmem:[#allocation2 + $0x8] sm:$0xff] %v1034_v20  ;;  %v1038_v24 = vadd.f32 %v1037_v23, %v953_v16 }
 0x116   : > { %1042 = vst [vmem:[#allocation2 + $0x10] sm:$0xff] %v1036_v22 }
 0x117   : > { %1043 = vst [vmem:[#allocation2 + $0x18] sm:$0xff] %v1038_v24 }
 0x118 PF: > { %v7052_v25 = vld [vmem:[%s7887_s30 + $0x4] ss:$24 sps:$4 sm:$0xff]   ;;  %v7056_v27 = vld [vmem:[%s7887_s30] ss:$24 sps:$4 sm:$0xff]   ;;  %v7058_v29 = vld [vmem:[%s7887_s30 + $0x34] ss:$24 sps:$4 sm:$0xff]   ;;  %s9287_s22 = scalar_lea.vmem %s9234_s8, %s7889_s5 }
 0x119   : > { %v7054_v26 = vld [vmem:[%s7887_s30 + $0xc] ss:$24 sps:$4 sm:$0xff]   ;;  %1658 = vmatprep.subr.bf16.mxu0 %v7052_v25  ;;  %v7057_v28 = vld [vmem:[%s7887_s30 + $0x8] ss:$24 sps:$4 sm:$0xff]   ;;  %v7060_v30 = vld [vmem:[%s7887_s30 + $0x3c] ss:$24 sps:$4 sm:$0xff]  }
 0x11a   : > { %1701 = vmatprep.subr.bf16.mxu1 %v7054_v26  ;;  %1659 = vmatpush1.bf16.msra.mxu0 %v7056_v27  ;;  %v7062_v31 = vld [vmem:[%s7887_s30 + $0x30] ss:$24 sps:$4 sm:$0xff]   ;;  %v7064_v33 = vld [vmem:[%s7887_s30 + $0x64] ss:$24 sps:$4 sm:$0xff]   ;;  %v7068_v35 = vld [vmem:[%s7887_s30 + $0x60] ss:$24 sps:$4 sm:$0xff]  }
 0x11b   : > { %1702 = vmatpush1.bf16.msra.mxu1 %v7057_v28  ;;  %1660 = vmatprep.subr.bf16.mxu0 %v7058_v29  ;;  %v7063_v32 = vld [vmem:[%s7887_s30 + $0x38] ss:$24 sps:$4 sm:$0xff]   ;;  %v7066_v34 = vld [vmem:[%s7887_s30 + $0x6c] ss:$24 sps:$4 sm:$0xff]   ;;  %v7069_v36 = vld [vmem:[%s7887_s30 + $0x68] ss:$24 sps:$4 sm:$0xff]  }
 0x11c   : > { %1703 = vmatprep.subr.bf16.mxu1 %v7060_v30  ;;  %v7070_v37 = vld [vmem:[%s7887_s30 + $0x94] ss:$24 sps:$4 sm:$0xff]   ;;  %v7074_v39 = vld [vmem:[%s7887_s30 + $0x90] ss:$24 sps:$4 sm:$0xff]   ;;  %v7076_v41 = vld [vmem:[%s7887_s30 + $0xc4] ss:$24 sps:$4 sm:$0xff]  }
 0x11d   : > { %v7072_v38 = vld [vmem:[%s7887_s30 + $0x9c] ss:$24 sps:$4 sm:$0xff]   ;;  %v7075_v40 = vld [vmem:[%s7887_s30 + $0x98] ss:$24 sps:$4 sm:$0xff]   ;;  %v7078_v42 = vld [vmem:[%s7887_s30 + $0xcc] ss:$24 sps:$4 sm:$0xff]  }
 0x11e   : > { %1661 = vmatpush1.bf16.msra.mxu0 %v7062_v31  ;;  %v7080_v43 = vld [vmem:[%s7887_s30 + $0xc0] ss:$24 sps:$4 sm:$0xff]   ;;  %v7082_v45 = vld [vmem:[%s7887_s30 + $0xf4] ss:$24 sps:$4 sm:$0xff]   ;;  %v7086_v47 = vld [vmem:[%s7887_s30 + $0xf0] ss:$24 sps:$4 sm:$0xff]  }
 0x11f   : > { %1704 = vmatpush1.bf16.msra.mxu1 %v7063_v32  ;;  %1662 = vmatprep.subr.bf16.mxu0 %v7064_v33  ;;  %v7081_v44 = vld [vmem:[%s7887_s30 + $0xc8] ss:$24 sps:$4 sm:$0xff]   ;;  %v7084_v46 = vld [vmem:[%s7887_s30 + $0xfc] ss:$24 sps:$4 sm:$0xff]   ;;  %v7087_v48 = vld [vmem:[%s7887_s30 + $0xf8] ss:$24 sps:$4 sm:$0xff]  }
 0x120   : > { %1705 = vmatprep.subr.bf16.mxu1 %v7066_v34  ;;  %v7088_v49 = vld [vmem:[%s7887_s30 + $0x124] ss:$24 sps:$4 sm:$0xff]   ;;  %v7092_v51 = vld [vmem:[%s7887_s30 + $0x120] ss:$24 sps:$4 sm:$0xff]   ;;  %v7094_v53 = vld [vmem:[%s7887_s30 + $0x154] ss:$24 sps:$4 sm:$0xff]  }
 0x121   : > { %v7090_v50 = vld [vmem:[%s7887_s30 + $0x12c] ss:$24 sps:$4 sm:$0xff]   ;;  %v7093_v52 = vld [vmem:[%s7887_s30 + $0x128] ss:$24 sps:$4 sm:$0xff]   ;;  %v7096_v54 = vld [vmem:[%s7887_s30 + $0x15c] ss:$24 sps:$4 sm:$0xff]  }
 0x122   : > { %1663 = vmatpush1.bf16.msra.mxu0 %v7068_v35  ;;  %v7098_v55 = vld [vmem:[%s7887_s30 + $0x150] ss:$24 sps:$4 sm:$0xff]   ;;  %v7100_v57 = vld [vmem:[%s7887_s30 + $0x184] ss:$24 sps:$4 sm:$0xff]   ;;  %v7104_v59 = vld [vmem:[%s7887_s30 + $0x180] ss:$24 sps:$4 sm:$0xff]  }
 0x123   : > { %1706 = vmatpush1.bf16.msra.mxu1 %v7069_v36  ;;  %1664 = vmatprep.subr.bf16.mxu0 %v7070_v37  ;;  %v7099_v56 = vld [vmem:[%s7887_s30 + $0x158] ss:$24 sps:$4 sm:$0xff]   ;;  %v7102_v58 = vld [vmem:[%s7887_s30 + $0x18c] ss:$24 sps:$4 sm:$0xff]   ;;  %v7105_v60 = vld [vmem:[%s7887_s30 + $0x188] ss:$24 sps:$4 sm:$0xff]  }
 0x124   : > { %1707 = vmatprep.subr.bf16.mxu1 %v7072_v38  ;;  %v7106_v61 = vld [vmem:[%s7887_s30 + $0x1b4] ss:$24 sps:$4 sm:$0xff]   ;;  %v7110_v63 = vld [vmem:[%s7887_s30 + $0x1b0] ss:$24 sps:$4 sm:$0xff]   ;;  %v7112_v1 = vld [vmem:[%s7887_s30 + $0x1e4] ss:$24 sps:$4 sm:$0xff]  }
 0x125   : > { %v7108_v62 = vld [vmem:[%s7887_s30 + $0x1bc] ss:$24 sps:$4 sm:$0xff]   ;;  %v7111_v0 = vld [vmem:[%s7887_s30 + $0x1b8] ss:$24 sps:$4 sm:$0xff]   ;;  %v7114_v2 = vld [vmem:[%s7887_s30 + $0x1ec] ss:$24 sps:$4 sm:$0xff]  }
 0x126   : > { %1665 = vmatpush1.bf16.msra.mxu0 %v7074_v39  ;;  %v7116_v3 = vld [vmem:[%s7887_s30 + $0x1e0] ss:$24 sps:$4 sm:$0xff]   ;;  %v7118_v5 = vld [vmem:[%s7887_s30 + $0x214] ss:$24 sps:$4 sm:$0xff]   ;;  %v7122_v8 = vld [vmem:[%s7887_s30 + $0x210] ss:$24 sps:$4 sm:$0xff]  }
 0x127   : > { %1708 = vmatpush1.bf16.msra.mxu1 %v7075_v40  ;;  %1666 = vmatprep.subr.bf16.mxu0 %v7076_v41  ;;  %v7117_v4 = vld [vmem:[%s7887_s30 + $0x1e8] ss:$24 sps:$4 sm:$0xff]   ;;  %v7120_v6 = vld [vmem:[%s7887_s30 + $0x21c] ss:$24 sps:$4 sm:$0xff]   ;;  %v7123_v9 = vld [vmem:[%s7887_s30 + $0x218] ss:$24 sps:$4 sm:$0xff]  }
 0x128   : > { %1709 = vmatprep.subr.bf16.mxu1 %v7078_v42  ;;  %v1045_v7 = vld [vmem:[#allocation2 + $0x8] sm:$0xff]  ;;  %v1047_v10 = vld [vmem:[#allocation2 + $0x18] sm:$0xff]  ;;  %v1044_v28 = vld [vmem:[#allocation2] sm:$0xff]  ;;  %vm7730_vm2 = vmmov 0   ;;  %vm1803_vm3 = vcmask 261120   ;;  %s7733_s25 = smov 32  }
 0x129   : > { %v7124_v11 = vld [vmem:[%s7887_s30 + $0x244] ss:$24 sps:$4 sm:$0xff]   ;;  %v1049_v12 = vpack.c.bf16 %v1047_v10, %v1045_v7  ;;  %v7128_v14 = vld [vmem:[%s7887_s30 + $0x240] ss:$24 sps:$4 sm:$0xff]   ;;  %v7130_v16 = vld [vmem:[%s7887_s30 + $0x274] ss:$24 sps:$4 sm:$0xff]  }
 0x12a   : > { %1667 = vmatpush1.bf16.msra.mxu0 %v7080_v43  ;;  %v7126_v13 = vld [vmem:[%s7887_s30 + $0x24c] ss:$24 sps:$4 sm:$0xff]   ;;  %v7129_v15 = vld [vmem:[%s7887_s30 + $0x248] ss:$24 sps:$4 sm:$0xff]   ;;  %v7132_v17 = vld [vmem:[%s7887_s30 + $0x27c] ss:$24 sps:$4 sm:$0xff]  }
 0x12b   : > { %1710 = vmatpush1.bf16.msra.mxu1 %v7081_v44  ;;  %1668 = vmatprep.subr.bf16.mxu0 %v7082_v45  ;;  %v7134_v18 = vld [vmem:[%s7887_s30 + $0x270] ss:$24 sps:$4 sm:$0xff]   ;;  %v7136_v20 = vld [vmem:[%s7887_s30 + $0x2a4] ss:$24 sps:$4 sm:$0xff]   ;;  %v7140_v22 = vld [vmem:[%s7887_s30 + $0x2a0] ss:$24 sps:$4 sm:$0xff]  }
 0x12c   : > { %1711 = vmatprep.subr.bf16.mxu1 %v7084_v46  ;;  %1690 = vmatprep.mubr.bf16.mxu0 %v1049_v12  ;;  %v7135_v19 = vld [vmem:[%s7887_s30 + $0x278] ss:$24 sps:$4 sm:$0xff]   ;;  %v7138_v21 = vld [vmem:[%s7887_s30 + $0x2ac] ss:$24 sps:$4 sm:$0xff]   ;;  %v7141_v23 = vld [vmem:[%s7887_s30 + $0x2a8] ss:$24 sps:$4 sm:$0xff]  }
 0x12d   : > { %1733 = vmatprep.mubr.bf16.mxu1 %v1049_v12  ;;  %v7142_v24 = vld [vmem:[%s7887_s30 + $0x2d4] ss:$24 sps:$4 sm:$0xff]   ;;  %v7146_v26 = vld [vmem:[%s7887_s30 + $0x2d0] ss:$24 sps:$4 sm:$0xff]   ;;  %v7153_v33 = vld [vmem:[%s7887_s30 + $0x44] ss:$24 sps:$4 sm:$0xff]  }
 0x12e   : > { %1669 = vmatpush1.bf16.msra.mxu0 %v7086_v47  ;;  %v7144_v25 = vld [vmem:[%s7887_s30 + $0x2dc] ss:$24 sps:$4 sm:$0xff]   ;;  %v7147_v27 = vld [vmem:[%s7887_s30 + $0x2d8] ss:$24 sps:$4 sm:$0xff]   ;;  %vm2820_vm4 = vcmask 1043456   ;;  %vm2596_vm5 = vcmask 64512  }
 0x12f   : > { %1712 = vmatpush1.bf16.msra.mxu1 %v7087_v48  ;;  %1670 = vmatprep.subr.bf16.mxu0 %v7088_v49  ;;  %v1046_v29 = vld [vmem:[#allocation2 + $0x10] sm:$0xff]  ;;  %v7151_v34 = vld [vmem:[%s7887_s30 + $0x40] ss:$24 sps:$4 sm:$0xff]   ;;  %v7159_v37 = vld [vmem:[%s7887_s30 + $0xa4] ss:$24 sps:$4 sm:$0xff]   ;;  %vm3604_vm6 = vcmask 523264  }
 0x130   : > { %1713 = vmatprep.subr.bf16.mxu1 %v7090_v50  ;;  %v7150_v30 = vld [vmem:[%s7887_s30 + $0x14] ss:$24 sps:$4 sm:$0xff]   ;;  %v8022_v31 = vpack.c.bf16 %v1046_v29, %v1044_v28  ;;  %v7148_v32 = vld [vmem:[%s7887_s30 + $0x10] ss:$24 sps:$4 sm:$0xff]   ;;  %v7157_v38 = vld [vmem:[%s7887_s30 + $0xa0] ss:$24 sps:$4 sm:$0xff]  }
 0x131   : > { %v7156_v35 = vld [vmem:[%s7887_s30 + $0x74] ss:$24 sps:$4 sm:$0xff]   ;;  %v7154_v36 = vld [vmem:[%s7887_s30 + $0x70] ss:$24 sps:$4 sm:$0xff]   ;;  %v7165_v41 = vld [vmem:[%s7887_s30 + $0x104] ss:$24 sps:$4 sm:$0xff]  }
 0x132   : > { %1671 = vmatpush1.bf16.msra.mxu0 %v7092_v51  ;;  %v7162_v39 = vld [vmem:[%s7887_s30 + $0xd4] ss:$24 sps:$4 sm:$0xff]   ;;  %v7160_v40 = vld [vmem:[%s7887_s30 + $0xd0] ss:$24 sps:$4 sm:$0xff]   ;;  %v7163_v42 = vld [vmem:[%s7887_s30 + $0x100] ss:$24 sps:$4 sm:$0xff]  }
 0x133   : > { %1714 = vmatpush1.bf16.msra.mxu1 %v7093_v52  ;;  %1672 = vmatprep.subr.bf16.mxu0 %v7094_v53  ;;  %v7168_v43 = vld [vmem:[%s7887_s30 + $0x134] ss:$24 sps:$4 sm:$0xff]   ;;  %v7166_v44 = vld [vmem:[%s7887_s30 + $0x130] ss:$24 sps:$4 sm:$0xff]   ;;  %v7171_v45 = vld [vmem:[%s7887_s30 + $0x164] ss:$24 sps:$4 sm:$0xff]  }
 0x134   : > { %1715 = vmatprep.subr.bf16.mxu1 %v7096_v54  ;;  %v7169_v46 = vld [vmem:[%s7887_s30 + $0x160] ss:$24 sps:$4 sm:$0xff]   ;;  %v7174_v47 = vld [vmem:[%s7887_s30 + $0x194] ss:$24 sps:$4 sm:$0xff]   ;;  %v7172_v48 = vld [vmem:[%s7887_s30 + $0x190] ss:$24 sps:$4 sm:$0xff]  }
 0x135   : > { %v7177_v49 = vld [vmem:[%s7887_s30 + $0x1c4] ss:$24 sps:$4 sm:$0xff]   ;;  %v7175_v50 = vld [vmem:[%s7887_s30 + $0x1c0] ss:$24 sps:$4 sm:$0xff]   ;;  %v7180_v51 = vld [vmem:[%s7887_s30 + $0x1f4] ss:$24 sps:$4 sm:$0xff]  }
 0x136   : > { %1673 = vmatpush1.bf16.msra.mxu0 %v7098_v55  ;;  %v7178_v52 = vld [vmem:[%s7887_s30 + $0x1f0] ss:$24 sps:$4 sm:$0xff]   ;;  %v7183_v53 = vld [vmem:[%s7887_s30 + $0x224] ss:$24 sps:$4 sm:$0xff]   ;;  %v7181_v54 = vld [vmem:[%s7887_s30 + $0x220] ss:$24 sps:$4 sm:$0xff]  }
 0x137   : > { %1716 = vmatpush1.bf16.msra.mxu1 %v7099_v56  ;;  %1674 = vmatprep.subr.bf16.mxu0 %v7100_v57  ;;  %v7186_v55 = vld [vmem:[%s7887_s30 + $0x254] ss:$24 sps:$4 sm:$0xff]   ;;  %v7184_v56 = vld [vmem:[%s7887_s30 + $0x250] ss:$24 sps:$4 sm:$0xff]   ;;  %v7189_v57 = vld [vmem:[%s7887_s30 + $0x284] ss:$24 sps:$4 sm:$0xff]  }
 0x138   : > { %1717 = vmatprep.subr.bf16.mxu1 %v7102_v58  ;;  %v7187_v58 = vld [vmem:[%s7887_s30 + $0x280] ss:$24 sps:$4 sm:$0xff]   ;;  %vm3607_vm7 = vcmask 785408   ;;  %s9285_s1 = sld [smem:[#allocation16_spill]]  ;;  %p6566_p6 = scmp.ne.s32.totalorder %s7718_s4, 5 }
 0x139   : > { %vm5034_vm8 = vcmask (!%p6566_p6), 1040384   ;;  %s9289_s4 = sld [smem:[#allocation23_spill]] (!%p6566_p6)  ;;  %s9291_s17 = sld [smem:[#allocation22_spill]] (!%p6566_p6) }
 0x13a   : > { %1675 = vmatpush1.bf16.msra.mxu0 %v7104_v59  ;;  %v7192_v59 = vld [vmem:[%s7887_s30 + $0x2b4] ss:$24 sps:$4 sm:$0xff]   ;;  %s9293_s16 = sld [smem:[#allocation21_spill]] (!%p6566_p6)  ;;  %s9294_s24 = sld [smem:[#allocation19_spill]] (!%p6566_p6) }
 0x13b   : > { %1718 = vmatpush1.bf16.msra.mxu1 %v7105_v60  ;;  %1676 = vmatprep.subr.bf16.mxu0 %v7106_v61  ;;  %v7190_v60 = vld [vmem:[%s7887_s30 + $0x2b0] ss:$24 sps:$4 sm:$0xff]   ;;  %v7195_v61 = vld [vmem:[%s7887_s30 + $0x2e4] ss:$24 sps:$4 sm:$0xff]   ;;  %s9295_s27 = sld [smem:[#allocation20_spill]] (!%p6566_p6) }
 0x13c   : > { %1719 = vmatprep.subr.bf16.mxu1 %v7108_v62  ;;  %v7193_v62 = vld [vmem:[%s7887_s30 + $0x2e0] ss:$24 sps:$4 sm:$0xff]   ;;  %s7732_s30 = smov 64  }
 0x13e   : > { %1677 = vmatpush1.bf16.msra.mxu0 %v7110_v63  ;;  %v7729_v63 = vmov 0.0   ;;  %s9286_s26 = scalar_lea.vmem %s9285_s1, %s7889_s5  ;;  %s9292_s1 = sld [smem:[#allocation18_spill]] (!%p6566_p6) }
 0x13f   : > { %1720 = vmatpush1.bf16.msra.mxu1 %v7111_v0  ;;  %1678 = vmatprep.subr.bf16.mxu0 %v7112_v1  ;;  %v1148_v0 = vlaneseq  ;;  %s9290_s23 = smov (!%p6566_p6), %s9289_s4 }
 0x140   : > { %1721 = vmatprep.subr.bf16.mxu1 %v7114_v2 }
 0x141   : > { %v8064_v1 = vshrl.u32 %v1148_v0, 7 }
 0x142   : > { %1679 = vmatpush1.bf16.msra.mxu0 %v7116_v3 }
 0x143   : > { %1722 = vmatpush1.bf16.msra.mxu1 %v7117_v4  ;;  %1680 = vmatprep.subr.bf16.mxu0 %v7118_v5  ;;  %v8067_v2 = vsub.s32 0, %v8064_v1  ;;  %v8070_v3 = vsub.s32 2, %v8064_v1  ;;  %v8073_v4 = vld [vmem:[%s7894_s18] sm:$0x3f]  ;;  %s7731_s18 = smov 96  }
 0x144   : > { %1723 = vmatprep.subr.bf16.mxu1 %v7120_v6 }
 0x145   : > { %v1151_v5 = vrot.slane %v8073_v4, %v8067_v2  ;;  %v1159_v6 = vrot.slane %v8073_v4, %v8070_v3 }
 0x146   : > { %1681 = vmatpush1.bf16.msra.mxu0 %v7122_v8 }
 0x147   : > { %1724 = vmatpush1.bf16.msra.mxu1 %v7123_v9  ;;  %1682 = vmatprep.subr.bf16.mxu0 %v7124_v11 }
 0x148   : > { %1725 = vmatprep.subr.bf16.mxu1 %v7126_v13 }
 0x14a   : > { %1683 = vmatpush1.bf16.msra.mxu0 %v7128_v14 }
 0x14b   : > { %1726 = vmatpush1.bf16.msra.mxu1 %v7129_v15  ;;  %1684 = vmatprep.subr.bf16.mxu0 %v7130_v16 }
 0x14c   : > { %1727 = vmatprep.subr.bf16.mxu1 %v7132_v17 }
 0x14e   : > { %1685 = vmatpush1.bf16.msra.mxu0 %v7134_v18 }
 0x14f   : > { %1728 = vmatpush1.bf16.msra.mxu1 %v7135_v19  ;;  %1686 = vmatprep.subr.bf16.mxu0 %v7136_v20 }
 0x150   : > { %1729 = vmatprep.subr.bf16.mxu1 %v7138_v21 }
 0x152   : > { %1687 = vmatpush1.bf16.msra.mxu0 %v7140_v22 }
 0x153   : > { %1730 = vmatpush1.bf16.msra.mxu1 %v7141_v23  ;;  %1688 = vmatprep.subr.bf16.mxu0 %v7142_v24 }
 0x154   : > { %1731 = vmatprep.subr.bf16.mxu1 %v7144_v25 }
 0x156   : > { %1689 = vmatpush1.bf16.msra.mxu0 %v7146_v26  ;;  %v8091_v26 = vsub.s32 1, %v8064_v1 }
 0x157   : > { %1732 = vmatpush1.bf16.msra.mxu1 %v7147_v27  ;;  %1744 = vmatprep.subr.bf16.mxu0 %v7150_v30  ;;  %v8094_v27 = vsub.s32 3, %v8064_v1 }
 0x158   : > { %6797 = vmatprep.subr.bf16.mxu1 %v7729_v63  ;;  %v1155_v29 = vrot.slane %v8073_v4, %v8091_v26 }
 0x159   : > { %1691 = vmatmul.mubr.bf16.vlgmr.msra.gmra.mrb[0].mxu0 %v8022_v31  ;;  %v1163_v30 = vrot.slane %v8073_v4, %v8094_v27 }
 0x15a   : > { %1734 = vmatmul.mubr.bf16.vlgmr.msra.gmra.mrb[0].mxu1 %v8022_v31  ;;  %1745 = vmatpush1.bf16.msra.mxu0 %v7148_v32 }
 0x15b   : > { %1776 = vmatprep.mubr.bf16.mxu0 %v1049_v12  ;;  %1746 = vmatprep.subr.bf16.mxu0 %v7153_v33 }
 0x15c   : > { %6799 = vmatprep.mubr.msk.bf16.mxu1 %vm7730_vm2, %v7729_v63 }
 0x15e   : > { %1747 = vmatpush1.bf16.msra.mxu0 %v7151_v34 }
 0x15f   : > { %1748 = vmatprep.subr.bf16.mxu0 %v7156_v35 }
 0x162   : > { %1749 = vmatpush1.bf16.msra.mxu0 %v7154_v36 }
 0x163   : > { %1750 = vmatprep.subr.bf16.mxu0 %v7159_v37 }
 0x166   : > { %1751 = vmatpush1.bf16.msra.mxu0 %v7157_v38 }
 0x167   : > { %1752 = vmatprep.subr.bf16.mxu0 %v7162_v39 }
 0x16a   : > { %1753 = vmatpush1.bf16.msra.mxu0 %v7160_v40 }
 0x16b   : > { %1754 = vmatprep.subr.bf16.mxu0 %v7165_v41  ;;  %v1166_v41 = vsub.s32 4, %v8064_v1 }
 0x16e   : > { %1755 = vmatpush1.bf16.msra.mxu0 %v7163_v42  ;;  %v1170_v42 = vsub.s32 5, %v8064_v1 }
 0x16f   : > { %1756 = vmatprep.subr.bf16.mxu0 %v7168_v43  ;;  %v1167_v43 = vrot.slane %v8073_v4, %v1166_v41 }
 0x172   : > { %1757 = vmatpush1.bf16.msra.mxu0 %v7166_v44 }
 0x173   : > { %1758 = vmatprep.subr.bf16.mxu0 %v7171_v45  ;;  %v8149_v45 = vrot.slane %v8073_v4, %v1170_v42 }
 0x176   : > { %1759 = vmatpush1.bf16.msra.mxu0 %v7169_v46 }
 0x177   : > { %1760 = vmatprep.subr.bf16.mxu0 %v7174_v47 }
 0x17a   : > { %1761 = vmatpush1.bf16.msra.mxu0 %v7172_v48 }
 0x17b   : > { %1762 = vmatprep.subr.bf16.mxu0 %v7177_v49 }
 0x17e   : > { %1763 = vmatpush1.bf16.msra.mxu0 %v7175_v50 }
 0x17f   : > { %1764 = vmatprep.subr.bf16.mxu0 %v7180_v51 }
 0x182   : > { %1765 = vmatpush1.bf16.msra.mxu0 %v7178_v52 }
 0x183   : > { %1766 = vmatprep.subr.bf16.mxu0 %v7183_v53 }
 0x186   : > { %1767 = vmatpush1.bf16.msra.mxu0 %v7181_v54 }
 0x187   : > { %1768 = vmatprep.subr.bf16.mxu0 %v7186_v55 }
 0x18a   : > { %1769 = vmatpush1.bf16.msra.mxu0 %v7184_v56 }
 0x18b   : > { %1770 = vmatprep.subr.bf16.mxu0 %v7189_v57 }
 0x18e   : > { %1771 = vmatpush1.bf16.msra.mxu0 %v7187_v58 }
 0x18f   : > { %1772 = vmatprep.subr.bf16.mxu0 %v7192_v59 }
 0x192   : > { %1773 = vmatpush1.bf16.msra.mxu0 %v7190_v60 }
 0x193   : > { %1774 = vmatprep.subr.bf16.mxu0 %v7195_v61 }
 0x196   : > { %1775 = vmatpush1.bf16.msra.mxu0 %v7193_v62 }
 0x197   : > { %6773 = vmatprep.subr.bf16.mxu0 %v7729_v63 }
 0x199   : > { %1777 = vmatmul.mubr.bf16.vlgmr.msra.gmra.mrb[4].mxu0 %v8022_v31 }
 0x19a   : > { %6775 = vmatprep.mubr.msk.bf16.mxu0 %vm7730_vm2, %v7729_v63 }
 0x22c   : > { %v1692_v7 = vpop.f32.mrb[0].mxu0 }
 0x22d   : > { %v1735_v8 = vpop.f32.mrb[0].mxu1  ;;  %v1693_v9 = vadd.f32 %v1692_v7, %v1151_v5  ;;  %v1694_v11 = vpop.f32.mrb[1].mxu0 }
 0x22e   : > { %v1736_v10 = vadd.f32 %v1735_v8, %v1159_v6  ;;  %v1737_v12 = vpop.f32.mrb[1].mxu1  ;;  %v1696_v13 = vpop.f32.mrb[2].mxu0  ;;  %v1695_v31 = vadd.f32 %v1694_v11, %v1155_v29 }
 0x22f   : > { %v1739_v14 = vpop.f32.mrb[2].mxu1  ;;  %v1787_v15 = vmul.f32 0.17677669, %v1693_v9  ;;  %v1698_v17 = vpop.f32.mrb[3].mxu0  ;;  %v1697_v22 = vadd.f32 %v1696_v13, %v1151_v5  ;;  %v1738_v32 = vadd.f32 %v1737_v12, %v1163_v30 }
 0x230   : > { %v1795_v16 = vpack.c.bf16 %v1736_v10, %v1736_v10  ;;  %v1741_v18 = vpop.f32.mrb[3].mxu1  ;;  %v1740_v20 = vadd.f32 %v1739_v14, %v1159_v6  ;;  %v1788_v34 = vmul.f32 0.17677669, %v1695_v31  ;;  %v1699_v36 = vadd.f32 %v1698_v17, %v1155_v29 }
 0x231   : > { %v1791_v19 = vpack.c.bf16 %v1787_v15, %v1787_v15  ;;  %v1789_v24 = vmul.f32 0.17677669, %v1697_v22  ;;  %v1742_v33 = vadd.f32 %v1741_v18, %v1163_v30  ;;  %v8110_v35 = vpack.c.bf16 %v1738_v32, %v1738_v32 }
 0x232   : > { %1900 = vrot.lane.b32.xlu0 %v1795_v16, %s7731_s18  ;;  %v1808_v21 = vsel %vm1803_vm3, %v1795_v16, 0  ;;  %v1797_v23 = vpack.c.bf16 %v1740_v20, %v1740_v20  ;;  %v8117_v38 = vpack.c.bf16 %v1788_v34, %v1788_v34  ;;  %v1790_v39 = vmul.f32 0.17677669, %v1699_v36 }
 0x233   : > { %6774 = vmatpush3.bf16.xpose.msra.mxu0 %v1808_v21  ;;  %1897 = vrot.lane.b32.xlu1 %v1791_v19, %s7731_s18  ;;  %v1793_v28 = vpack.c.bf16 %v1789_v24, %v1789_v24  ;;  %v8113_v37 = vpack.c.bf16 %v1742_v33, %v1742_v33  ;;  %v2204_v7 = vsel %vm1803_vm3, %v8110_v35, 0 }
 0x234   : > { %6779 = vmatprep.subr.bf16.mxu0 %v7729_v63  ;;  %v1854_v25 = vsel %vm1803_vm3, %v1797_v23, 0  ;;  %v8125_v40 = vpack.c.bf16 %v1790_v39, %v1790_v39 }
 0x235   : > { %v2250_v20 = vsel %vm1803_vm3, %v8113_v37, 0 }
 0x236   : > { %2002 = vrot.lane.b32.xlu0 %v1795_v16, %s7732_s30 }
 0x237   : > { %1952 = vrot.lane.b32.xlu1 %v1797_v23, %s7731_s18 }
 0x23a   : > { %2000 = vrot.lane.b32.xlu0 %v1791_v19, %s7732_s30  ;;  %6776 = vmatmul.mubr.msk.bf16.vlgmr.msra.gmra.mrb[8].mxu0 %vm1803_vm3, %v1791_v19 }
 0x23b   : > { %6780 = vmatpush3.bf16.xpose.msra.mxu0 %v1854_v25  ;;  %6781 = vmatprep.mubr.msk.bf16.mxu0 %vm7730_vm2, %v7729_v63 }
 0x23c   : > { %2052 = vrot.lane.b32.xlu1 %v1797_v23, %s7732_s30  ;;  %6785 = vmatprep.subr.bf16.mxu0 %v7729_v63 }
 0x23e   : > { %1949 = vrot.lane.b32.xlu0 %v1793_v28, %s7731_s18 }
 0x240   : > { %2050 = vrot.lane.b32.xlu1 %v1793_v28, %s7732_s30 }
 0x242   : > { %2102 = vrot.lane.b32.xlu0 %v1795_v16, %s7733_s25  ;;  %6782 = vmatmul.mubr.msk.bf16.vlgmr.msra.gmra.mrb[12].mxu0 %vm1803_vm3, %v1793_v28 }
 0x243   : > { %6787 = vmatprep.mubr.msk.bf16.mxu0 %vm7730_vm2, %v7729_v63 }
 0x244   : > { %2100 = vrot.lane.b32.xlu1 %v1791_v19, %s7733_s25 }
 0x246   : > { %2152 = vrot.lane.b32.xlu0 %v1797_v23, %s7733_s25 }
 0x248   : > { %2150 = vrot.lane.b32.xlu1 %v1793_v28, %s7733_s25 }
 0x24a   : > { %2296 = vrot.lane.b32.xlu0 %v8110_v35, %s7731_s18 }
 0x24c   : > { %2348 = vrot.lane.b32.xlu1 %v8113_v37, %s7731_s18 }
 0x24e   : > { %2293 = vrot.lane.b32.xlu0 %v8117_v38, %s7731_s18 }
 0x250   : > { %2448 = vrot.lane.b32.xlu1 %v8113_v37, %s7732_s30 }
 0x252   : > { %2398 = vrot.lane.b32.xlu0 %v8110_v35, %s7732_s30 }
 0x254   : > { %2345 = vrot.lane.b32.xlu1 %v8125_v40, %s7731_s18 }
 0x256   : > { %2396 = vrot.lane.b32.xlu0 %v8117_v38, %s7732_s30 }
 0x258   : > { %2446 = vrot.lane.b32.xlu1 %v8125_v40, %s7732_s30 }
 0x25a   : > { %2498 = vrot.lane.b32.xlu0 %v8110_v35, %s7733_s25 }
 0x25c   : > { %2548 = vrot.lane.b32.xlu1 %v8113_v37, %s7733_s25 }
 0x25e   : > { %2496 = vrot.lane.b32.xlu0 %v8117_v38, %s7733_s25 }
 0x260   : > { %2546 = vrot.lane.b32.xlu1 %v8125_v40, %s7733_s25 }
 0x26c   : > { %v1778_v44 = vpop.f32.mrb[4].mxu0 }
 0x26d   : > { %v1779_v46 = vadd.f32 %v1778_v44, %v1167_v43  ;;  %v8151_v47 = vpop.f32.mrb[5].mxu0 }
 0x26e   : > { %v1782_v48 = vpop.f32.mrb[6].mxu0 }
 0x26f   : > { %v8153_v49 = vpack.c.bf16 %v1779_v46, %v1779_v46  ;;  %v1783_v50 = vadd.f32 %v1782_v48, %v1167_v43  ;;  %v1784_v51 = vpop.f32.mrb[7].mxu0 }
 0x270   : > { %v8156_v52 = vadd.f32 %v1784_v51, %v8149_v45 }
 0x271   : > { %v8158_v53 = vpack.c.bf16 %v1783_v50, %v1783_v50  ;;  %2775 = vrot.lane.b32.xlu1 %v8153_v49, %s7731_s18  ;;  %v2822_v28 = vsel %vm2820_vm4, %v8153_v49, 0 }
 0x273   : > { %2777 = vrot.lane.b32.xlu0 %v8158_v53, %s7731_s18  ;;  %v2868_v34 = vsel %vm2820_vm4, %v8158_v53, 0 }
 0x275   : > { %2779 = vrot.lane.b32.xlu1 %v8153_v49, %s7732_s30 }
 0x277   : > { %2781 = vrot.lane.b32.xlu0 %v8158_v53, %s7732_s30 }
 0x279   : > { %2783 = vrot.lane.b32.xlu1 %v8153_v49, %s7733_s25 }
 0x2a4   : > { %v1901_v54 = vpop.permute.xlu0 %1900 }
 0x2a5   : > { %v1906_v55 = vsel %vm1803_vm3, %v1901_v54, 0  ;;  %v1898_v56 = vpop.permute.xlu1 %1897 }
 0x2a6   : > { %6786 = vmatpush3.bf16.xpose.msra.mxu0 %v1906_v55 }
 0x2a7   : > { %6791 = vmatprep.subr.bf16.mxu0 %v7729_v63 }
 0x2a8   : > { %v2003_v57 = vpop.permute.xlu0 %2002 }
 0x2a9   : > { %v2008_v58 = vsel %vm1803_vm3, %v2003_v57, 0  ;;  %v1953_v59 = vpop.permute.xlu1 %1952 }
 0x2aa   : > { %6798 = vmatpush3.bf16.xpose.msra.mxu1 %v2008_v58  ;;  %v1958_v61 = vsel %vm1803_vm3, %v1953_v59, 0 }
 0x2ab   : > { %6803 = vmatprep.subr.bf16.mxu1 %v7729_v63 }
 0x2ac   : > { %v2001_v60 = vpop.permute.xlu0 %2000 }
 0x2ad   : > { %6788 = vmatmul.mubr.msk.bf16.vlgmr.msra.gmra.mrb[16].mxu0 %vm1803_vm3, %v1898_v56 }
 0x2ae   : > { %v2053_v62 = vpop.permute.xlu1 %2052  ;;  %6792 = vmatpush3.bf16.xpose.msra.mxu0 %v1958_v61  ;;  %6793 = vmatprep.mubr.msk.bf16.mxu0 %vm7730_vm2, %v7729_v63 }
 0x2af   : > { %6821 = vmatprep.subr.bf16.mxu0 %v7729_v63  ;;  %v2058_v4 = vsel %vm1803_vm3, %v2053_v62, 0 }
 0x2b0   : > { %v1950_v0 = vpop.permute.xlu0 %1949 }
 0x2b1   : > { %6800 = vmatmul.mubr.msk.bf16.vlgmr.msra.gmra.mrb[4].mxu1 %vm1803_vm3, %v2001_v60 }
 0x2b2   : > { %6804 = vmatpush3.bf16.xpose.msra.mxu1 %v2058_v4  ;;  %6805 = vmatprep.mubr.msk.bf16.mxu1 %vm7730_vm2, %v7729_v63  ;;  %v2051_v5 = vpop.permute.xlu1 %2050 }
 0x2b3   : > { %6809 = vmatprep.subr.bf16.mxu1 %v7729_v63 }
 0x2b4   : > { %v2103_v6 = vpop.permute.xlu0 %2102 }
 0x2b5   : > { %6794 = vmatmul.mubr.msk.bf16.vlgmr.msra.gmra.mrb[20].mxu0 %vm1803_vm3, %v1950_v0  ;;  %v2108_v9 = vsel %vm1803_vm3, %v2103_v6, 0 }
 0x2b6   : > { %6822 = vmatpush3.bf16.xpose.msra.mxu0 %v2204_v7  ;;  %6823 = vmatprep.mubr.msk.bf16.mxu0 %vm7730_vm2, %v7729_v63  ;;  %v2101_v10 = vpop.permute.xlu1 %2100 }
 0x2b7   : > { %6833 = vmatprep.subr.bf16.mxu0 %v7729_v63 }
 0x2b8   : > { %v2153_v8 = vpop.permute.xlu0 %2152 }
 0x2b9   : > { %6806 = vmatmul.mubr.msk.bf16.vlgmr.msra.gmra.mrb[8].mxu1 %vm1803_vm3, %v2051_v5  ;;  %v2158_v15 = vsel %vm1803_vm3, %v2153_v8, 0 }
 0x2ba   : > { %6810 = vmatpush3.bf16.xpose.msra.mxu1 %v2108_v9  ;;  %6811 = vmatprep.mubr.msk.bf16.mxu1 %vm7730_vm2, %v7729_v63  ;;  %v2151_v13 = vpop.permute.xlu1 %2150 }
 0x2bb   : > { %6815 = vmatprep.subr.bf16.mxu1 %v7729_v63 }
 0x2bc   : > { %v2297_v11 = vpop.permute.xlu0 %2296 }
 0x2bd   : > { %v2302_v12 = vsel %vm1803_vm3, %v2297_v11, 0  ;;  %6824 = vmatmul.mubr.msk.bf16.vlgmr.msra.gmra.mrb[24].mxu0 %vm1803_vm3, %v8117_v38 }
 0x2be   : > { %6834 = vmatpush3.bf16.xpose.msra.mxu0 %v2302_v12  ;;  %6835 = vmatprep.mubr.msk.bf16.mxu0 %vm7730_vm2, %v7729_v63  ;;  %v2349_v18 = vpop.permute.xlu1 %2348 }
 0x2bf   : > { %6845 = vmatprep.subr.bf16.mxu0 %v7729_v63  ;;  %v2354_v24 = vsel %vm1803_vm3, %v2349_v18, 0 }
 0x2c0   : > { %v2294_v14 = vpop.permute.xlu0 %2293 }
 0x2c1   : > { %6812 = vmatmul.mubr.msk.bf16.vlgmr.msra.gmra.mrb[12].mxu1 %vm1803_vm3, %v2101_v10 }
 0x2c2   : > { %6816 = vmatpush3.bf16.xpose.msra.mxu1 %v2158_v15  ;;  %6817 = vmatprep.mubr.msk.bf16.mxu1 %vm7730_vm2, %v7729_v63  ;;  %v2449_v21 = vpop.permute.xlu1 %2448 }
 0x2c3   : > { %6827 = vmatprep.subr.bf16.mxu1 %v7729_v63  ;;  %v2454_v31 = vsel %vm1803_vm3, %v2449_v21, 0 }
 0x2c4   : > { %v2399_v16 = vpop.permute.xlu0 %2398 }
 0x2c5   : > { %v2404_v17 = vsel %vm1803_vm3, %v2399_v16, 0  ;;  %6836 = vmatmul.mubr.msk.bf16.vlgmr.msra.gmra.mrb[28].mxu0 %vm1803_vm3, %v2294_v14 }
 0x2c6   : > { %6846 = vmatpush3.bf16.xpose.msra.mxu0 %v2404_v17  ;;  %6847 = vmatprep.mubr.msk.bf16.mxu0 %vm7730_vm2, %v7729_v63  ;;  %v2346_v25 = vpop.permute.xlu1 %2345 }
 0x2c7   : > { %6857 = vmatprep.subr.bf16.mxu0 %v7729_v63 }
 0x2c8   : > { %v2397_v19 = vpop.permute.xlu0 %2396 }
 0x2c9   : > { %6818 = vmatmul.mubr.msk.bf16.vlgmr.msra.gmra.mrb[16].mxu1 %vm1803_vm3, %v2151_v13 }
 0x2ca   : > { %6828 = vmatpush3.bf16.xpose.msra.mxu1 %v2250_v20  ;;  %6829 = vmatprep.mubr.msk.bf16.mxu1 %vm7730_vm2, %v7729_v63  ;;  %v2447_v30 = vpop.permute.xlu1 %2446 }
 0x2cb   : > { %6839 = vmatprep.subr.bf16.mxu1 %v7729_v63 }
 0x2cc   : > { %v2499_v22 = vpop.permute.xlu0 %2498 }
 0x2cd   : > { %v2504_v23 = vsel %vm1803_vm3, %v2499_v22, 0  ;;  %6848 = vmatmul.mubr.msk.bf16.vlgmr.msra.gmra.mrb[32].mxu0 %vm1803_vm3, %v2397_v19 }
 0x2ce   : > { %6858 = vmatpush3.bf16.xpose.msra.mxu0 %v2504_v23  ;;  %6859 = vmatprep.mubr.msk.bf16.mxu0 %vm7730_vm2, %v7729_v63  ;;  %v2549_v32 = vpop.permute.xlu1 %2548 }
 0x2cf   : > { %6869 = vmatprep.subr.bf16.mxu0 %v7729_v63  ;;  %v2554_v33 = vsel %vm1803_vm3, %v2549_v32, 0 }
 0x2d0   : > { %v2497_v29 = vpop.permute.xlu0 %2496 }
 0x2d1   : > { %6830 = vmatmul.mubr.msk.bf16.vlgmr.msra.gmra.mrb[20].mxu1 %vm1803_vm3, %v8125_v40 }
 0x2d2   : > { %6840 = vmatpush3.bf16.xpose.msra.mxu1 %v2354_v24  ;;  %6841 = vmatprep.mubr.msk.bf16.mxu1 %vm7730_vm2, %v7729_v63  ;;  %v2547_v35 = vpop.permute.xlu1 %2546 }
 0x2d3   : > { %6851 = vmatprep.subr.bf16.mxu1 %v7729_v63 }
 0x2d5   : > { %6860 = vmatmul.mubr.msk.bf16.vlgmr.msra.gmra.mrb[36].mxu0 %vm1803_vm3, %v2497_v29 }
 0x2d6   : > { %6870 = vmatpush3.bf16.msra.mxu0 %v2822_v28  ;;  %6871 = vmatprep.mubr.msk.bf16.mxu0 %vm7730_vm2, %v7729_v63 }
 0x2d7   : > { %6881 = vmatprep.subr.bf16.mxu0 %v7729_v63 }
 0x2d9   : > { %6842 = vmatmul.mubr.msk.bf16.vlgmr.msra.gmra.mrb[24].mxu1 %vm1803_vm3, %v2346_v25 }
 0x2da   : > { %6852 = vmatpush3.bf16.xpose.msra.mxu1 %v2454_v31  ;;  %6853 = vmatprep.mubr.msk.bf16.mxu1 %vm7730_vm2, %v7729_v63 }
 0x2db   : > { %6863 = vmatprep.subr.bf16.mxu1 %v7729_v63 }
 0x2e1   : > { %6854 = vmatmul.mubr.msk.bf16.vlgmr.msra.gmra.mrb[28].mxu1 %vm1803_vm3, %v2447_v30 }
 0x2e2   : > { %6864 = vmatpush3.bf16.xpose.msra.mxu1 %v2554_v33  ;;  %6865 = vmatprep.mubr.msk.bf16.mxu1 %vm7730_vm2, %v7729_v63 }
 0x2e3   : > { %6875 = vmatprep.subr.bf16.mxu1 %v7729_v63  ;;  %v8278_v16 = vpop.permute.xlu1 %2775 }
 0x2e5   : > { %v8276_v13 = vpop.permute.xlu0 %2777 }
 0x2e7   : > { %v8290_v28 = vpop.permute.xlu1 %2779 }
 0x2e9   : > { %6866 = vmatmul.mubr.msk.bf16.vlgmr.msra.gmra.mrb[32].mxu1 %vm1803_vm3, %v2547_v35  ;;  %v8284_v22 = vpop.permute.xlu0 %2781 }
 0x2ea   : > { %6876 = vmatpush3.bf16.msra.mxu1 %v2868_v34  ;;  %6877 = vmatprep.mubr.msk.bf16.mxu1 %vm7730_vm2, %v7729_v63 }
 0x2eb   : > { %6887 = vmatprep.subr.bf16.mxu1 %v7729_v63 }
 0x30d   : > { %v8250_v36 = vpop.f32.mrb[8].mxu0 }
 0x30e   : > { %v6777_v37 = vpop.f32.mrb[9].mxu0  ;;  %v2597_v38 = vsel %vm2596_vm5, %v8250_v36, -inf }
 0x30f   : > { %2598 = vmax.xlane.f32.xlu0 %v2597_v38  ;;  %v1847_v39 = vpop.f32.mrb[10].mxu0 }
 0x310   : > { %v6778_v40 = vpop.f32.mrb[11].mxu0 }
 0x315   : > { %v8254_v42 = vpop.f32.mrb[12].mxu0 }
 0x316   : > { %v6783_v43 = vpop.f32.mrb[13].mxu0  ;;  %v2600_v44 = vsel %vm2596_vm5, %v8254_v42, -inf }
 0x317   : > { %2601 = vmax.xlane.f32.xlu1 %v2600_v44  ;;  %v1893_v46 = vpop.f32.mrb[14].mxu0  ;;  %v8299_v43 = vpop.permute.xlu1 %2783 }
 0x318   : > { %v6784_v48 = vpop.f32.mrb[15].mxu0 }
 0x380   : > { %v8258_v49 = vpop.f32.mrb[16].mxu0 }
 0x381   : > { %v6789_v50 = vpop.f32.mrb[17].mxu0  ;;  %v2603_v51 = vsel %vm2596_vm5, %v8258_v49, -inf }
 0x382   : > { %2604 = vmax.xlane.f32.xlu0 %v2603_v51  ;;  %v1945_v54 = vpop.f32.mrb[18].mxu0 }
 0x383   : > { %v6790_v55 = vpop.f32.mrb[19].mxu0 }
 0x384   : > { %v8262_v56 = vpop.f32.mrb[4].mxu1 }
 0x385   : > { %v6801_v57 = vpop.f32.mrb[5].mxu1  ;;  %v2609_v58 = vsel %vm2596_vm5, %v8262_v56, -inf }
 0x386   : > { %v2047_v59 = vpop.f32.mrb[6].mxu1  ;;  %2610 = vmax.xlane.f32.xlu1 %v2609_v58 }
 0x387   : > { %v6802_v60 = vpop.f32.mrb[7].mxu1 }
 0x388   : > { %v8266_v61 = vpop.f32.mrb[20].mxu0 }
 0x389   : > { %v6795_v62 = vpop.f32.mrb[21].mxu0  ;;  %v2606_v0 = vsel %vm2596_vm5, %v8266_v61, -inf }
 0x38a   : > { %2607 = vmax.xlane.f32.xlu0 %v2606_v0  ;;  %v1997_v4 = vpop.f32.mrb[22].mxu0 }
 0x38b   : > { %v6796_v5 = vpop.f32.mrb[23].mxu0 }
 0x38c   : > { %v8270_v6 = vpop.f32.mrb[8].mxu1 }
 0x38d   : > { %v6807_v7 = vpop.f32.mrb[9].mxu1  ;;  %v2612_v8 = vsel %vm2596_vm5, %v8270_v6, -inf }
 0x38e   : > { %v2097_v9 = vpop.f32.mrb[10].mxu1  ;;  %2613 = vmax.xlane.f32.xlu0 %v2612_v8 }
 0x38f   : > { %v6808_v10 = vpop.f32.mrb[11].mxu1 }
 0x390   : > { %v8274_v11 = vpop.f32.mrb[24].mxu0 }
 0x391   : > { %v6825_v12 = vpop.f32.mrb[25].mxu0  ;;  %v2621_v25 = vsel %vm2596_vm5, %v8274_v11, -inf }
 0x392   : > { %v2243_v14 = vpop.f32.mrb[26].mxu0 }
 0x393   : > { %v6826_v15 = vpop.f32.mrb[27].mxu0 }
 0x394   : > { %v8280_v17 = vpop.f32.mrb[12].mxu1 }
 0x395   : > { %v6813_v18 = vpop.f32.mrb[13].mxu1  ;;  %v2615_v19 = vsel %vm2596_vm5, %v8280_v17, -inf }
 0x396   : > { %v2147_v20 = vpop.f32.mrb[14].mxu1  ;;  %2616 = vmax.xlane.f32.xlu1 %v2615_v19 }
 0x397   : > { %v6814_v21 = vpop.f32.mrb[15].mxu1 }
 0x398   : > { %v8286_v23 = vpop.f32.mrb[28].mxu0 }
 0x399   : > { %v6837_v24 = vpop.f32.mrb[29].mxu0  ;;  %v2627_v37 = vsel %vm2596_vm5, %v8286_v23, -inf }
 0x39a   : > { %2622 = vmax.xlane.f32.xlu1 %v2621_v25  ;;  %v2341_v29 = vpop.f32.mrb[30].mxu0 }
 0x39b   : > { %v6838_v30 = vpop.f32.mrb[31].mxu0 }
 0x39c   : > { %v8292_v31 = vpop.f32.mrb[16].mxu1  ;;  %v2599_v32 = vpop.xlane.xlu0 %2598  ;;  %v1781_v30 = vadd.f32 %v8151_v47, %v8149_v45 }
 0x39d   : > { %v2645_v33 = vsub.f32 %v8250_v36, %v2599_v32  ;;  %v6819_v34 = vpop.f32.mrb[17].mxu1  ;;  %v2618_v35 = vsel %vm2596_vm5, %v8292_v31, -inf }
 0x39e   : > { %v2197_v38 = vpop.f32.mrb[18].mxu1  ;;  %2619 = vmax.xlane.f32.xlu0 %v2618_v35  ;;  %2628 = vmax.xlane.f32.xlu1 %v2627_v37  ;;  %v8334_v34 = vpack.c.bf16 %v1781_v30, %v1781_v30 }
 0x39f   : > { %v2661_v39 = vmul.f32 1.442695, %v2645_v33  ;;  %v6820_v40 = vpop.f32.mrb[19].mxu1 }
 0x3a0   : > { %v8301_v44 = vpop.f32.mrb[32].mxu0 }
 0x3a1   : > { %7436 = vpow2.f32 %v2661_v39  ;;  %v6849_v46 = vpop.f32.mrb[33].mxu0  ;;  %v2633_v36 = vsel %vm2596_vm5, %v8301_v44, -inf }
 0x3a2   : > { %2634 = vmax.xlane.f32.xlu1 %v2633_v36  ;;  %v2443_v48 = vpop.f32.mrb[34].mxu0 }
 0x3a3   : > { %v6850_v50 = vpop.f32.mrb[35].mxu0 }
 0x3a4   : > { %v8305_v51 = vpop.f32.mrb[20].mxu1  ;;  %v2602_v54 = vpop.xlane.xlu1 %2601 }
 0x3a5   : > { %v2646_v55 = vsub.f32 %v8254_v42, %v2602_v54  ;;  %v6831_v57 = vpop.f32.mrb[21].mxu1  ;;  %v2624_v58 = vsel %vm2596_vm5, %v8305_v51, -inf }
 0x3a6   : > { %v2289_v59 = vpop.f32.mrb[22].mxu1  ;;  %2625 = vmax.xlane.f32.xlu0 %v2624_v58 }
 0x3a7   : > { %v6832_v60 = vpop.f32.mrb[23].mxu1  ;;  %v2663_v62 = vmul.f32 1.442695, %v2646_v55 }
 0x3a8   : > { %v8310_v0 = vpop.f32.mrb[36].mxu0 }
 0x3a9   : > { %v6861_v4 = vpop.f32.mrb[37].mxu0  ;;  %v2639_v5 = vsel %vm2596_vm5, %v8310_v0, -inf  ;;  %7438 = vpow2.f32 %v2663_v62 }
 0x3aa   : > { %2640 = vmax.xlane.f32.xlu1 %v2639_v5  ;;  %v2543_v7 = vpop.f32.mrb[38].mxu0 }
 0x3ab   : > { %v8314_v8 = vpop.eup %7436  ;;  %v6862_v9 = vpop.f32.mrb[39].mxu0 }
 0x3ac   : > { %v8316_v42 = vpop.f32.mrb[24].mxu1  ;;  %v2693_v10 = vsel %vm2596_vm5, %v8314_v8, 0.0 }
 0x3ad   : > { %v6843_v12 = vpop.f32.mrb[25].mxu1  ;;  %v2630_v14 = vsel %vm2596_vm5, %v8316_v42, -inf }
 0x3ae   : > { %v2393_v15 = vpop.f32.mrb[26].mxu1  ;;  %2631 = vmax.xlane.f32.xlu0 %v2630_v14  ;;  %2694 = vadd.xlane.f32.xlu1 %v2693_v10 }
 0x3af   : > { %v6844_v18 = vpop.f32.mrb[27].mxu1 }
 0x3b3   : > { %v8326_v24 = vpop.eup %7438 }
 0x3b4   : > { %v8322_v19 = vpop.f32.mrb[28].mxu1  ;;  %v2696_v32 = vsel %vm2596_vm5, %v8326_v24, 0.0 }
 0x3b5   : > { %v6855_v20 = vpop.f32.mrb[29].mxu1  ;;  %v2636_v21 = vsel %vm2596_vm5, %v8322_v19, -inf }
 0x3b6   : > { %v2493_v25 = vpop.f32.mrb[30].mxu1  ;;  %2637 = vmax.xlane.f32.xlu0 %v2636_v21 }
 0x3b7   : > { %v6856_v29 = vpop.f32.mrb[31].mxu1 }
 0x3ba   : > { %2697 = vadd.xlane.f32.xlu0 %v2696_v32 }
 0x3bc   : > { %v8332_v33 = vpop.f32.mrb[32].mxu1 }
 0x3bd   : > { %v6867_v35 = vpop.f32.mrb[33].mxu1  ;;  %v2642_v37 = vsel %vm2596_vm5, %v8332_v33, -inf }
 0x3be   : > { %v2593_v38 = vpop.f32.mrb[34].mxu1  ;;  %2643 = vmax.xlane.f32.xlu0 %v2642_v37 }
 0x3bf   : > { %v6868_v39 = vpop.f32.mrb[35].mxu1  ;;  %2789 = vrot.lane.b32.xlu1 %v8334_v34, %s7731_s18 }
 0x3d4   : > { %2785 = vrot.lane.b32.xlu0 %v8158_v53, %s7733_s25 }
 0x40f   : > { %v2605_v45 = vpop.xlane.xlu0 %2604 }
 0x410   : > { %v2647_v47 = vsub.f32 %v8258_v49, %v2605_v45 }
 0x412   : > { %v2665_v40 = vmul.f32 1.442695, %v2647_v47 }
 0x413   : > { %v2611_v46 = vpop.xlane.xlu1 %2610 }
 0x414   : > { %7440 = vpow2.f32 %v2665_v40  ;;  %v2649_v36 = vsub.f32 %v8262_v56, %v2611_v46 }
 0x416   : > { %v2669_v48 = vmul.f32 1.442695, %v2649_v36 }
 0x417   : > { %v2608_v50 = vpop.xlane.xlu0 %2607 }
 0x418   : > { %7442 = vpow2.f32 %v2669_v48  ;;  %v2648_v54 = vsub.f32 %v8266_v61, %v2608_v50 }
 0x41a   : > { %v2667_v55 = vmul.f32 1.442695, %v2648_v54 }
 0x41b   : > { %v2614_v57 = vpop.xlane.xlu0 %2613 }
 0x41c   : > { %7444 = vpow2.f32 %v2667_v55  ;;  %v2650_v58 = vsub.f32 %v8270_v6, %v2614_v57 }
 0x41e   : > { %v8346_v59 = vpop.eup %7440  ;;  %v2671_v53 = vmul.f32 1.442695, %v2650_v58 }
 0x41f   : > { %v2699_v49 = vsel %vm2596_vm5, %v8346_v59, 0.0 }
 0x420   : > { %7446 = vpow2.f32 %v2671_v53  ;;  %2700 = vadd.xlane.f32.xlu1 %v2699_v49 }
 0x422   : > { %v8350_v60 = vpop.eup %7442 }
 0x423   : > { %v2617_v56 = vpop.xlane.xlu1 %2616  ;;  %v2705_v62 = vsel %vm2596_vm5, %v8350_v60, 0.0 }
 0x424   : > { %v2651_v61 = vsub.f32 %v8280_v17, %v2617_v56  ;;  %2706 = vadd.xlane.f32.xlu1 %v2705_v62 }
 0x426   : > { %v8355_v4 = vpop.eup %7444  ;;  %v2673_v6 = vmul.f32 1.442695, %v2651_v61 }
 0x427   : > { %v2623_v5 = vpop.xlane.xlu1 %2622  ;;  %v2702_v7 = vsel %vm2596_vm5, %v8355_v4, 0.0 }
 0x428   : > { %7448 = vpow2.f32 %v2673_v6  ;;  %v2653_v9 = vsub.f32 %v8274_v11, %v2623_v5  ;;  %2703 = vadd.xlane.f32.xlu0 %v2702_v7  ;;  %v2914_v5 = vsel %vm2820_vm4, %v8278_v16, 0  ;;  %v8408_v7 = vpack.c.bf16 %v8156_v52, %v8156_v52 }
 0x42a   : > { %v8360_v10 = vpop.eup %7446  ;;  %v2677_v12 = vmul.f32 1.442695, %v2653_v9 }
 0x42b   : > { %v2620_v14 = vpop.xlane.xlu0 %2619  ;;  %v2629_v15 = vpop.xlane.xlu1 %2628  ;;  %v2708_v17 = vsel %vm2596_vm5, %v8360_v10, 0.0 }
 0x42c   : > { %7450 = vpow2.f32 %v2677_v12  ;;  %v2652_v18 = vsub.f32 %v8292_v31, %v2620_v14  ;;  %v2655_v20 = vsub.f32 %v8286_v23, %v2629_v15  ;;  %2709 = vadd.xlane.f32.xlu0 %v2708_v17  ;;  %v2960_v12 = vsel %vm2820_vm4, %v8276_v13, 0 }
 0x42e   : > { %v2675_v21 = vmul.f32 1.442695, %v2652_v18  ;;  %v2681_v25 = vmul.f32 1.442695, %v2655_v20 }
 0x42f   : > { %v2635_v29 = vpop.xlane.xlu1 %2634 }
 0x430   : > { %7452 = vpow2.f32 %v2675_v21  ;;  %v2657_v11 = vsub.f32 %v8301_v44, %v2635_v29 }
 0x431   : > { %7454 = vpow2.f32 %v2681_v25 }
 0x432   : > { %v8367_v30 = vpop.eup %7448  ;;  %v2685_v32 = vmul.f32 1.442695, %v2657_v11 }
 0x433   : > { %v2626_v35 = vpop.xlane.xlu0 %2625  ;;  %v2711_v37 = vsel %vm2596_vm5, %v8367_v30, 0.0 }
 0x434   : > { %7456 = vpow2.f32 %v2685_v32  ;;  %v2654_v31 = vsub.f32 %v8305_v51, %v2626_v35  ;;  %2712 = vadd.xlane.f32.xlu1 %v2711_v37 }
 0x436   : > { %v8372_v23 = vpop.eup %7450  ;;  %v2679_v38 = vmul.f32 1.442695, %v2654_v31 }
 0x437   : > { %v2641_v39 = vpop.xlane.xlu1 %2640  ;;  %v2717_v45 = vsel %vm2596_vm5, %v8372_v23, 0.0 }
 0x438   : > { %7458 = vpow2.f32 %v2679_v38  ;;  %2718 = vadd.xlane.f32.xlu1 %v2717_v45  ;;  %v2659_v52 = vsub.f32 %v8310_v0, %v2641_v39 }
 0x43a   : > { %v8376_v44 = vpop.eup %7452 }
 0x43b   : > { %v8378_v47 = vpop.eup %7454  ;;  %v2632_v40 = vpop.xlane.xlu0 %2631  ;;  %v2714_v36 = vsel %vm2596_vm5, %v8376_v44, 0.0 }
 0x43c   : > { %v2695_v46 = vpop.xlane.xlu1 %2694  ;;  %v2656_v51 = vsub.f32 %v8316_v42, %v2632_v40  ;;  %2715 = vadd.xlane.f32.xlu0 %v2714_v36  ;;  %v2723_v48 = vsel %vm2596_vm5, %v8378_v47, 0.0 }
 0x43d   : > { %7460 = vrcp.f32 %v2695_v46  ;;  %2724 = vadd.xlane.f32.xlu1 %v2723_v48  ;;  %v3006_v46 = vsel %vm2820_vm4, %v8290_v28, 0  ;;  %v3052_v28 = vsel %vm2820_vm4, %v8284_v22, 0 }
 0x43e   : > { %v8385_v50 = vpop.eup %7456  ;;  %v2683_v54 = vmul.f32 1.442695, %v2656_v51 }
 0x43f   : > { %v2729_v55 = vsel %vm2596_vm5, %v8385_v50, 0.0 }
 0x440   : > { %7462 = vpow2.f32 %v2683_v54  ;;  %v8440_v29 = vpop.permute.xlu1 %2789 }
 0x441   : > { %2730 = vadd.xlane.f32.xlu1 %v2729_v55 }
 0x442   : > { %v8389_v57 = vpop.eup %7458 }
 0x443   : > { %v2638_v58 = vpop.xlane.xlu0 %2637  ;;  %v2720_v42 = vsel %vm2596_vm5, %v8389_v57, 0.0 }
 0x444   : > { %2721 = vadd.xlane.f32.xlu0 %v2720_v42  ;;  %v2658_v14 = vsub.f32 %v8322_v19, %v2638_v58  ;;  %v3098_v42 = vsel %vm2820_vm4, %v8299_v43, 0 }
 0x446   : > { %v2687_v17 = vmul.f32 1.442695, %v2658_v14 }
 0x447   : > { %v7461_v53 = vpop.eup %7460  ;;  %v2698_v49 = vpop.xlane.xlu0 %2697 }
 0x448   : > { %v2757_v56 = vmul.f32 %v7461_v53, %v8314_v8  ;;  %7464 = vrcp.f32 %v2698_v49 }
 0x44a   : > { %v8394_v62 = vpop.eup %7462  ;;  %v2801_v61 = vpack.c.bf16 %v2757_v56, %v2757_v56 }
 0x44b   : > { %v2726_v6 = vsel %vm2596_vm5, %v8394_v62, 0.0  ;;  %v2644_v15 = vpop.xlane.xlu0 %2643 }
 0x44c   : > { %6872 = vmatmul.mubr.msk.bf16.vlgmr.msra.gmra.mrb[40].mxu0 %vm2596_vm5, %v2801_v61  ;;  %2727 = vadd.xlane.f32.xlu0 %v2726_v6  ;;  %v2660_v13 = vsub.f32 %v8332_v33, %v2644_v15  ;;  %v3236_v15 = vsel %vm2820_vm4, %v8408_v7, 0 }
 0x44d   : > { %6882 = vmatpush3.bf16.msra.mxu0 %v2914_v5  ;;  %6883 = vmatprep.mubr.msk.bf16.mxu0 %vm7730_vm2, %v7729_v63 }
 0x44e   : > { %6893 = vmatprep.subr.bf16.mxu0 %v7729_v63  ;;  %v2691_v18 = vmul.f32 1.442695, %v2660_v13 }
 0x44f   : > { %v2786_v32 = vpop.permute.xlu0 %2785 }
 0x450   : > { %v3144_v56 = vsel %vm2820_vm4, %v2786_v32, 0 }
 0x452   : > { %2793 = vrot.lane.b32.xlu1 %v8334_v34, %s7732_s30  ;;  %v7465_v8 = vpop.eup %7464 }
 0x453   : > { %v2758_v9 = vmul.f32 %v7465_v8, %v8326_v24  ;;  %v2689_v24 = vmul.f32 1.442695, %v2659_v52  ;;  %v3190_v8 = vsel %vm2820_vm4, %v8334_v34, 0 }
 0x455   : > { %v2802_v16 = vpack.c.bf16 %v2758_v9, %v2758_v9  ;;  %7466 = vpow2.f32 %v2689_v24 }
 0x456   : > { %2795 = vrot.lane.b32.xlu1 %v8408_v7, %s7732_s30  ;;  %7468 = vpow2.f32 %v2687_v17 }
 0x457   : > { %6878 = vmatmul.mubr.msk.bf16.vlgmr.msra.gmra.mrb[36].mxu1 %vm2596_vm5, %v2802_v16  ;;  %7470 = vpow2.f32 %v2691_v18 }
 0x458   : > { %6888 = vmatpush3.bf16.msra.mxu1 %v2960_v12  ;;  %6889 = vmatprep.mubr.msk.bf16.mxu1 %vm7730_vm2, %v7729_v63 }
 0x459   : > { %6899 = vmatprep.subr.bf16.mxu1 %v7729_v63 }
 0x45f   : > { %v8424_v20 = vpop.eup %7466 }
 0x460   : > { %v2735_v21 = vsel %vm2596_vm5, %v8424_v20, 0.0  ;;  %v8428_v25 = vpop.eup %7468 }
 0x461   : > { %v2732_v0 = vsel %vm2596_vm5, %v8428_v25, 0.0  ;;  %v8432_v19 = vpop.eup %7470 }
 0x462   : > { %2791 = vrot.lane.b32.xlu0 %v8408_v7, %s7731_s18  ;;  %v2738_v33 = vsel %vm2596_vm5, %v8432_v19, 0.0 }
 0x47a   : > { %2736 = vadd.xlane.f32.xlu1 %v2735_v21 }
 0x481   : > { %2733 = vadd.xlane.f32.xlu0 %v2732_v0 }
 0x485   : > { %2739 = vadd.xlane.f32.xlu0 %v2738_v33 }
 0x48b   : > { %2799 = vrot.lane.b32.xlu1 %v8408_v7, %s7733_s25 }
 0x49b   : > { %2797 = vrot.lane.b32.xlu0 %v8334_v34, %s7733_s25  ;;  %v3282_v34 = vsel %vm2820_vm4, %v8440_v29, 0 }
 0x4ad   : > { %v2701_v11 = vpop.xlane.xlu1 %2700 }
 0x4ae   : > { %7472 = vrcp.f32 %v2701_v11 }
 0x4b1   : > { %v2707_v35 = vpop.xlane.xlu1 %2706 }
 0x4b2   : > { %7474 = vrcp.f32 %v2707_v35 }
 0x4b5   : > { %v2704_v37 = vpop.xlane.xlu0 %2703 }
 0x4b6   : > { %7476 = vrcp.f32 %v2704_v37 }
 0x4b8   : > { %v7473_v31 = vpop.eup %7472 }
 0x4b9   : > { %v2759_v38 = vmul.f32 %v7473_v31, %v8346_v59  ;;  %v2710_v39 = vpop.xlane.xlu0 %2709 }
 0x4ba   : > { %7478 = vrcp.f32 %v2710_v39 }
 0x4bb   : > { %v2803_v45 = vpack.c.bf16 %v2759_v38, %v2759_v38 }
 0x4bc   : > { %v7475_v40 = vpop.eup %7474 }
 0x4bd   : > { %6884 = vmatmul.mubr.msk.bf16.vlgmr.msra.gmra.mrb[44].mxu0 %vm2596_vm5, %v2803_v45  ;;  %v2761_v36 = vmul.f32 %v7475_v40, %v8350_v60 }
 0x4be   : > { %6894 = vmatpush3.bf16.msra.mxu0 %v3006_v46  ;;  %6895 = vmatprep.mubr.msk.bf16.mxu0 %vm7730_vm2, %v7729_v63 }
 0x4bf   : > { %6905 = vmatprep.subr.bf16.mxu0 %v7729_v63  ;;  %v2805_v55 = vpack.c.bf16 %v2761_v36, %v2761_v36 }
 0x4c0   : > { %v7477_v51 = vpop.eup %7476 }
 0x4c1   : > { %v2760_v59 = vmul.f32 %v7477_v51, %v8355_v4  ;;  %v2713_v48 = vpop.xlane.xlu1 %2712 }
 0x4c2   : > { %7480 = vrcp.f32 %v2713_v48 }
 0x4c3   : > { %v2804_v54 = vpack.c.bf16 %v2760_v59, %v2760_v59 }
 0x4c4   : > { %v7479_v58 = vpop.eup %7478 }
 0x4c5   : > { %6890 = vmatmul.mubr.msk.bf16.vlgmr.msra.gmra.mrb[40].mxu1 %vm2596_vm5, %v2804_v54  ;;  %6896 = vmatmul.mubr.msk.bf16.vlgmr.msra.gmra.mrb[48].mxu0 %vm2596_vm5, %v2805_v55  ;;  %v2719_v60 = vpop.xlane.xlu1 %2718  ;;  %v2762_v4 = vmul.f32 %v7479_v58, %v8360_v10 }
 0x4c6   : > { %6900 = vmatpush3.bf16.msra.mxu1 %v3052_v28  ;;  %6906 = vmatpush3.bf16.msra.mxu0 %v3098_v42  ;;  %7482 = vrcp.f32 %v2719_v60 }
 0x4c7   : > { %6901 = vmatprep.mubr.msk.bf16.mxu1 %vm7730_vm2, %v7729_v63  ;;  %6911 = vmatprep.subr.bf16.mxu1 %v7729_v63  ;;  %v2806_v53 = vpack.c.bf16 %v2762_v4, %v2762_v4 }
 0x4c8   : > { %6907 = vmatprep.mubr.msk.bf16.mxu0 %vm7730_vm2, %v7729_v63  ;;  %6917 = vmatprep.subr.bf16.mxu0 %v7729_v63 }
 0x4c9   : > { %v2716_v22 = vpop.xlane.xlu0 %2715 }
 0x4ca   : > { %7484 = vrcp.f32 %v2716_v22  ;;  %v2725_v43 = vpop.xlane.xlu1 %2724 }
 0x4cb   : > { %7486 = vrcp.f32 %v2725_v43 }
 0x4cc   : > { %v7481_v49 = vpop.eup %7480 }
 0x4cd   : > { %v2763_v61 = vmul.f32 %v7481_v49, %v8367_v30  ;;  %6902 = vmatmul.mubr.msk.bf16.vlgmr.msra.gmra.mrb[44].mxu1 %vm2596_vm5, %v2806_v53 }
 0x4ce   : > { %6912 = vmatpush3.bf16.msra.mxu1 %v3144_v56  ;;  %6913 = vmatprep.mubr.msk.bf16.mxu1 %vm7730_vm2, %v7729_v63  ;;  %v2731_v9 = vpop.xlane.xlu1 %2730 }
 0x4cf   : > { %v2807_v10 = vpack.c.bf16 %v2763_v61, %v2763_v61  ;;  %6923 = vmatprep.subr.bf16.mxu1 %v7729_v63 }
 0x4d0   : > { %v7483_v6 = vpop.eup %7482 }
 0x4d1   : > { %v2722_v5 = vpop.xlane.xlu0 %2721  ;;  %6908 = vmatmul.mubr.msk.bf16.vlgmr.msra.gmra.mrb[52].mxu0 %vm2596_vm5, %v2807_v10  ;;  %v2765_v30 = vmul.f32 %v7483_v6, %v8372_v23 }
 0x4d2   : > { %7488 = vrcp.f32 %v2722_v5  ;;  %6918 = vmatpush3.bf16.msra.mxu0 %v3190_v8  ;;  %6919 = vmatprep.mubr.msk.bf16.mxu0 %vm7730_vm2, %v7729_v63  ;;  %v2794_v13 = vpop.permute.xlu1 %2793 }
 0x4d3   : > { %6929 = vmatprep.subr.bf16.mxu0 %v7729_v63  ;;  %7490 = vrcp.f32 %v2731_v9  ;;  %v2809_v24 = vpack.c.bf16 %v2765_v30, %v2765_v30 }
 0x4d4   : > { %v7485_v16 = vpop.eup %7484 }
 0x4d5   : > { %v2764_v12 = vmul.f32 %v7485_v16, %v8376_v44  ;;  %v7487_v14 = vpop.eup %7486 }
 0x4d6   : > { %v2767_v23 = vmul.f32 %v7487_v14, %v8378_v47  ;;  %v3374_v47 = vsel %vm2820_vm4, %v2794_v13, 0  ;;  %v2796_v35 = vpop.permute.xlu1 %2795 }
 0x4d7   : > { %v2808_v52 = vpack.c.bf16 %v2764_v12, %v2764_v12  ;;  %v3420_v38 = vsel %vm2820_vm4, %v2796_v35, 0 }
 0x4d8   : > { %v2811_v0 = vpack.c.bf16 %v2767_v23, %v2767_v23 }
 0x4d9   : > { %6914 = vmatmul.mubr.msk.bf16.vlgmr.msra.gmra.mrb[48].mxu1 %vm2596_vm5, %v2808_v52  ;;  %v2728_v17 = vpop.xlane.xlu0 %2727  ;;  %6920 = vmatmul.mubr.msk.bf16.vlgmr.msra.gmra.mrb[56].mxu0 %vm2596_vm5, %v2809_v24 }
 0x4da   : > { %6924 = vmatpush3.bf16.msra.mxu1 %v3236_v15  ;;  %7492 = vrcp.f32 %v2728_v17  ;;  %6930 = vmatpush3.bf16.msra.mxu0 %v3282_v34 }
 0x4db   : > { %6925 = vmatprep.mubr.msk.bf16.mxu1 %vm7730_vm2, %v7729_v63  ;;  %6931 = vmatprep.mubr.msk.bf16.mxu0 %vm7730_vm2, %v7729_v63 }
 0x4dc   : > { %v7489_v44 = vpop.eup %7488  ;;  %6935 = vmatprep.subr.bf16.mxu1 %v7729_v63  ;;  %6941 = vmatprep.subr.bf16.mxu0 %v7729_v63 }
 0x4dd   : > { %v2766_v7 = vmul.f32 %v7489_v44, %v8389_v57  ;;  %v2792_v18 = vpop.permute.xlu0 %2791  ;;  %v7491_v33 = vpop.eup %7490 }
 0x4de   : > { %v3328_v29 = vsel %vm2820_vm4, %v2792_v18, 0  ;;  %v2769_v11 = vmul.f32 %v7491_v33, %v8385_v50 }
 0x4df   : > { %v2810_v21 = vpack.c.bf16 %v2766_v7, %v2766_v7 }
 0x4e0   : > { %v2813_v31 = vpack.c.bf16 %v2769_v11, %v2769_v11 }
 0x4e1   : > { %6926 = vmatmul.mubr.msk.bf16.vlgmr.msra.gmra.mrb[52].mxu1 %vm2596_vm5, %v2810_v21  ;;  %6932 = vmatmul.mubr.msk.bf16.vlgmr.msra.gmra.mrb[60].mxu0 %vm2596_vm5, %v2811_v0 }
 0x4e2   : > { %6936 = vmatpush3.bf16.msra.mxu1 %v3328_v29  ;;  %6942 = vmatpush3.bf16.msra.mxu0 %v3374_v47 }
 0x4e3   : > { %6937 = vmatprep.mubr.msk.bf16.mxu1 %vm7730_vm2, %v7729_v63  ;;  %6943 = vmatprep.mubr.msk.bf16.mxu0 %vm7730_vm2, %v7729_v63 }
 0x4e4   : > { %v7493_v57 = vpop.eup %7492  ;;  %6947 = vmatprep.subr.bf16.mxu1 %v7729_v63  ;;  %6953 = vmatprep.subr.bf16.mxu0 %v7729_v63 }
 0x4e5   : > { %v2768_v32 = vmul.f32 %v7493_v57, %v8394_v62 }
 0x4e7   : > { %v2812_v37 = vpack.c.bf16 %v2768_v32, %v2768_v32 }
 0x4e9   : > { %6938 = vmatmul.mubr.msk.bf16.vlgmr.msra.gmra.mrb[56].mxu1 %vm2596_vm5, %v2812_v37  ;;  %6944 = vmatmul.mubr.msk.bf16.vlgmr.msra.gmra.mrb[64].mxu0 %vm2596_vm5, %v2813_v31 }
 0x4ea   : > { %6948 = vmatpush3.bf16.msra.mxu1 %v3420_v38  ;;  %6955 = vmatprep.mubr.msk.bf16.mxu0 %vm7730_vm2, %v7729_v63  ;;  %v7196_v38 = vld [vmem:[%s7882_s29] ss:$8 sps:$4 sm:$0xff]  }
 0x4eb   : > { %6949 = vmatprep.mubr.msk.bf16.mxu1 %vm7730_vm2, %v7729_v63  ;;  %6959 = vmatprep.subr.bf16.mxu1 %v7729_v63 }
 0x507   : > { %v2737_v50 = vpop.xlane.xlu1 %2736 }
 0x508   : > { %7494 = vrcp.f32 %v2737_v50  ;;  %v7198_v50 = vld [vmem:[%s7882_s29 + $0x4] ss:$8 sps:$4 sm:$0xff]  }
 0x50b   : > { %v2800_v54 = vpop.permute.xlu1 %2799 }
 0x50c   : > { %v3512_v28 = vsel %vm2820_vm4, %v2800_v54, 0  ;;  %v7202_v54 = vld [vmem:[%s7882_s29 + $0x20] ss:$8 sps:$4 sm:$0xff]  }
 0x50e   : > { %v2734_v62 = vpop.xlane.xlu0 %2733 }
 0x50f   : > { %7496 = vrcp.f32 %v2734_v62 }
 0x512   : > { %v7495_v39 = vpop.eup %7494  ;;  %v2740_v45 = vpop.xlane.xlu0 %2739 }
 0x513   : > { %7498 = vrcp.f32 %v2740_v45  ;;  %v2771_v40 = vmul.f32 %v7495_v39, %v8424_v20  ;;  %v7201_v45 = vld [vmem:[%s7882_s29 + $0x14] ss:$8 sps:$4 sm:$0xff]  }
 0x515   : > { %v2815_v59 = vpack.c.bf16 %v2771_v40, %v2771_v40 }
 0x516   : > { %v2798_v46 = vpop.permute.xlu0 %2797 }
 0x517   : > { %v3466_v36 = vsel %vm2820_vm4, %v2798_v46, 0 }
 0x518   : > { %6954 = vmatpush3.bf16.msra.mxu0 %v3466_v36 }
 0x519   : > { %v7497_v51 = vpop.eup %7496  ;;  %3822 = vmatprep.subr.bf16.mxu0 %v7198_v50 }
 0x51a   : > { %v2770_v48 = vmul.f32 %v7497_v51, %v8428_v25 }
 0x51b   : > { %6956 = vmatmul.mubr.msk.bf16.vlgmr.msra.gmra.mrb[68].mxu0 %vm2596_vm5, %v2815_v59  ;;  %v7199_v59 = vld [vmem:[%s7882_s29 + $0x10] ss:$8 sps:$4 sm:$0xff]  }
 0x51c   : > { %v2814_v55 = vpack.c.bf16 %v2770_v48, %v2770_v48  ;;  %3823 = vmatpush1.bf16.msra.mxu0 %v7196_v38  ;;  %v7204_v48 = vld [vmem:[%s7882_s29 + $0x24] ss:$8 sps:$4 sm:$0xff]  }
 0x51d   : > { %v7499_v58 = vpop.eup %7498  ;;  %3824 = vmatprep.subr.bf16.mxu0 %v7201_v45 }
 0x51e   : > { %6950 = vmatmul.mubr.msk.bf16.vlgmr.msra.gmra.mrb[60].mxu1 %vm2596_vm5, %v2814_v55  ;;  %v2772_v20 = vmul.f32 %v7499_v58, %v8432_v19 }
 0x51f   : > { %v8518_v42 = vpop.f32.mrb[40].mxu0  ;;  %6960 = vmatpush3.bf16.msra.mxu1 %v3512_v28  ;;  %6961 = vmatprep.mubr.msk.bf16.mxu1 %vm7730_vm2, %v7729_v63  ;;  %v7207_v28 = vld [vmem:[%s7882_s29 + $0x34] ss:$8 sps:$4 sm:$0xff]  }
 0x520   : > { %v6873_v60 = vpop.f32.mrb[41].mxu0  ;;  %v2816_v22 = vpack.c.bf16 %v2772_v20, %v2772_v20  ;;  %3825 = vmatpush1.bf16.msra.mxu0 %v7199_v59 }
 0x521   : > { %v2861_v4 = vpop.f32.mrb[42].mxu0  ;;  %3826 = vmatprep.subr.bf16.mxu0 %v7204_v48 }
 0x522   : > { %v6874_v25 = vpop.f32.mrb[43].mxu0 }
 0x524   : > { %3827 = vmatpush1.bf16.msra.mxu0 %v7202_v54 }
 0x525   : > { %3828 = vmatprep.subr.bf16.mxu0 %v7207_v28 }
 0x526   : > { %6962 = vmatmul.mubr.msk.bf16.vlgmr.msra.gmra.mrb[64].mxu1 %vm2596_vm5, %v2816_v22 }
 0x52a   : > { %v8524_v43 = vpop.f32.mrb[36].mxu1 }
 0x52b   : > { %v6879_v53 = vpop.f32.mrb[37].mxu1 }
 0x52c   : > { %v2907_v49 = vpop.f32.mrb[38].mxu1 }
 0x52d   : > { %v6880_v56 = vpop.f32.mrb[39].mxu1 }
 0x52e   : > { %v7205_v56 = vld [vmem:[%s7882_s29 + $0x30] ss:$8 sps:$4 sm:$0xff]  }
 0x52f   : > { %3829 = vmatpush1.bf16.msra.mxu0 %v7205_v56 }
 0x590   : > { %v2950_v61 = vpop.f32.mrb[44].mxu0 }
 0x591   : > { %v6885_v10 = vpop.f32.mrb[45].mxu0 }
 0x592   : > { %v2953_v6 = vpop.f32.mrb[46].mxu0  ;;  %v7208_v10 = vld [vmem:[%s7882_s29 + $0x40] ss:$8 sps:$4 sm:$0xff]  }
 0x593   : > { %v6886_v5 = vpop.f32.mrb[47].mxu0  ;;  %v7213_v6 = vld [vmem:[%s7882_s29 + $0x54] ss:$8 sps:$4 sm:$0xff]  }
 0x594   : > { %v7211_v5 = vld [vmem:[%s7882_s29 + $0x50] ss:$8 sps:$4 sm:$0xff]  }
 0x598   : > { %v2996_v8 = vpop.f32.mrb[40].mxu1  ;;  %v3042_v30 = vpop.f32.mrb[48].mxu0 }
 0x599   : > { %v7022_v63 = vpack.i.bf16 %v2996_v8, %v2950_v61  ;;  %v6891_v9 = vpop.f32.mrb[41].mxu1  ;;  %v6897_v19 = vpop.f32.mrb[49].mxu0  ;;  %v7210_v61 = vld [vmem:[%s7882_s29 + $0x44] ss:$8 sps:$4 sm:$0xff]  }
 0x59a   : > { %v2999_v16 = vpop.f32.mrb[42].mxu1  ;;  %v3045_v12 = vpop.f32.mrb[50].mxu0  ;;  %3830 = vmatprep.subr.bf16.mxu0 %v7210_v61  ;;  %v7216_v8 = vld [vmem:[%s7882_s29 + $0x64] ss:$8 sps:$4 sm:$0xff]   ;;  %v7217_v9 = vld [vmem:[%s7882_s29 + $0x70] ss:$8 sps:$4 sm:$0xff]  }
 0x59b   : > { %v6892_v52 = vpop.f32.mrb[43].mxu1  ;;  %7023 = vrot.lane.b32.xlu1 %v7022_v63, %s7733_s25  ;;  %v6898_v24 = vpop.f32.mrb[51].mxu0  ;;  %3831 = vmatpush1.bf16.msra.mxu0 %v7208_v10  ;;  %v7219_v63 = vld [vmem:[%s7882_s29 + $0x74] ss:$8 sps:$4 sm:$0xff]   ;;  %v7222_v19 = vld [vmem:[%s7882_s29 + $0x84] ss:$8 sps:$4 sm:$0xff]  }
 0x59c   : > { %3832 = vmatprep.subr.bf16.mxu0 %v7213_v6  ;;  %v7220_v16 = vld [vmem:[%s7882_s29 + $0x80] ss:$8 sps:$4 sm:$0xff]   ;;  %v7225_v12 = vld [vmem:[%s7882_s29 + $0x94] ss:$8 sps:$4 sm:$0xff]   ;;  %v7223_v52 = vld [vmem:[%s7882_s29 + $0x90] ss:$8 sps:$4 sm:$0xff]  }
 0x59d   : > { %v7228_v24 = vld [vmem:[%s7882_s29 + $0xa4] ss:$8 sps:$4 sm:$0xff]  }
 0x59f   : > { %3833 = vmatpush1.bf16.msra.mxu0 %v7211_v5 }
 0x5a0   : > { %v3088_v14 = vpop.f32.mrb[44].mxu1  ;;  %3834 = vmatprep.subr.bf16.mxu0 %v7216_v8 }
 0x5a1   : > { %v7027_v34 = vpack.i.bf16 %v3088_v14, %v3042_v30  ;;  %v6903_v15 = vpop.f32.mrb[45].mxu1  ;;  %v7214_v30 = vld [vmem:[%s7882_s29 + $0x60] ss:$8 sps:$4 sm:$0xff]  }
 0x5a2   : > { %v3091_v17 = vpop.f32.mrb[46].mxu1  ;;  %v7226_v14 = vld [vmem:[%s7882_s29 + $0xa0] ss:$8 sps:$4 sm:$0xff]   ;;  %v7229_v15 = vld [vmem:[%s7882_s29 + $0xb0] ss:$8 sps:$4 sm:$0xff]  }
 0x5a3   : > { %v6904_v23 = vpop.f32.mrb[47].mxu1  ;;  %7028 = vrot.lane.b32.xlu1 %v7027_v34, %s7732_s30  ;;  %3835 = vmatpush1.bf16.msra.mxu0 %v7214_v30  ;;  %v7231_v34 = vld [vmem:[%s7882_s29 + $0xb4] ss:$8 sps:$4 sm:$0xff]   ;;  %v7234_v17 = vld [vmem:[%s7882_s29 + $0xc4] ss:$8 sps:$4 sm:$0xff]  }
 0x5a4   : > { %v3134_v44 = vpop.f32.mrb[52].mxu0  ;;  %3836 = vmatprep.subr.bf16.mxu0 %v7219_v63  ;;  %v7232_v23 = vld [vmem:[%s7882_s29 + $0xc0] ss:$8 sps:$4 sm:$0xff]  }
 0x5a5   : > { %v6909_v7 = vpop.f32.mrb[53].mxu0 }
 0x5a6   : > { %v3137_v13 = vpop.f32.mrb[54].mxu0  ;;  %v7237_v7 = vld [vmem:[%s7882_s29 + $0xd4] ss:$8 sps:$4 sm:$0xff]  }
 0x5a7   : > { %v6910_v18 = vpop.f32.mrb[55].mxu0  ;;  %3837 = vmatpush1.bf16.msra.mxu0 %v7217_v9  ;;  %v7240_v13 = vld [vmem:[%s7882_s29 + $0xe4] ss:$8 sps:$4 sm:$0xff]  }
 0x5a8   : > { %3838 = vmatprep.subr.bf16.mxu0 %v7222_v19  ;;  %v7238_v18 = vld [vmem:[%s7882_s29 + $0xe0] ss:$8 sps:$4 sm:$0xff]  }
 0x5ab   : > { %3839 = vmatpush1.bf16.msra.mxu0 %v7220_v16 }
 0x5ac   : > { %v3180_v21 = vpop.f32.mrb[48].mxu1  ;;  %v8528_v0 = vpop.f32.mrb[56].mxu0  ;;  %3840 = vmatprep.subr.bf16.mxu0 %v7225_v12 }
 0x5ad   : > { %v7047_v33 = vpack.i.bf16 %v3180_v21, %v3134_v44  ;;  %v6915_v47 = vpop.f32.mrb[49].mxu1  ;;  %v6921_v29 = vpop.f32.mrb[57].mxu0  ;;  %v7235_v44 = vld [vmem:[%s7882_s29 + $0xd0] ss:$8 sps:$4 sm:$0xff]  }
 0x5ae   : > { %v3183_v11 = vpop.f32.mrb[50].mxu1  ;;  %v3229_v57 = vpop.f32.mrb[58].mxu0  ;;  %v7243_v47 = vld [vmem:[%s7882_s29 + $0xf4] ss:$8 sps:$4 sm:$0xff]  }
 0x5af   : > { %v6916_v32 = vpop.f32.mrb[51].mxu1  ;;  %7048 = vrot.lane.b32.xlu1 %v7047_v33, %s7731_s18  ;;  %v6922_v35 = vpop.f32.mrb[59].mxu0  ;;  %3841 = vmatpush1.bf16.msra.mxu0 %v7223_v52  ;;  %v7241_v11 = vld [vmem:[%s7882_s29 + $0xf0] ss:$8 sps:$4 sm:$0xff]  }
 0x5b0   : > { %3842 = vmatprep.subr.bf16.mxu0 %v7228_v24 }
 0x5b3   : > { %3843 = vmatpush1.bf16.msra.mxu0 %v7226_v14 }
 0x5b4   : > { %v8531_v37 = vpop.f32.mrb[52].mxu1  ;;  %v3318_v31 = vpop.f32.mrb[60].mxu0  ;;  %3844 = vmatprep.subr.bf16.mxu0 %v7231_v34  ;;  %v7247_v34 = vld [vmem:[%s7911_s15 + $0x8] ss:$16 sps:$4 sm:$0xff]  }
 0x5b5   : > { %v6927_v62 = vpop.f32.mrb[53].mxu1  ;;  %v6933_v39 = vpop.f32.mrb[61].mxu0 }
 0x5b6   : > { %v3275_v40 = vpop.f32.mrb[54].mxu1  ;;  %v3321_v46 = vpop.f32.mrb[62].mxu0 }
 0x5b7   : > { %v6928_v36 = vpop.f32.mrb[55].mxu1  ;;  %v6934_v51 = vpop.f32.mrb[63].mxu0  ;;  %3845 = vmatpush1.bf16.msra.mxu0 %v7229_v15  ;;  %v7249_v15 = vld [vmem:[%s7911_s15 + $0xc] ss:$16 sps:$4 sm:$0xff]  }
 0x5b8   : > { %3846 = vmatprep.subr.bf16.mxu0 %v7234_v17  ;;  %v7252_v17 = vld [vmem:[%s7911_s15 + $0x24] ss:$16 sps:$4 sm:$0xff]  }
 0x5bb   : > { %3847 = vmatpush1.bf16.msra.mxu0 %v7232_v23  ;;  %v7255_v23 = vld [vmem:[%s7911_s15 + $0x2c] ss:$16 sps:$4 sm:$0xff]  }
 0x5bc   : > { %v3364_v55 = vpop.f32.mrb[56].mxu1  ;;  %v8539_v58 = vpop.f32.mrb[64].mxu0  ;;  %3848 = vmatprep.subr.bf16.mxu0 %v7237_v7  ;;  %v7253_v7 = vld [vmem:[%s7911_s15 + $0x28] ss:$16 sps:$4 sm:$0xff]  }
 0x5bd   : > { %v7032_v20 = vpack.i.bf16 %v3364_v55, %v3318_v31  ;;  %v6939_v60 = vpop.f32.mrb[57].mxu1  ;;  %v6945_v4 = vpop.f32.mrb[65].mxu0 }
 0x5be   : > { %v3367_v25 = vpop.f32.mrb[58].mxu1  ;;  %v3413_v22 = vpop.f32.mrb[66].mxu0 }
 0x5bf   : > { %v6940_v53 = vpop.f32.mrb[59].mxu1  ;;  %7033 = vrot.lane.b32.xlu0 %v7032_v20, %s7733_s25  ;;  %v6946_v49 = vpop.f32.mrb[67].mxu0  ;;  %3849 = vmatpush1.bf16.msra.mxu0 %v7235_v44  ;;  %v7250_v44 = vld [vmem:[%s7911_s15 + $0x20] ss:$16 sps:$4 sm:$0xff]  }
 0x5c0   : > { %3850 = vmatprep.subr.bf16.mxu0 %v7240_v13  ;;  %v7258_v13 = vld [vmem:[%s7911_s15 + $0x44] ss:$16 sps:$4 sm:$0xff]  }
 0x5c3   : > { %3851 = vmatpush1.bf16.msra.mxu0 %v7238_v18  ;;  %v7261_v18 = vld [vmem:[%s7911_s15 + $0x4c] ss:$16 sps:$4 sm:$0xff]  }
 0x5c4   : > { %3852 = vmatprep.subr.bf16.mxu0 %v7243_v47  ;;  %v7264_v47 = vld [vmem:[%s7911_s15 + $0x64] ss:$16 sps:$4 sm:$0xff]  }
 0x5c7   : > { %3853 = vmatpush1.bf16.msra.mxu0 %v7241_v11  ;;  %v7262_v11 = vld [vmem:[%s7911_s15 + $0x60] ss:$16 sps:$4 sm:$0xff]  }
 0x5c8   : > { %4391 = vmatprep.subr.bf16.mxu0 %v7249_v15  ;;  %v7292_v15 = vld [vmem:[%s7911_s15 + $0x100] ss:$16 sps:$4 sm:$0xff]  }
 0x5ee   : > { %v3502_v21 = vpop.f32.mrb[68].mxu0 }
 0x5ef   : > { %v6957_v33 = vpop.f32.mrb[69].mxu0 }
 0x5f0   : > { %v3505_v29 = vpop.f32.mrb[70].mxu0  ;;  %v7259_v33 = vld [vmem:[%s7911_s15 + $0x48] ss:$16 sps:$4 sm:$0xff]  }
 0x5f1   : > { %v3456_v57 = vpop.f32.mrb[60].mxu1  ;;  %v6958_v32 = vpop.f32.mrb[71].mxu0  ;;  %v7267_v29 = vld [vmem:[%s7911_s15 + $0x6c] ss:$16 sps:$4 sm:$0xff]  }
 0x5f2   : > { %v7037_v35 = vpack.i.bf16 %v3456_v57, %v8539_v58  ;;  %v6951_v31 = vpop.f32.mrb[61].mxu1  ;;  %v7265_v57 = vld [vmem:[%s7911_s15 + $0x68] ss:$16 sps:$4 sm:$0xff]   ;;  %v7270_v32 = vld [vmem:[%s7911_s15 + $0x84] ss:$16 sps:$4 sm:$0xff]  }
 0x5f3   : > { %v3459_v38 = vpop.f32.mrb[62].mxu1  ;;  %v7268_v31 = vld [vmem:[%s7911_s15 + $0x80] ss:$16 sps:$4 sm:$0xff]  }
 0x5f4   : > { %v6952_v50 = vpop.f32.mrb[63].mxu1  ;;  %7038 = vrot.lane.b32.xlu0 %v7037_v35, %s7732_s30  ;;  %v7273_v35 = vld [vmem:[%s7911_s15 + $0x8c] ss:$16 sps:$4 sm:$0xff]   ;;  %v7271_v38 = vld [vmem:[%s7911_s15 + $0x88] ss:$16 sps:$4 sm:$0xff]  }
 0x5f5   : > { %v7276_v50 = vld [vmem:[%s7911_s15 + $0xa4] ss:$16 sps:$4 sm:$0xff]  }
 0x5f9   : > { %v3548_v62 = vpop.f32.mrb[64].mxu1 }
 0x5fa   : > { %v7042_v39 = vpack.i.bf16 %v3548_v62, %v3502_v21  ;;  %v6963_v45 = vpop.f32.mrb[65].mxu1  ;;  %v7256_v21 = vld [vmem:[%s7911_s15 + $0x40] ss:$16 sps:$4 sm:$0xff]   ;;  %v7279_v62 = vld [vmem:[%s7911_s15 + $0xac] ss:$16 sps:$4 sm:$0xff]  }
 0x5fb   : > { %v3551_v40 = vpop.f32.mrb[66].mxu1  ;;  %v7277_v45 = vld [vmem:[%s7911_s15 + $0xa8] ss:$16 sps:$4 sm:$0xff]  }
 0x5fc   : > { %v6964_v46 = vpop.f32.mrb[67].mxu1  ;;  %7043 = vrot.lane.b32.xlu0 %v7042_v39, %s7731_s18  ;;  %v7274_v39 = vld [vmem:[%s7911_s15 + $0xa0] ss:$16 sps:$4 sm:$0xff]   ;;  %v7282_v40 = vld [vmem:[%s7911_s15 + $0xc4] ss:$16 sps:$4 sm:$0xff]  }
 0x5fd   : > { %v7285_v46 = vld [vmem:[%s7911_s15 + $0xcc] ss:$16 sps:$4 sm:$0xff]  }
 0x60d   : > { %v7024_v36 = vpop.permute.xlu1 %7023 }
 0x60e   : > { %v7026_v59 = vunpack.i.h.bf16 %v7024_v36  ;;  %v7025_v48 = vunpack.i.l.bf16 %v7024_v36  ;;  %v7280_v36 = vld [vmem:[%s7911_s15 + $0xc0] ss:$16 sps:$4 sm:$0xff]  }
 0x610   : > { %v3603_v28 = vsel %vm1803_vm3, %v8524_v43, %v7026_v59  ;;  %v3602_v20 = vsel %vm1803_vm3, %v8518_v42, %v7025_v48  ;;  %v3650_v59 = vld [vmem:[%s897_s28] sm:$0x3] }
 0x611   : > { %v3655_v48 = vrot.slane %v3650_v59, %v8067_v2 }
 0x615   : > { %v7029_v51 = vpop.permute.xlu1 %7028 }
 0x616   : > { %v7031_v54 = vunpack.i.h.bf16 %v7029_v51  ;;  %v7030_v55 = vunpack.i.l.bf16 %v7029_v51  ;;  %v7283_v51 = vld [vmem:[%s7911_s15 + $0xc8] ss:$16 sps:$4 sm:$0xff]  }
 0x618   : > { %v3606_v25 = vsel %vm3604_vm6, %v3603_v28, %v7031_v54  ;;  %v3605_v22 = vsel %vm3604_vm6, %v3602_v20, %v7030_v55  ;;  %v3659_v54 = vrot.slane %v3650_v59, %v8091_v26  ;;  %v7331_v59 = vld [vmem:[%s7911_s15 + $0x1c8] ss:$16 sps:$4 sm:$0xff]  }
 0x621   : > { %v7049_v58 = vpop.permute.xlu1 %7048 }
 0x622   : > { %v7051_v60 = vunpack.i.h.bf16 %v7049_v58  ;;  %v7050_v4 = vunpack.i.l.bf16 %v7049_v58 }
 0x624   : > { %v3609_v53 = vsel %vm3607_vm7, %v3606_v25, %v7051_v60  ;;  %v3608_v49 = vsel %vm3607_vm7, %v3605_v22, %v7050_v4  ;;  %v7508_v4 = vld [vmem:[#allocation2] sm:$0xff] }
 0x625   : > { %v3616_v56 = vpack.c.bf16 %v3609_v53, %v3608_v49  ;;  %v7509_v49 = vld [vmem:[#allocation2 + $0x8] sm:$0xff] }
 0x631   : > { %v7034_v61 = vpop.permute.xlu0 %7033 }
 0x632   : > { %v7036_v6 = vunpack.i.h.bf16 %v7034_v61  ;;  %v7035_v5 = vunpack.i.l.bf16 %v7034_v61 }
 0x634   : > { %v3611_v30 = vsel %vm1803_vm3, %v8531_v37, %v7036_v6  ;;  %v3610_v63 = vsel %vm1803_vm3, %v8528_v0, %v7035_v5  ;;  %v7244_v37 = vld [vmem:[%s7911_s15] ss:$16 sps:$4 sm:$0xff]   ;;  %v7246_v0 = vld [vmem:[%s7911_s15 + $0x4] ss:$16 sps:$4 sm:$0xff]   ;;  %v7511_v5 = vld [vmem:[#allocation2 + $0x18] sm:$0xff] }
 0x635   : > { %4348 = vmatprep.subr.bf16.mxu1 %v7246_v0  ;;  %v7294_v0 = vld [vmem:[%s7911_s15 + $0x104] ss:$16 sps:$4 sm:$0xff]  }
 0x636   : > { %4349 = vmatpush1.bf16.msra.mxu1 %v7244_v37  ;;  %v7289_v37 = vld [vmem:[%s7911_s15 + $0xe8] ss:$16 sps:$4 sm:$0xff]  }
 0x637   : > { %4350 = vmatprep.subr.bf16.mxu1 %v7252_v17  ;;  %v7295_v17 = vld [vmem:[%s7911_s15 + $0x108] ss:$16 sps:$4 sm:$0xff]  }
 0x63a   : > { %4351 = vmatpush1.bf16.msra.mxu1 %v7250_v44  ;;  %v7303_v44 = vld [vmem:[%s7911_s15 + $0x12c] ss:$16 sps:$4 sm:$0xff]  }
 0x63b   : > { %4352 = vmatprep.subr.bf16.mxu1 %v7258_v13  ;;  %v7301_v13 = vld [vmem:[%s7911_s15 + $0x128] ss:$16 sps:$4 sm:$0xff]  }
 0x63e   : > { %4353 = vmatpush1.bf16.msra.mxu1 %v7256_v21  ;;  %v7309_v21 = vld [vmem:[%s7911_s15 + $0x14c] ss:$16 sps:$4 sm:$0xff]  }
 0x63f   : > { %4354 = vmatprep.subr.bf16.mxu1 %v7264_v47  ;;  %v7307_v47 = vld [vmem:[%s7911_s15 + $0x148] ss:$16 sps:$4 sm:$0xff]  }
 0x642   : > { %4355 = vmatpush1.bf16.msra.mxu1 %v7262_v11  ;;  %v7312_v11 = vld [vmem:[%s7911_s15 + $0x164] ss:$16 sps:$4 sm:$0xff]  }
 0x643   : > { %4356 = vmatprep.subr.bf16.mxu1 %v7270_v32  ;;  %v7315_v32 = vld [vmem:[%s7911_s15 + $0x16c] ss:$16 sps:$4 sm:$0xff]  }
 0x646   : > { %4357 = vmatpush1.bf16.msra.mxu1 %v7268_v31  ;;  %v7321_v31 = vld [vmem:[%s7911_s15 + $0x18c] ss:$16 sps:$4 sm:$0xff]  }
 0x647   : > { %4358 = vmatprep.subr.bf16.mxu1 %v7276_v50  ;;  %v7319_v50 = vld [vmem:[%s7911_s15 + $0x188] ss:$16 sps:$4 sm:$0xff]  }
 0x64a   : > { %4359 = vmatpush1.bf16.msra.mxu1 %v7274_v39  ;;  %v7327_v39 = vld [vmem:[%s7911_s15 + $0x1ac] ss:$16 sps:$4 sm:$0xff]  }
 0x64b   : > { %4360 = vmatprep.subr.bf16.mxu1 %v7282_v40  ;;  %v7325_v40 = vld [vmem:[%s7911_s15 + $0x1a8] ss:$16 sps:$4 sm:$0xff]  }
 0x64e   : > { %4361 = vmatpush1.bf16.msra.mxu1 %v7280_v36  ;;  %v7333_v36 = vld [vmem:[%s7911_s15 + $0x1cc] ss:$16 sps:$4 sm:$0xff]  }
 0x666   : > { %v7039_v10 = vpop.permute.xlu0 %7038 }
 0x667   : > { %v7041_v43 = vunpack.i.h.bf16 %v7039_v10  ;;  %v7040_v42 = vunpack.i.l.bf16 %v7039_v10  ;;  %v7510_v10 = vld [vmem:[#allocation2 + $0x10] sm:$0xff] }
 0x669   : > { %v3613_v16 = vsel %vm3604_vm6, %v3611_v30, %v7041_v43  ;;  %v3612_v12 = vsel %vm3604_vm6, %v3610_v63, %v7040_v42 }
 0x66e   : > { %v7044_v8 = vpop.permute.xlu0 %7043 }
 0x66f   : > { %v7046_v9 = vunpack.i.h.bf16 %v7044_v8  ;;  %v7045_v19 = vunpack.i.l.bf16 %v7044_v8 }
 0x671   : > { %v3614_v52 = vsel %vm3607_vm7, %v3612_v12, %v7045_v19  ;;  %v3615_v24 = vsel %vm3607_vm7, %v3613_v16, %v7046_v9 }
 0x672   : > { %v3617_v14 = vpack.c.bf16 %v3615_v24, %v3614_v52  ;;  %v7288_v52 = vld [vmem:[%s7911_s15 + $0xe4] ss:$16 sps:$4 sm:$0xff]   ;;  %v7291_v24 = vld [vmem:[%s7911_s15 + $0xec] ss:$16 sps:$4 sm:$0xff]  }
 0x673   : > { %4362 = vmatprep.subr.bf16.mxu1 %v7288_v52 }
 0x674   : > { %3854 = vmatprep.mubr.bf16.mxu0 %v3617_v14  ;;  %v7286_v14 = vld [vmem:[%s7911_s15 + $0xe0] ss:$16 sps:$4 sm:$0xff]  }
 0x675   : > { %3855 = vmatmul.mubr.bf16.vlgmr.msra.gmra.mrb[72].mxu0 %v3616_v56  ;;  %4363 = vmatpush1.bf16.msra.mxu1 %v7286_v14 }
 0x676   : > { %4392 = vmatpush1.bf16.msra.mxu0 %v7247_v34  ;;  %v7297_v34 = vld [vmem:[%s7911_s15 + $0x10c] ss:$16 sps:$4 sm:$0xff]   ;;  %4364 = vmatprep.subr.bf16.mxu1 %v7294_v0 }
 0x677   : > { %4393 = vmatprep.subr.bf16.mxu0 %v7255_v23  ;;  %v7300_v23 = vld [vmem:[%s7911_s15 + $0x124] ss:$16 sps:$4 sm:$0xff]  }
 0x679   : > { %4365 = vmatpush1.bf16.msra.mxu1 %v7292_v15 }
 0x67a   : > { %4394 = vmatpush1.bf16.msra.mxu0 %v7253_v7  ;;  %v7298_v7 = vld [vmem:[%s7911_s15 + $0x120] ss:$16 sps:$4 sm:$0xff]   ;;  %4366 = vmatprep.subr.bf16.mxu1 %v7300_v23 }
 0x67b   : > { %4395 = vmatprep.subr.bf16.mxu0 %v7261_v18  ;;  %v7306_v18 = vld [vmem:[%s7911_s15 + $0x144] ss:$16 sps:$4 sm:$0xff]  }
 0x67d   : > { %4367 = vmatpush1.bf16.msra.mxu1 %v7298_v7 }
 0x67e   : > { %4396 = vmatpush1.bf16.msra.mxu0 %v7259_v33  ;;  %v7304_v33 = vld [vmem:[%s7911_s15 + $0x140] ss:$16 sps:$4 sm:$0xff]   ;;  %4368 = vmatprep.subr.bf16.mxu1 %v7306_v18 }
 0x67f   : > { %4397 = vmatprep.subr.bf16.mxu0 %v7267_v29  ;;  %v7310_v29 = vld [vmem:[%s7911_s15 + $0x160] ss:$16 sps:$4 sm:$0xff]  }
 0x681   : > { %4369 = vmatpush1.bf16.msra.mxu1 %v7304_v33 }
 0x682   : > { %4398 = vmatpush1.bf16.msra.mxu0 %v7265_v57  ;;  %v7313_v57 = vld [vmem:[%s7911_s15 + $0x168] ss:$16 sps:$4 sm:$0xff]   ;;  %4370 = vmatprep.subr.bf16.mxu1 %v7312_v11 }
 0x683   : > { %4399 = vmatprep.subr.bf16.mxu0 %v7273_v35  ;;  %v7318_v35 = vld [vmem:[%s7911_s15 + $0x184] ss:$16 sps:$4 sm:$0xff]  }
 0x685   : > { %4371 = vmatpush1.bf16.msra.mxu1 %v7310_v29 }
 0x686   : > { %4400 = vmatpush1.bf16.msra.mxu0 %v7271_v38  ;;  %v7316_v38 = vld [vmem:[%s7911_s15 + $0x180] ss:$16 sps:$4 sm:$0xff]   ;;  %4372 = vmatprep.subr.bf16.mxu1 %v7318_v35 }
 0x687   : > { %4401 = vmatprep.subr.bf16.mxu0 %v7279_v62  ;;  %v7324_v62 = vld [vmem:[%s7911_s15 + $0x1a4] ss:$16 sps:$4 sm:$0xff]  }
 0x689   : > { %4373 = vmatpush1.bf16.msra.mxu1 %v7316_v38  ;;  %v7345_v38 = vld [vmem:[%s7921_s3 + $0x14] ss:$8 sps:$4 sm:$0xff]  }
 0x68a   : > { %4402 = vmatpush1.bf16.msra.mxu0 %v7277_v45  ;;  %v7322_v45 = vld [vmem:[%s7911_s15 + $0x1a0] ss:$16 sps:$4 sm:$0xff]   ;;  %4374 = vmatprep.subr.bf16.mxu1 %v7324_v62  ;;  %v7348_v62 = vld [vmem:[%s7921_s3 + $0x24] ss:$8 sps:$4 sm:$0xff]  }
 0x68b   : > { %4403 = vmatprep.subr.bf16.mxu0 %v7285_v46  ;;  %v7330_v46 = vld [vmem:[%s7911_s15 + $0x1c4] ss:$16 sps:$4 sm:$0xff]  }
 0x68d   : > { %4375 = vmatpush1.bf16.msra.mxu1 %v7322_v45  ;;  %v7351_v45 = vld [vmem:[%s7921_s3 + $0x34] ss:$8 sps:$4 sm:$0xff]  }
 0x68e   : > { %4404 = vmatpush1.bf16.msra.mxu0 %v7283_v51  ;;  %v7328_v51 = vld [vmem:[%s7911_s15 + $0x1c0] ss:$16 sps:$4 sm:$0xff]   ;;  %4376 = vmatprep.subr.bf16.mxu1 %v7330_v46  ;;  %v7354_v46 = vld [vmem:[%s7921_s3 + $0x44] ss:$8 sps:$4 sm:$0xff]  }
 0x68f   : > { %4405 = vmatprep.subr.bf16.mxu0 %v7291_v24 }
 0x691   : > { %4377 = vmatpush1.bf16.msra.mxu1 %v7328_v51  ;;  %v7357_v51 = vld [vmem:[%s7921_s3 + $0x54] ss:$8 sps:$4 sm:$0xff]  }
 0x692   : > { %4406 = vmatpush1.bf16.msra.mxu0 %v7289_v37  ;;  %v3870_v37 = vld [vmem:[%s9287_s22] sm:$0x3] }
 0x693   : > { %4407 = vmatprep.subr.bf16.mxu0 %v7297_v34  ;;  %v3933_v7 = vrot.slane %v3870_v37, %v8091_v26 }
 0x696   : > { %4408 = vmatpush1.bf16.msra.mxu0 %v7295_v17 }
 0x697   : > { %4409 = vmatprep.subr.bf16.mxu0 %v7303_v44 }
 0x69a   : > { %4410 = vmatpush1.bf16.msra.mxu0 %v7301_v13 }
 0x69b   : > { %4411 = vmatprep.subr.bf16.mxu0 %v7309_v21 }
 0x69e   : > { %4412 = vmatpush1.bf16.msra.mxu0 %v7307_v47 }
 0x69f   : > { %4413 = vmatprep.subr.bf16.mxu0 %v7315_v32 }
 0x6a2   : > { %4414 = vmatpush1.bf16.msra.mxu0 %v7313_v57 }
 0x6a3   : > { %4415 = vmatprep.subr.bf16.mxu0 %v7321_v31  ;;  %v7340_v31 = vld [vmem:[%s7921_s3] ss:$8 sps:$4 sm:$0xff]  }
 0x6a6   : > { %4416 = vmatpush1.bf16.msra.mxu0 %v7319_v50  ;;  %v7343_v50 = vld [vmem:[%s7921_s3 + $0x10] ss:$8 sps:$4 sm:$0xff]  }
 0x6a7   : > { %4417 = vmatprep.subr.bf16.mxu0 %v7327_v39  ;;  %v7346_v39 = vld [vmem:[%s7921_s3 + $0x20] ss:$8 sps:$4 sm:$0xff]  }
 0x6aa   : > { %4418 = vmatpush1.bf16.msra.mxu0 %v7325_v40  ;;  %v7349_v40 = vld [vmem:[%s7921_s3 + $0x30] ss:$8 sps:$4 sm:$0xff]  }
 0x6ab   : > { %4419 = vmatprep.subr.bf16.mxu0 %v7333_v36  ;;  %v7352_v36 = vld [vmem:[%s7921_s3 + $0x40] ss:$8 sps:$4 sm:$0xff]  }
 0x6ae   : > { %4420 = vmatpush1.bf16.msra.mxu0 %v7331_v59  ;;  %v7355_v59 = vld [vmem:[%s7921_s3 + $0x50] ss:$8 sps:$4 sm:$0xff]  }
 0x748   : > { %v3856_v55 = vpop.f32.mrb[72].mxu0 }
 0x749   : > { %v3857_v58 = vadd.f32 %v3856_v55, %v3655_v48  ;;  %v3858_v28 = vpop.f32.mrb[73].mxu0  ;;  %v7334_v55 = vld [vmem:[%s7911_s15 + $0x1e0] ss:$16 sps:$4 sm:$0xff]  }
 0x74a   : > { %v3859_v20 = vadd.f32 %v3858_v28, %v3659_v54  ;;  %v3860_v60 = vpop.f32.mrb[74].mxu0  ;;  %v7342_v28 = vld [vmem:[%s7921_s3 + $0x4] ss:$8 sps:$4 sm:$0xff]  }
 0x74b   : > { %v8622_v25 = vadd.f32 %v7508_v4, %v3857_v58  ;;  %v3861_v22 = vadd.f32 %v3860_v60, %v3655_v48  ;;  %v3862_v53 = vpop.f32.mrb[75].mxu0  ;;  %v7336_v48 = vld [vmem:[%s7911_s15 + $0x1e4] ss:$16 sps:$4 sm:$0xff]   ;;  %v7337_v58 = vld [vmem:[%s7911_s15 + $0x1e8] ss:$16 sps:$4 sm:$0xff]  }
 0x74c   : > { %v8624_v56 = vadd.f32 %v7509_v49, %v3859_v20  ;;  %v3863_v61 = vadd.f32 %v3862_v53, %v3659_v54  ;;  %v7339_v54 = vld [vmem:[%s7911_s15 + $0x1ec] ss:$16 sps:$4 sm:$0xff]   ;;  %4378 = vmatprep.subr.bf16.mxu1 %v7336_v48 }
 0x74d   : > { %v8626_v6 = vadd.f32 %v7510_v10, %v3861_v22  ;;  %v3880_v8 = vmul.f32 %v8622_v25, %v8622_v25  ;;  %4421 = vmatprep.subr.bf16.mxu0 %v7339_v54  ;;  %4379 = vmatpush1.bf16.msra.mxu1 %v7334_v55  ;;  %v7360_v48 = vld [vmem:[%s7921_s3 + $0x64] ss:$8 sps:$4 sm:$0xff]   ;;  %v7358_v54 = vld [vmem:[%s7921_s3 + $0x60] ss:$8 sps:$4 sm:$0xff]   ;;  %v7363_v55 = vld [vmem:[%s7921_s3 + $0x74] ss:$8 sps:$4 sm:$0xff]  }
 0x74e   : > { %v8628_v43 = vadd.f32 %v7511_v5, %v3863_v61  ;;  %v3871_v42 = vadd.f32 %v8624_v56, %v8622_v25  ;;  %v3881_v30 = vmul.f32 %v8624_v56, %v8624_v56  ;;  %4422 = vmatpush1.bf16.msra.mxu0 %v7337_v58  ;;  %4842 = vmatprep.subr.bf16.mxu1 %v7342_v28  ;;  %v7361_v58 = vld [vmem:[%s7921_s3 + $0x70] ss:$8 sps:$4 sm:$0xff]   ;;  %v7366_v28 = vld [vmem:[%s7921_s3 + $0x84] ss:$8 sps:$4 sm:$0xff]  }
 0x74f   : > { %v3882_v19 = vmul.f32 %v8626_v6, %v8626_v6 }
 0x750   : > { %3872 = vadd.xlane.f32.xlu0 %v3871_v42  ;;  %v3874_v63 = vadd.f32 %v8628_v43, %v8626_v6  ;;  %v3884_v9 = vadd.f32 %v3881_v30, %v3880_v8  ;;  %v3883_v16 = vmul.f32 %v8628_v43, %v8628_v43 }
 0x752   : > { %3875 = vadd.xlane.f32.xlu1 %v3874_v63  ;;  %v3887_v12 = vadd.f32 %v3883_v16, %v3882_v19 }
 0x754   : > { %3885 = vadd.xlane.f32.xlu0 %v3884_v9 }
 0x758   : > { %3888 = vadd.xlane.f32.xlu0 %v3887_v12  ;;  %v3869_v12 = vld [vmem:[%s9286_s26] sm:$0x3] }
 0x759   : > { %v3914_v34 = vrot.slane %v3869_v12, %v8067_v2  ;;  %v3918_v15 = vrot.slane %v3869_v12, %v8091_v26  ;;  %v4006_v12 = vld [vmem:[%s7916_s2] sm:$0xf] }
 0x7dd   : > { %v3873_v20 = vpop.xlane.xlu0 %3872 }
 0x7de   : > { %v3878_v60 = vmul.f32 0.00390625, %v3873_v20  ;;  %v7364_v20 = vld [vmem:[%s7921_s3 + $0x80] ss:$8 sps:$4 sm:$0xff]  }
 0x7df   : > { %v3876_v4 = vpop.xlane.xlu1 %3875 }
 0x7e0   : > { %v3879_v53 = vmul.f32 0.00390625, %v3876_v4  ;;  %v3892_v49 = vmul.f32 %v3878_v60, %v3878_v60  ;;  %v3898_v52 = vsub.f32 %v8622_v25, %v3878_v60  ;;  %v3899_v24 = vsub.f32 %v8624_v56, %v3878_v60  ;;  %v7369_v60 = vld [vmem:[%s7921_s3 + $0x94] ss:$8 sps:$4 sm:$0xff]   ;;  %v7367_v4 = vld [vmem:[%s7921_s3 + $0x90] ss:$8 sps:$4 sm:$0xff]  }
 0x7e1   : > { %v3886_v22 = vpop.xlane.xlu0 %3885  ;;  %v3929_v56 = vrot.slane %v3870_v37, %v8067_v2  ;;  %v4023_v37 = vrot.slane %v4006_v12, %v8094_v27 }
 0x7e2   : > { %v3890_v61 = vmul.f32 0.00390625, %v3886_v22  ;;  %v3893_v8 = vmul.f32 %v3879_v53, %v3879_v53  ;;  %v3900_v23 = vsub.f32 %v8626_v6, %v3879_v53  ;;  %v3901_v44 = vsub.f32 %v8628_v43, %v3879_v53  ;;  %v7372_v22 = vld [vmem:[%s7921_s3 + $0xa4] ss:$8 sps:$4 sm:$0xff]   ;;  %v7370_v53 = vld [vmem:[%s7921_s3 + $0xa0] ss:$8 sps:$4 sm:$0xff]  }
 0x7e4   : > { %v3894_v10 = vsub.f32 %v3890_v61, %v3892_v49  ;;  %v7375_v49 = vld [vmem:[%s7921_s3 + $0xb4] ss:$8 sps:$4 sm:$0xff]   ;;  %v7373_v61 = vld [vmem:[%s7921_s3 + $0xb0] ss:$8 sps:$4 sm:$0xff]  }
 0x7e5   : > { %v3889_v5 = vpop.xlane.xlu0 %3888 }
 0x7e6   : > { %v3896_v42 = vmax.f32 %v3894_v10, 0.0  ;;  %v3891_v30 = vmul.f32 0.00390625, %v3889_v5  ;;  %v7378_v10 = vld [vmem:[%s7921_s3 + $0xc4] ss:$8 sps:$4 sm:$0xff]   ;;  %v7376_v5 = vld [vmem:[%s7921_s3 + $0xc0] ss:$8 sps:$4 sm:$0xff]  }
 0x7e8   : > { %v3902_v63 = vadd.f32 1e-05, %v3896_v42  ;;  %v3895_v9 = vsub.f32 %v3891_v30, %v3893_v8  ;;  %v7381_v42 = vld [vmem:[%s7921_s3 + $0xd4] ss:$8 sps:$4 sm:$0xff]   ;;  %v7379_v8 = vld [vmem:[%s7921_s3 + $0xd0] ss:$8 sps:$4 sm:$0xff]  }
 0x7e9   : > { %v7384_v30 = vld [vmem:[%s7921_s3 + $0xe4] ss:$8 sps:$4 sm:$0xff]  }
 0x7ea   : > { %7500 = vrsqrt.f32 %v3902_v63  ;;  %v3897_v19 = vmax.f32 %v3895_v9, 0.0  ;;  %v7382_v63 = vld [vmem:[%s7921_s3 + $0xe0] ss:$8 sps:$4 sm:$0xff]   ;;  %v7387_v9 = vld [vmem:[%s7921_s3 + $0xf4] ss:$8 sps:$4 sm:$0xff]  }
 0x7ec   : > { %v3903_v16 = vadd.f32 1e-05, %v3897_v19  ;;  %v7385_v19 = vld [vmem:[%s7921_s3 + $0xf0] ss:$8 sps:$4 sm:$0xff]  }
 0x7ee   : > { %7502 = vrsqrt.f32 %v3903_v16  ;;  %v7390_v16 = vld [vmem:[%s7921_s3 + $0x104] ss:$8 sps:$4 sm:$0xff]  }
 0x7f4   : > { %v7501_v14 = vpop.eup %7500 }
 0x7f5   : > { %v3907_v0 = vmul.f32 %v7501_v14, %v3899_v24  ;;  %v3906_v17 = vmul.f32 %v7501_v14, %v3898_v52  ;;  %v4011_v52 = vrot.slane %v4006_v12, %v8067_v2  ;;  %v4019_v24 = vrot.slane %v4006_v12, %v8070_v3 }
 0x7f6   : > { %v4015_v14 = vrot.slane %v4006_v12, %v8091_v26  ;;  %v7423_v12 = vld [vmem:[%s7921_s3 + $0x1b4] ss:$8 sps:$4 sm:$0xff]  }
 0x7f7   : > { %v3922_v18 = vmul.f32 %v3918_v15, %v3907_v0  ;;  %v3921_v33 = vmul.f32 %v3914_v34, %v3906_v17 }
 0x7f8   : > { %v7503_v25 = vpop.eup %7502 }
 0x7f9   : > { %v3909_v13 = vmul.f32 %v7503_v25, %v3901_v44  ;;  %v3908_v21 = vmul.f32 %v7503_v25, %v3900_v23  ;;  %v8697_v11 = vadd.f32 %v3933_v7, %v3922_v18  ;;  %v8701_v43 = vadd.f32 %v3929_v56, %v3921_v33 }
 0x7fb   : > { %v3924_v47 = vmul.f32 %v3918_v15, %v3909_v13  ;;  %v3923_v29 = vmul.f32 %v3914_v34, %v3908_v21 }
 0x7fd   : > { %v8699_v6 = vadd.f32 %v3933_v7, %v3924_v47  ;;  %v8703_v57 = vadd.f32 %v3929_v56, %v3923_v29 }
 0x7ff   : > { %v3941_v32 = vpack.c.bf16 %v8699_v6, %v8697_v11  ;;  %v3940_v35 = vpack.c.bf16 %v8703_v57, %v8701_v43 }
 0x801   : > { %4380 = vmatprep.mubr.bf16.mxu1 %v3941_v32  ;;  %4423 = vmatprep.mubr.bf16.mxu0 %v3941_v32 }
 0x802   : > { %4381 = vmatmul.mubr.bf16.vlgmr.msra.gmra.mrb[68].mxu1 %v3940_v35  ;;  %4424 = vmatmul.mubr.bf16.vlgmr.msra.gmra.mrb[76].mxu0 %v3940_v35 }
 0x803   : > { %4843 = vmatpush1.bf16.msra.mxu1 %v7340_v31 }
 0x804   : > { %4844 = vmatprep.subr.bf16.mxu1 %v7345_v38 }
 0x807   : > { %4845 = vmatpush1.bf16.msra.mxu1 %v7343_v50 }
 0x808   : > { %4846 = vmatprep.subr.bf16.mxu1 %v7348_v62 }
 0x80b   : > { %4847 = vmatpush1.bf16.msra.mxu1 %v7346_v39 }
 0x80c   : > { %4848 = vmatprep.subr.bf16.mxu1 %v7351_v45 }
 0x80f   : > { %4849 = vmatpush1.bf16.msra.mxu1 %v7349_v40 }
 0x810   : > { %4850 = vmatprep.subr.bf16.mxu1 %v7354_v46 }
 0x813   : > { %4851 = vmatpush1.bf16.msra.mxu1 %v7352_v36 }
 0x814   : > { %4852 = vmatprep.subr.bf16.mxu1 %v7357_v51 }
 0x817   : > { %4853 = vmatpush1.bf16.msra.mxu1 %v7355_v59 }
 0x818   : > { %4854 = vmatprep.subr.bf16.mxu1 %v7360_v48  ;;  %v7388_v48 = vld [vmem:[%s7921_s3 + $0x100] ss:$8 sps:$4 sm:$0xff]  }
 0x81b   : > { %4855 = vmatpush1.bf16.msra.mxu1 %v7358_v54  ;;  %v7393_v54 = vld [vmem:[%s7921_s3 + $0x114] ss:$8 sps:$4 sm:$0xff]  }
 0x81c   : > { %4856 = vmatprep.subr.bf16.mxu1 %v7363_v55  ;;  %v7391_v55 = vld [vmem:[%s7921_s3 + $0x110] ss:$8 sps:$4 sm:$0xff]  }
 0x81f   : > { %4857 = vmatpush1.bf16.msra.mxu1 %v7361_v58  ;;  %v7396_v58 = vld [vmem:[%s7921_s3 + $0x124] ss:$8 sps:$4 sm:$0xff]  }
 0x820   : > { %4858 = vmatprep.subr.bf16.mxu1 %v7366_v28  ;;  %v7394_v28 = vld [vmem:[%s7921_s3 + $0x120] ss:$8 sps:$4 sm:$0xff]  }
 0x823   : > { %4859 = vmatpush1.bf16.msra.mxu1 %v7364_v20  ;;  %v7399_v20 = vld [vmem:[%s7921_s3 + $0x134] ss:$8 sps:$4 sm:$0xff]  }
 0x824   : > { %4860 = vmatprep.subr.bf16.mxu1 %v7369_v60  ;;  %v7397_v60 = vld [vmem:[%s7921_s3 + $0x130] ss:$8 sps:$4 sm:$0xff]  }
 0x827   : > { %4861 = vmatpush1.bf16.msra.mxu1 %v7367_v4  ;;  %v7402_v4 = vld [vmem:[%s7921_s3 + $0x144] ss:$8 sps:$4 sm:$0xff]  }
 0x828   : > { %4862 = vmatprep.subr.bf16.mxu1 %v7372_v22  ;;  %v7400_v22 = vld [vmem:[%s7921_s3 + $0x140] ss:$8 sps:$4 sm:$0xff]  }
 0x82b   : > { %4863 = vmatpush1.bf16.msra.mxu1 %v7370_v53  ;;  %v7405_v53 = vld [vmem:[%s7921_s3 + $0x154] ss:$8 sps:$4 sm:$0xff]  }
 0x82c   : > { %4864 = vmatprep.subr.bf16.mxu1 %v7375_v49  ;;  %v7403_v49 = vld [vmem:[%s7921_s3 + $0x150] ss:$8 sps:$4 sm:$0xff]  }
 0x82f   : > { %4865 = vmatpush1.bf16.msra.mxu1 %v7373_v61  ;;  %v7408_v61 = vld [vmem:[%s7921_s3 + $0x164] ss:$8 sps:$4 sm:$0xff]  }
 0x830   : > { %4866 = vmatprep.subr.bf16.mxu1 %v7378_v10  ;;  %v7406_v10 = vld [vmem:[%s7921_s3 + $0x160] ss:$8 sps:$4 sm:$0xff]  }
 0x833   : > { %4867 = vmatpush1.bf16.msra.mxu1 %v7376_v5  ;;  %v7411_v5 = vld [vmem:[%s7921_s3 + $0x174] ss:$8 sps:$4 sm:$0xff]  }
 0x834   : > { %4868 = vmatprep.subr.bf16.mxu1 %v7381_v42  ;;  %v7409_v42 = vld [vmem:[%s7921_s3 + $0x170] ss:$8 sps:$4 sm:$0xff]  }
 0x837   : > { %4869 = vmatpush1.bf16.msra.mxu1 %v7379_v8  ;;  %v7414_v8 = vld [vmem:[%s7921_s3 + $0x184] ss:$8 sps:$4 sm:$0xff]  }
 0x838   : > { %4870 = vmatprep.subr.bf16.mxu1 %v7384_v30  ;;  %v7412_v30 = vld [vmem:[%s7921_s3 + $0x180] ss:$8 sps:$4 sm:$0xff]  }
 0x83b   : > { %4871 = vmatpush1.bf16.msra.mxu1 %v7382_v63  ;;  %v7417_v63 = vld [vmem:[%s7921_s3 + $0x194] ss:$8 sps:$4 sm:$0xff]  }
 0x83c   : > { %4872 = vmatprep.subr.bf16.mxu1 %v7387_v9  ;;  %v7415_v9 = vld [vmem:[%s7921_s3 + $0x190] ss:$8 sps:$4 sm:$0xff]  }
 0x83f   : > { %4873 = vmatpush1.bf16.msra.mxu1 %v7385_v19  ;;  %v7420_v19 = vld [vmem:[%s7921_s3 + $0x1a4] ss:$8 sps:$4 sm:$0xff]  }
 0x840   : > { %4885 = vmatprep.subr.bf16.mxu1 %v7390_v16  ;;  %v7418_v16 = vld [vmem:[%s7921_s3 + $0x1a0] ss:$8 sps:$4 sm:$0xff]  }
 0x8d5   : > { %v4382_v0 = vpop.f32.mrb[68].mxu1  ;;  %v4425_v34 = vpop.f32.mrb[76].mxu0 }
 0x8d6   : > { %v4383_v15 = vadd.f32 %v4382_v0, %v4011_v52  ;;  %v4426_v17 = vadd.f32 %v4425_v34, %v4019_v24  ;;  %v4384_v23 = vpop.f32.mrb[69].mxu1  ;;  %v4427_v44 = vpop.f32.mrb[77].mxu0  ;;  %v7427_v0 = vld [vmem:[%s7921_s3 + $0x1d0] ss:$8 sps:$4 sm:$0xff]   ;;  %v7432_v34 = vld [vmem:[%s7921_s3 + $0x1e4] ss:$8 sps:$4 sm:$0xff]  }
 0x8d7   : > { %v4385_v25 = vadd.f32 %v4384_v23, %v4015_v14  ;;  %v4428_v56 = vadd.f32 %v4427_v44, %v4023_v37  ;;  %v4386_v7 = vpop.f32.mrb[70].mxu1  ;;  %v4429_v13 = vpop.f32.mrb[78].mxu0  ;;  %v7433_v23 = vld [vmem:[%s7921_s3 + $0x1f0] ss:$8 sps:$4 sm:$0xff]   ;;  %v4510_v44 = vld [vmem:[%s923_s19] sm:$0x3] }
 0x8d8   : > { %v4387_v18 = vadd.f32 %v4386_v7, %v4011_v52  ;;  %v4430_v21 = vadd.f32 %v4429_v13, %v4019_v24  ;;  %v4388_v33 = vpop.f32.mrb[71].mxu1  ;;  %v4431_v47 = vpop.f32.mrb[79].mxu0  ;;  %v4434_v35 = vmax.f32 %v4383_v15, 0.0  ;;  %v4436_v31 = vmax.f32 %v4426_v17, 0.0  ;;  %v7421_v52 = vld [vmem:[%s7921_s3 + $0x1b0] ss:$8 sps:$4 sm:$0xff]  }
 0x8d9   : > { %v4389_v29 = vadd.f32 %v4388_v33, %v4015_v14  ;;  %v4432_v32 = vadd.f32 %v4431_v47, %v4023_v37  ;;  %v4435_v62 = vmax.f32 %v4385_v25, 0.0  ;;  %v4437_v39 = vmax.f32 %v4428_v56, 0.0  ;;  %v7426_v24 = vld [vmem:[%s7921_s3 + $0x1c4] ss:$8 sps:$4 sm:$0xff]   ;;  %v7424_v14 = vld [vmem:[%s7921_s3 + $0x1c0] ss:$8 sps:$4 sm:$0xff]  }
 0x8da   : > { %v4438_v38 = vmax.f32 %v4387_v18, 0.0  ;;  %v4440_v50 = vmax.f32 %v4430_v21, 0.0  ;;  %v7429_v37 = vld [vmem:[%s7921_s3 + $0x1d4] ss:$8 sps:$4 sm:$0xff]   ;;  %v7430_v15 = vld [vmem:[%s7921_s3 + $0x1e0] ss:$8 sps:$4 sm:$0xff]   ;;  %v4515_v25 = vrot.slane %v4510_v44, %v8067_v2  ;;  %v4519_v56 = vrot.slane %v4510_v44, %v8091_v26 }
 0x8db   : > { %v4439_v45 = vmax.f32 %v4389_v29, 0.0  ;;  %v4441_v40 = vmax.f32 %v4432_v32, 0.0  ;;  %v7435_v17 = vld [vmem:[%s7921_s3 + $0x1f4] ss:$8 sps:$4 sm:$0xff]  }
 0x8dc   : > { %v4442_v46 = vpack.c.bf16 %v4438_v38, %v4434_v35  ;;  %v8746_v36 = vpack.c.bf16 %v4440_v50, %v4436_v31 }
 0x8dd   : > { %v4443_v51 = vpack.c.bf16 %v4439_v45, %v4435_v62  ;;  %v4445_v59 = vpack.c.bf16 %v4441_v40, %v4437_v39 }
 0x8df   : > { %4874 = vmatprep.mubr.bf16.mxu1 %v4443_v51 }
 0x8e0   : > { %4875 = vmatmul.mubr.bf16.vlgmr.msra.gmra.mrb[72].mxu1 %v4442_v46 }
 0x8e1   : > { %4886 = vmatpush1.bf16.msra.mxu1 %v7388_v48  ;;  %4917 = vmatprep.mubr.bf16.mxu1 %v4445_v59 }
 0x8e2   : > { %4887 = vmatprep.subr.bf16.mxu1 %v7393_v54 }
 0x8e5   : > { %4888 = vmatpush1.bf16.msra.mxu1 %v7391_v55 }
 0x8e6   : > { %4889 = vmatprep.subr.bf16.mxu1 %v7396_v58 }
 0x8e9   : > { %4890 = vmatpush1.bf16.msra.mxu1 %v7394_v28 }
 0x8ea   : > { %4891 = vmatprep.subr.bf16.mxu1 %v7399_v20 }
 0x8ed   : > { %4892 = vmatpush1.bf16.msra.mxu1 %v7397_v60 }
 0x8ee   : > { %4893 = vmatprep.subr.bf16.mxu1 %v7402_v4 }
 0x8f1   : > { %4894 = vmatpush1.bf16.msra.mxu1 %v7400_v22 }
 0x8f2   : > { %4895 = vmatprep.subr.bf16.mxu1 %v7405_v53 }
 0x8f5   : > { %4896 = vmatpush1.bf16.msra.mxu1 %v7403_v49 }
 0x8f6   : > { %4897 = vmatprep.subr.bf16.mxu1 %v7408_v61 }
 0x8f9   : > { %4898 = vmatpush1.bf16.msra.mxu1 %v7406_v10  ;;  %v4932_v10 = vld [vmem:[%s927_s20] sm:$0x3]  ;;  %s9288_s20 = sld [smem:[#allocation17_spill]] (!%p6566_p6) }
 0x8fa   : > { %4899 = vmatprep.subr.bf16.mxu1 %v7411_v5  ;;  %v4933_v5 = vld [vmem:[%s931_s0] sm:$0x3] }
 0x8fd   : > { %4900 = vmatpush1.bf16.msra.mxu1 %v7409_v42 }
 0x8fe   : > { %4901 = vmatprep.subr.bf16.mxu1 %v7414_v8 }
 0x901   : > { %4902 = vmatpush1.bf16.msra.mxu1 %v7412_v30  ;;  %v4976_v30 = vrot.slane %v4932_v10, %v8067_v2 }
 0x902   : > { %4903 = vmatprep.subr.bf16.mxu1 %v7417_v63  ;;  %v4980_v63 = vrot.slane %v4932_v10, %v8091_v26  ;;  %v7535_v10 = vld [vmem:[%s9288_s20 + $0x70] ss:$8 sps:$4 sm:$0xff] (!%p6566_p6)  }
 0x905   : > { %4904 = vmatpush1.bf16.msra.mxu1 %v7415_v9 }
 0x906   : > { %4905 = vmatprep.subr.bf16.mxu1 %v7420_v19  ;;  %v4991_v19 = vrot.slane %v4933_v5, %v8067_v2 }
 0x909   : > { %4906 = vmatpush1.bf16.msra.mxu1 %v7418_v16  ;;  %v4995_v16 = vrot.slane %v4933_v5, %v8091_v26  ;;  %v7572_v5 = vld [vmem:[%s9290_s23 + $0x54] ss:$20 sps:$4 sm:$0xff] (!%p6566_p6)  }
 0x90a   : > { %4907 = vmatprep.subr.bf16.mxu1 %v7423_v12 }
 0x90d   : > { %4908 = vmatpush1.bf16.msra.mxu1 %v7421_v52 }
 0x90e   : > { %4909 = vmatprep.subr.bf16.mxu1 %v7426_v24 }
 0x911   : > { %4910 = vmatpush1.bf16.msra.mxu1 %v7424_v14 }
 0x912   : > { %4911 = vmatprep.subr.bf16.mxu1 %v7429_v37 }
 0x915   : > { %4912 = vmatpush1.bf16.msra.mxu1 %v7427_v0 }
 0x916   : > { %4913 = vmatprep.subr.bf16.mxu1 %v7432_v34 }
 0x919   : > { %4914 = vmatpush1.bf16.msra.mxu1 %v7430_v15 }
 0x91a   : > { %4915 = vmatprep.subr.bf16.mxu1 %v7435_v17 }
 0x91d   : > { %4916 = vmatpush1.bf16.msra.mxu1 %v7433_v23 }
 0x920   : > { %4918 = vmatmul.mubr.bf16.vlgmr.msra.gmra.mrb[72].mxu1 %v8746_v36 }
 0x9f3   : > { %v4919_v7 = vpop.f32.mrb[72].mxu1 }
 0x9f4   : > { %v6965_v13 = vadd.f32 %v4919_v7, %v4515_v25  ;;  %v4921_v18 = vpop.f32.mrb[73].mxu1 }
 0x9f5   : > { %v6966_v21 = vadd.f32 %v4921_v18, %v4519_v56  ;;  %v4923_v33 = vpop.f32.mrb[74].mxu1  ;;  %v7512_v18 = vld [vmem:[%s9288_s20 + $0x4] ss:$8 sps:$4 sm:$0xff] (!%p6566_p6)  }
 0x9f6   : > { %v4928_v47 = vadd.f32 %v6965_v13, %v8701_v43  ;;  %v6967_v29 = vadd.f32 %v4923_v33, %v4515_v25  ;;  %v4925_v32 = vpop.f32.mrb[75].mxu1  ;;  %5245 = vmatprep.subr.bf16.mxu0 (!%p6566_p6), %v7512_v18 }
 0x9f7   : > { %v4929_v35 = vadd.f32 %v6966_v21, %v8697_v11  ;;  %v6968_v31 = vadd.f32 %v4925_v32, %v4519_v56 }
 0x9f8   : > { %v4930_v38 = vadd.f32 %v6967_v29, %v8703_v57  ;;  %v4942_v39 = vmul.f32 %v4928_v47, %v4928_v47  ;;  %v7515_v29 = vld [vmem:[%s9288_s20 + $0x14] ss:$8 sps:$4 sm:$0xff] (!%p6566_p6)  }
 0x9f9   : > { %v4931_v50 = vadd.f32 %v6968_v31, %v8699_v6  ;;  %v4934_v62 = vadd.f32 %v4929_v35, %v4928_v47  ;;  %v4943_v45 = vmul.f32 %v4929_v35, %v4929_v35  ;;  %v7517_v31 = vld [vmem:[%s9288_s20 + $0x10] ss:$8 sps:$4 sm:$0xff] (!%p6566_p6)  }
 0x9fa   : > { %v4944_v46 = vmul.f32 %v4930_v38, %v4930_v38 }
 0x9fb   : > { %4935 = vadd.xlane.f32.xlu1 %v4934_v62  ;;  %v4937_v40 = vadd.f32 %v4931_v50, %v4930_v38  ;;  %v4945_v36 = vmul.f32 %v4931_v50, %v4931_v50  ;;  %v4946_v51 = vadd.f32 %v4943_v45, %v4942_v39 }
 0x9fd   : > { %4938 = vadd.xlane.f32.xlu0 %v4937_v40  ;;  %v4949_v43 = vadd.f32 %v4945_v36, %v4944_v46  ;;  %v7520_v40 = vld [vmem:[%s9288_s20 + $0x20] ss:$8 sps:$4 sm:$0xff] (!%p6566_p6)   ;;  %v7521_v46 = vld [vmem:[%s9288_s20 + $0x34] ss:$8 sps:$4 sm:$0xff] (!%p6566_p6)  }
 0x9ff   : > { %4947 = vadd.xlane.f32.xlu1 %v4946_v51 }
 0xa01   : > { %4950 = vadd.xlane.f32.xlu0 %v4949_v43 }
 0xa88   : > { %v4936_v59 = vpop.xlane.xlu1 %4935 }
 0xa89   : > { %v4940_v48 = vmul.f32 0.00390625, %v4936_v59 }
 0xa8a   : > { %v4939_v11 = vpop.xlane.xlu0 %4938 }
 0xa8b   : > { %v4941_v54 = vmul.f32 0.00390625, %v4939_v11  ;;  %v4954_v6 = vmul.f32 %v4940_v48, %v4940_v48  ;;  %v4960_v42 = vsub.f32 %v4928_v47, %v4940_v48  ;;  %v4961_v8 = vsub.f32 %v4929_v35, %v4940_v48  ;;  %v7514_v47 = vld [vmem:[%s9288_s20] ss:$8 sps:$4 sm:$0xff] (!%p6566_p6)   ;;  %v7523_v48 = vld [vmem:[%s9288_s20 + $0x30] ss:$8 sps:$4 sm:$0xff] (!%p6566_p6)  }
 0xa8c   : > { %v4948_v57 = vpop.xlane.xlu1 %4947  ;;  %5246 = vmatpush1.bf16.msra.mxu0 (!%p6566_p6), %v7514_v47  ;;  %v7524_v11 = vld [vmem:[%s9288_s20 + $0x44] ss:$8 sps:$4 sm:$0xff] (!%p6566_p6)  }
 0xa8d   : > { %v4952_v55 = vmul.f32 0.00390625, %v4948_v57  ;;  %v4955_v20 = vmul.f32 %v4941_v54, %v4941_v54  ;;  %v4962_v12 = vsub.f32 %v4930_v38, %v4941_v54  ;;  %v4963_v52 = vsub.f32 %v4931_v50, %v4941_v54  ;;  %5247 = vmatprep.subr.bf16.mxu0 (!%p6566_p6), %v7515_v29  ;;  %v7518_v38 = vld [vmem:[%s9288_s20 + $0x24] ss:$8 sps:$4 sm:$0xff] (!%p6566_p6)   ;;  %v7602_v29 = vld [vmem:[%s9290_s23 + $0x11c] ss:$20 sps:$4 sm:$0xff] (!%p6566_p6)  }
 0xa8e   : > { %v4951_v58 = vpop.xlane.xlu0 %4950  ;;  %v7598_v47 = vld [vmem:[%s9290_s23 + $0xf0] ss:$20 sps:$4 sm:$0xff] (!%p6566_p6)  }
 0xa8f   : > { %v4956_v28 = vsub.f32 %v4952_v55, %v4954_v6  ;;  %v4953_v60 = vmul.f32 0.00390625, %v4951_v58  ;;  %v7526_v6 = vld [vmem:[%s9288_s20 + $0x40] ss:$8 sps:$4 sm:$0xff] (!%p6566_p6)   ;;  %v7527_v58 = vld [vmem:[%s9288_s20 + $0x54] ss:$8 sps:$4 sm:$0xff] (!%p6566_p6)  }
 0xa90   : > { %5248 = vmatpush1.bf16.msra.mxu0 (!%p6566_p6), %v7517_v31 }
 0xa91   : > { %v4958_v4 = vmax.f32 %v4956_v28, 0.0  ;;  %v4957_v22 = vsub.f32 %v4953_v60, %v4955_v20  ;;  %5249 = vmatprep.subr.bf16.mxu0 (!%p6566_p6), %v7518_v38  ;;  %v7529_v28 = vld [vmem:[%s9288_s20 + $0x50] ss:$8 sps:$4 sm:$0xff] (!%p6566_p6)   ;;  %v7530_v20 = vld [vmem:[%s9288_s20 + $0x64] ss:$8 sps:$4 sm:$0xff] (!%p6566_p6)  }
 0xa92   : > { %v7560_v60 = vld [vmem:[%s9289_s4 + $0x4] ss:$20 sps:$4 sm:$0xff] (!%p6566_p6)   ;;  %v7551_v38 = vld [vmem:[%s9288_s20 + $0xd4] ss:$8 sps:$4 sm:$0xff] (!%p6566_p6)  }
 0xa93   : > { %v4964_v53 = vadd.f32 1e-05, %v4958_v4  ;;  %v4959_v49 = vmax.f32 %v4957_v22, 0.0  ;;  %v7562_v4 = vld [vmem:[%s9290_s23] ss:$20 sps:$4 sm:$0xff] (!%p6566_p6)   ;;  %5887 = vmatprep.subr.bf16.mxu1 (!%p6566_p6), %v7560_v60 }
 0xa94   : > { %5250 = vmatpush1.bf16.msra.mxu0 (!%p6566_p6), %v7520_v40  ;;  %v7532_v22 = vld [vmem:[%s9288_s20 + $0x60] ss:$8 sps:$4 sm:$0xff] (!%p6566_p6)   ;;  %5888 = vmatpush1.bf16.msra.mxu1 (!%p6566_p6), %v7562_v4 }
 0xa95   : > { %7504 = vrsqrt.f32 %v4964_v53  ;;  %v4965_v61 = vadd.f32 1e-05, %v4959_v49  ;;  %5251 = vmatprep.subr.bf16.mxu0 (!%p6566_p6), %v7521_v46  ;;  %v7533_v53 = vld [vmem:[%s9288_s20 + $0x74] ss:$8 sps:$4 sm:$0xff] (!%p6566_p6)   ;;  %v7566_v49 = vld [vmem:[%s9290_s23 + $0x2c] ss:$20 sps:$4 sm:$0xff] (!%p6566_p6)  }
 0xa96   : > { %5889 = vmatprep.subr.bf16.mxu1 (!%p6566_p6), %v7566_v49  ;;  %v7554_v46 = vld [vmem:[%s9288_s20 + $0xe4] ss:$8 sps:$4 sm:$0xff] (!%p6566_p6)   ;;  %v7571_v4 = vld [vmem:[%s9290_s23 + $0x34] ss:$20 sps:$4 sm:$0xff] (!%p6566_p6)   ;;  %v7577_v49 = vld [vmem:[%s9290_s23 + $0x5c] ss:$20 sps:$4 sm:$0xff] (!%p6566_p6)  }
 0xa97   : > { %7506 = vrsqrt.f32 %v4965_v61  ;;  %v7568_v61 = vld [vmem:[%s9290_s23 + $0x28] ss:$20 sps:$4 sm:$0xff] (!%p6566_p6)  }
 0xa98   : > { %5252 = vmatpush1.bf16.msra.mxu0 (!%p6566_p6), %v7523_v48  ;;  %5890 = vmatpush1.bf16.msra.mxu1 (!%p6566_p6), %v7568_v61  ;;  %v7575_v61 = vld [vmem:[%s9290_s23 + $0x58] ss:$20 sps:$4 sm:$0xff] (!%p6566_p6)  }
 0xa99   : > { %5253 = vmatprep.subr.bf16.mxu0 (!%p6566_p6), %v7524_v11  ;;  %5891 = vmatprep.subr.bf16.mxu1 (!%p6566_p6), %v7572_v5  ;;  %v7616_v11 = vld [vmem:[%s9290_s23 + $0x168] ss:$20 sps:$4 sm:$0xff] (!%p6566_p6)   ;;  %v7581_v5 = vld [vmem:[%s9290_s23 + $0x80] ss:$20 sps:$4 sm:$0xff] (!%p6566_p6)  }
 0xa9c   : > { %5254 = vmatpush1.bf16.msra.mxu0 (!%p6566_p6), %v7526_v6 }
 0xa9d   : > { %5255 = vmatprep.subr.bf16.mxu0 (!%p6566_p6), %v7527_v58  ;;  %v7622_v58 = vld [vmem:[%s9290_s23 + $0x190] ss:$20 sps:$4 sm:$0xff] (!%p6566_p6)  }
 0xa9f   : > { %v7505_v9 = vpop.eup %7504 }
 0xaa0   : > { %v4968_v24 = vmul.f32 %v7505_v9, %v4960_v42  ;;  %v4969_v14 = vmul.f32 %v7505_v9, %v4961_v8  ;;  %5256 = vmatpush1.bf16.msra.mxu0 (!%p6566_p6), %v7529_v28  ;;  %v7536_v42 = vld [vmem:[%s9288_s20 + $0x84] ss:$8 sps:$4 sm:$0xff] (!%p6566_p6)   ;;  %v7626_v28 = vld [vmem:[%s9290_s23 + $0x1bc] ss:$20 sps:$4 sm:$0xff] (!%p6566_p6)  }
 0xaa1   : > { %v7507_v37 = vpop.eup %7506  ;;  %5257 = vmatprep.subr.bf16.mxu0 (!%p6566_p6), %v7530_v20  ;;  %v7574_v8 = vld [vmem:[%s9290_s23 + $0x50] ss:$20 sps:$4 sm:$0xff] (!%p6566_p6)   ;;  %v7563_v20 = vld [vmem:[%s9290_s23 + $0x8] ss:$20 sps:$4 sm:$0xff] (!%p6566_p6)  }
 0xaa2   : > { %v4983_v0 = vmul.f32 %v4976_v30, %v4968_v24  ;;  %v4984_v34 = vmul.f32 %v4980_v63, %v4969_v14  ;;  %v4970_v15 = vmul.f32 %v7507_v37, %v4962_v12  ;;  %v4971_v17 = vmul.f32 %v7507_v37, %v4963_v52  ;;  %5009 = sbr.rel (%p6566_p6) target bundleno = 3241 (0xca9), region = 120  ;;  %5892 = vmatpush1.bf16.msra.mxu1 (!%p6566_p6), %v7574_v8  ;;  %v7580_v12 = vld [vmem:[%s9290_s23 + $0x78] ss:$20 sps:$4 sm:$0xff] (!%p6566_p6)   ;;  %v7587_v8 = vld [vmem:[%s9290_s23 + $0xa8] ss:$20 sps:$4 sm:$0xff] (!%p6566_p6)  }
 0xaa3   : > { %v7584_v52 = vld [vmem:[%s9290_s23 + $0xa4] ss:$20 sps:$4 sm:$0xff] (!%p6566_p6)  }
 0xaa4   : > { %v8805_v23 = vadd.f32 %v4991_v19, %v4983_v0  ;;  %v4999_v44 = vadd.f32 %v4995_v16, %v4984_v34  ;;  %v4985_v25 = vmul.f32 %v4976_v30, %v4970_v15  ;;  %v4986_v56 = vmul.f32 %v4980_v63, %v4971_v17  ;;  %5258 = vmatpush1.bf16.msra.mxu0 (!%p6566_p6), %v7532_v22  ;;  %v7578_v30 = vld [vmem:[%s9290_s23 + $0x7c] ss:$20 sps:$4 sm:$0xff] (!%p6566_p6)   ;;  %v7538_v63 = vld [vmem:[%s9288_s20 + $0x80] ss:$8 sps:$4 sm:$0xff] (!%p6566_p6)   ;;  %v7542_v0 = vld [vmem:[%s9288_s20 + $0xa4] ss:$8 sps:$4 sm:$0xff] (!%p6566_p6)  }
 0xaa5   : > { %5259 = vmatprep.subr.bf16.mxu0 (!%p6566_p6), %v7533_v53  ;;  %5893 = vmatprep.subr.bf16.mxu1 (!%p6566_p6), %v7578_v30  ;;  %v7541_v24 = vld [vmem:[%s9288_s20 + $0x90] ss:$8 sps:$4 sm:$0xff] (!%p6566_p6)   ;;  %v7586_v34 = vld [vmem:[%s9290_s23 + $0xa0] ss:$20 sps:$4 sm:$0xff] (!%p6566_p6)  }
 0xaa6   : > { %5002 = vst [vmem:[#allocation2] sm:$0xff] %v8805_v23  ;;  %5003 = vst [vmem:[#allocation2 + $0x8] sm:$0xff] %v4999_v44  ;;  %v8808_v7 = vadd.f32 %v4991_v19, %v4985_v25  ;;  %v5001_v13 = vadd.f32 %v4995_v16, %v4986_v56  ;;  %v5016_v21 = vrot.slane (!%p6566_p6), %v4999_v44, 4  ;;  %v5010_v9 = vrot.slane (!%p6566_p6), %v8805_v23, 4  ;;  %v7539_v16 = vld [vmem:[%s9288_s20 + $0x94] ss:$8 sps:$4 sm:$0xff] (!%p6566_p6)   ;;  %5894 = vmatpush1.bf16.msra.mxu1 (!%p6566_p6), %v7580_v12 }
 0xaa7   : > { %5895 = vmatprep.subr.bf16.mxu1 (!%p6566_p6), %v7584_v52  ;;  %v7590_v15 = vld [vmem:[%s9290_s23 + $0xcc] ss:$20 sps:$4 sm:$0xff] (!%p6566_p6)   ;;  %v7545_v25 = vld [vmem:[%s9288_s20 + $0xb4] ss:$8 sps:$4 sm:$0xff] (!%p6566_p6)   ;;  %v7569_v53 = vld [vmem:[%s9290_s23 + $0x30] ss:$20 sps:$4 sm:$0xff] (!%p6566_p6)  }
 0xaa8   : > { %5004 = vst [vmem:[#allocation2 + $0x10] sm:$0xff] %v8808_v7  ;;  %5005 = vst [vmem:[#allocation2 + $0x18] sm:$0xff] %v5001_v13  ;;  %v5028_v33 = vrot.slane (!%p6566_p6), %v5001_v13, 4  ;;  %v5017_v32 = vadd.f32 (!%p6566_p6), %v5016_v21, %v4999_v44  ;;  %5260 = vmatpush1.bf16.msra.mxu0 (!%p6566_p6), %v7535_v10  ;;  %v5022_v19 = vrot.slane (!%p6566_p6), %v8808_v7, 4  ;;  %v5011_v14 = vadd.f32 (!%p6566_p6), %v5010_v9, %v8805_v23  ;;  %v7544_v17 = vld [vmem:[%s9288_s20 + $0xa0] ss:$8 sps:$4 sm:$0xff] (!%p6566_p6)  }
 0xaa9   : > { %5261 = vmatprep.subr.bf16.mxu0 %v7536_v42  ;;  %v7592_v56 = vld [vmem:[%s9290_s23 + $0xc8] ss:$20 sps:$4 sm:$0xff]   ;;  %v7628_v22 = vld [vmem:[%s9290_s23 + $0x1b8] ss:$20 sps:$4 sm:$0xff]   ;;  %v7605_v12 = vld [vmem:[%s9290_s23 + $0x120] ss:$20 sps:$4 sm:$0xff]  }
 0xaaa   : > { %v5029_v35 = vadd.f32 %v5028_v33, %v5001_v13  ;;  %v5018_v50 = vrot.slane %v5017_v32, 2  ;;  %v5023_v37 = vadd.f32 %v5022_v19, %v8808_v7  ;;  %v5012_v23 = vrot.slane %v5011_v14, 2  ;;  %5896 = vmatpush1.bf16.msra.mxu1 %v7586_v34  ;;  %v7596_v7 = vld [vmem:[%s9290_s23 + $0xf4] ss:$20 sps:$4 sm:$0xff]   ;;  %v7547_v13 = vld [vmem:[%s9288_s20 + $0xb0] ss:$8 sps:$4 sm:$0xff]  }
 0xaab   : > { %5897 = vmatprep.subr.bf16.mxu1 %v7590_v15  ;;  %v7548_v33 = vld [vmem:[%s9288_s20 + $0xc4] ss:$8 sps:$4 sm:$0xff]   ;;  %v7595_v30 = vld [vmem:[%s9290_s23 + $0xd4] ss:$20 sps:$4 sm:$0xff]   ;;  %v7601_v9 = vld [vmem:[%s9290_s23 + $0xfc] ss:$20 sps:$4 sm:$0xff]  }
 0xaac   : > { %v5030_v62 = vrot.slane %v5029_v35, 2  ;;  %v5019_v39 = vadd.f32 %v5018_v50, %v5017_v32  ;;  %5262 = vmatpush1.bf16.msra.mxu0 %v7538_v63  ;;  %v5024_v44 = vrot.slane %v5023_v37, 2  ;;  %v5013_v18 = vadd.f32 %v5012_v23, %v5011_v14  ;;  %v7550_v32 = vld [vmem:[%s9288_s20 + $0xc0] ss:$8 sps:$4 sm:$0xff]   ;;  %v7604_v50 = vld [vmem:[%s9290_s23 + $0x118] ss:$20 sps:$4 sm:$0xff]  }
 0xaad   : > { %5263 = vmatprep.subr.bf16.mxu0 %v7539_v16  ;;  %v7583_v10 = vld [vmem:[%s9290_s23 + $0x84] ss:$20 sps:$4 sm:$0xff]   ;;  %v7589_v42 = vld [vmem:[%s9290_s23 + $0xac] ss:$20 sps:$4 sm:$0xff]   ;;  %v7619_v14 = vld [vmem:[%s9290_s23 + $0x174] ss:$20 sps:$4 sm:$0xff]  }
 0xaae   : > { %v5031_v45 = vadd.f32 %v5030_v62, %v5029_v35  ;;  %v5020_v36 = vrot.slane %v5019_v39, 1  ;;  %v5025_v21 = vadd.f32 %v5024_v44, %v5023_v37  ;;  %5898 = vmatpush1.bf16.msra.mxu1 %v7592_v56  ;;  %v5014_v35 = vrot.slane %v5013_v18, 1  ;;  %v7608_v62 = vld [vmem:[%s9290_s23 + $0x144] ss:$20 sps:$4 sm:$0xff]   ;;  %v7613_v52 = vld [vmem:[%s9290_s23 + $0x14c] ss:$20 sps:$4 sm:$0xff]  }
 0xaaf   : > { %5899 = vmatprep.subr.bf16.mxu1 %v7596_v7  ;;  %v7593_v63 = vld [vmem:[%s9290_s23 + $0xd0] ss:$20 sps:$4 sm:$0xff]   ;;  %v7599_v19 = vld [vmem:[%s9290_s23 + $0xf8] ss:$20 sps:$4 sm:$0xff]   ;;  %v7634_v44 = vld [vmem:[%s9290_s23 + $0x1e0] ss:$20 sps:$4 sm:$0xff]  }
 0xab0   : > { %v5032_v51 = vrot.slane %v5031_v45, 1  ;;  %v5021_v43 = vadd.f32 %v5020_v36, %v5019_v39  ;;  %5264 = vmatpush1.bf16.msra.mxu0 %v7541_v24  ;;  %v5026_v31 = vrot.slane %v5025_v21, 1  ;;  %v7553_v39 = vld [vmem:[%s9288_s20 + $0xd0] ss:$8 sps:$4 sm:$0xff]   ;;  %v7556_v36 = vld [vmem:[%s9288_s20 + $0xe0] ss:$8 sps:$4 sm:$0xff]  }
 0xab1   : > { %5265 = vmatprep.subr.bf16.mxu0 %v7542_v0  ;;  %v7607_v16 = vld [vmem:[%s9290_s23 + $0x124] ss:$20 sps:$4 sm:$0xff]   ;;  %v7611_v24 = vld [vmem:[%s9290_s23 + $0x148] ss:$20 sps:$4 sm:$0xff]   ;;  %v7638_v7 = vld [vmem:[%s9290_s23 + $0x20c] ss:$20 sps:$4 sm:$0xff]  }
 0xab2   : > { %v5033_v59 = vadd.f32 %v5032_v51, %v5031_v45  ;;  %5900 = vmatpush1.bf16.msra.mxu1 %v7598_v47  ;;  %v5015_v45 = vadd.f32 %v5014_v35, %v5013_v18  ;;  %v5027_v40 = vadd.f32 %v5026_v31, %v5025_v21  ;;  %v7610_v51 = vld [vmem:[%s9290_s23 + $0x140] ss:$20 sps:$4 sm:$0xff]   ;;  %v7617_v37 = vld [vmem:[%s9290_s23 + $0x170] ss:$20 sps:$4 sm:$0xff]   ;;  %v7623_v34 = vld [vmem:[%s9290_s23 + $0x198] ss:$20 sps:$4 sm:$0xff]  }
 0xab3   : > { %5901 = vmatprep.subr.bf16.mxu1 %v7602_v29  ;;  %v7625_v0 = vld [vmem:[%s9290_s23 + $0x19c] ss:$20 sps:$4 sm:$0xff]   ;;  %v7631_v15 = vld [vmem:[%s9290_s23 + $0x1c4] ss:$20 sps:$4 sm:$0xff]   ;;  %v7643_v18 = vld [vmem:[%s9290_s23 + $0x214] ss:$20 sps:$4 sm:$0xff]  }
 0xab4   : > { %v5036_v54 = vsel %vm5034_vm8, %v5021_v43, %v5033_v59  ;;  %5266 = vmatpush1.bf16.msra.mxu0 %v7544_v17  ;;  %v7614_v43 = vld [vmem:[%s9290_s23 + $0x16c] ss:$20 sps:$4 sm:$0xff]   ;;  %v7557_v59 = vld [vmem:[%s9288_s20 + $0xf4] ss:$8 sps:$4 sm:$0xff]   ;;  %v5035_v48 = vsel %vm5034_vm8, %v5015_v45, %v5027_v40  ;;  %v7632_v23 = vld [vmem:[%s9290_s23 + $0x1e4] ss:$20 sps:$4 sm:$0xff]  }
 0xab5   : > { %v5038_v57 = vmul.f32 0.125, %v5036_v54  ;;  %5267 = vmatprep.subr.bf16.mxu0 %v7545_v25  ;;  %v7620_v54 = vld [vmem:[%s9290_s23 + $0x194] ss:$20 sps:$4 sm:$0xff]   ;;  %v5037_v6 = vmul.f32 0.125, %v5035_v48  ;;  %v7637_v25 = vld [vmem:[%s9290_s23 + $0x1ec] ss:$20 sps:$4 sm:$0xff]  }
 0xab6   : > { %5902 = vmatpush1.bf16.msra.mxu1 %v7604_v50  ;;  %v7629_v17 = vld [vmem:[%s9290_s23 + $0x1c0] ss:$20 sps:$4 sm:$0xff]   ;;  %v7635_v56 = vld [vmem:[%s9290_s23 + $0x1e8] ss:$20 sps:$4 sm:$0xff]   ;;  %v7641_v21 = vld [vmem:[%s9290_s23 + $0x210] ss:$20 sps:$4 sm:$0xff]  }
 0xab7   : > { %v5040_v55 = vpack.c.bf16 %v5038_v57, %v5038_v57  ;;  %5903 = vmatprep.subr.bf16.mxu1 %v7608_v62  ;;  %v7559_v57 = vld [vmem:[%s9288_s20 + $0xf0] ss:$8 sps:$4 sm:$0xff]   ;;  %v5039_v60 = vpack.c.bf16 %v5037_v6, %v5037_v6  ;;  %v7653_v50 = vld [vmem:[%s9290_s23 + $0x260] ss:$20 sps:$4 sm:$0xff]  }
 0xab8   : > { %5268 = vmatpush1.bf16.msra.mxu0 %v7547_v13  ;;  %v7640_v13 = vld [vmem:[%s9290_s23 + $0x208] ss:$20 sps:$4 sm:$0xff]   ;;  %v7646_v47 = vld [vmem:[%s9290_s23 + $0x230] ss:$20 sps:$4 sm:$0xff]   ;;  %v7652_v31 = vld [vmem:[%s9290_s23 + $0x258] ss:$20 sps:$4 sm:$0xff]  }
 0xab9   : > { %5277 = vmatprep.mubr.bf16.mxu0 %v5040_v55  ;;  %5269 = vmatprep.subr.bf16.mxu0 %v7548_v33  ;;  %v7565_v55 = vld [vmem:[%s9290_s23 + $0xc] ss:$20 sps:$4 sm:$0xff]   ;;  %v7644_v33 = vld [vmem:[%s9290_s23 + $0x234] ss:$20 sps:$4 sm:$0xff]   ;;  %v7649_v29 = vld [vmem:[%s9290_s23 + $0x23c] ss:$20 sps:$4 sm:$0xff]  }
 0xaba   : > { %5904 = vmatpush1.bf16.msra.mxu1 %v7610_v51  ;;  %v7650_v35 = vld [vmem:[%s9290_s23 + $0x25c] ss:$20 sps:$4 sm:$0xff]   ;;  %v5073_v40 = vld [vmem:[%s9292_s1] sm:$0x3]  ;;  %s9296_s1 = sld [smem:[#allocation24_spill]] }
 0xabb   : > { %5905 = vmatprep.subr.bf16.mxu1 %v7614_v43  ;;  %v7656_v62 = vld [vmem:[%s9290_s23 + $0x150] ss:$20 sps:$4 sm:$0xff]   ;;  %v5082_v43 = vrot.slane %v5073_v40, %v8091_v26 }
 0xabc   : > { %5270 = vmatpush1.bf16.msra.mxu0 %v7550_v32  ;;  %v7647_v32 = vld [vmem:[%s9290_s23 + $0x238] ss:$20 sps:$4 sm:$0xff]  }
 0xabd   : > { %5271 = vmatprep.subr.bf16.mxu0 %v7551_v38  ;;  %v7655_v38 = vld [vmem:[%s9290_s23 + $0x264] ss:$20 sps:$4 sm:$0xff]  }
 0xabe   : > { %5906 = vmatpush1.bf16.msra.mxu1 %v7616_v11  ;;  %v5316_v11 = vld [vmem:[%s9294_s24] sm:$0x3] }
 0xabf   : > { %5907 = vmatprep.subr.bf16.mxu1 %v7620_v54 }
 0xac0   : > { %5272 = vmatpush1.bf16.msra.mxu0 %v7553_v39  ;;  %v5300_v39 = vld [vmem:[%s9291_s17] sm:$0x3] }
 0xac1   : > { %5273 = vmatprep.subr.bf16.mxu0 %v7554_v46  ;;  %v5301_v45 = vadd.f32 1e-05, %v5300_v39  ;;  %v5286_v46 = vld [vmem:[%s9293_s16] sm:$0x3] }
 0xac2   : > { %5908 = vmatpush1.bf16.msra.mxu1 %v7622_v58  ;;  %v5295_v54 = vrot.slane %v5286_v46, %v8091_v26 }
 0xac3   : > { %5909 = vmatprep.subr.bf16.mxu1 %v7626_v28  ;;  %7672 = vrsqrt.f32 %v5301_v45 }
 0xac4   : > { %5274 = vmatpush1.bf16.msra.mxu0 %v7556_v36  ;;  %v5078_v36 = vrot.slane %v5073_v40, %v8067_v2 }
 0xac5   : > { %5275 = vmatprep.subr.bf16.mxu0 %v7557_v59  ;;  %v5291_v59 = vrot.slane %v5286_v46, %v8067_v2 }
 0xac6   : > { %5910 = vmatpush1.bf16.msra.mxu1 %v7628_v22  ;;  %v5321_v22 = vrot.slane %v5316_v11, %v8067_v2 }
 0xac7   : > { %5911 = vmatprep.subr.bf16.mxu1 %v7632_v23  ;;  %v7663_v23 = vld [vmem:[%s9290_s23 + $0x88] ss:$20 sps:$4 sm:$0xff]  }
 0xac8   : > { %5276 = vmatpush1.bf16.msra.mxu0 %v7559_v57 }
 0xac9   : > { %5928 = vmatprep.subr.bf16.mxu0 %v7565_v55 }
 0xaca   : > { %5912 = vmatpush1.bf16.msra.mxu1 %v7634_v44  ;;  %v7664_v44 = vld [vmem:[%s9290_s23 + $0x1f0] ss:$20 sps:$4 sm:$0xff]  }
 0xacb   : > { %5278 = vmatmul.mubr.bf16.vlgmr.msra.gmra.mrb[0].mxu0 %v5039_v60  ;;  %5913 = vmatprep.subr.bf16.mxu1 %v7638_v7  ;;  %v5330_v60 = vld [vmem:[%s9295_s27] sm:$0x3]  ;;  %v7667_v7 = vld [vmem:[%s9290_s23 + $0xd8] ss:$20 sps:$4 sm:$0xff]  }
 0xacc   : > { %5929 = vmatpush1.bf16.msra.mxu0 %v7563_v20 }
 0xacd   : > { %5930 = vmatprep.subr.bf16.mxu0 %v7571_v4  ;;  %v7673_v51 = vpop.eup %7672 }
 0xace   : > { %5914 = vmatpush1.bf16.msra.mxu1 %v7640_v13  ;;  %v5307_v6 = vrot.slane %v7673_v51, %v8067_v2  ;;  %v5311_v28 = vrot.slane %v7673_v51, %v8091_v26  ;;  %v7668_v13 = vld [vmem:[%s9290_s23 + $0x240] ss:$20 sps:$4 sm:$0xff]  }
 0xacf   : > { %5915 = vmatprep.subr.bf16.mxu1 %v7644_v33  ;;  %v7671_v33 = vld [vmem:[%s9290_s23 + $0x128] ss:$20 sps:$4 sm:$0xff]  }
 0xad0   : > { %5931 = vmatpush1.bf16.msra.mxu0 %v7569_v53 }
 0xad1   : > { %5932 = vmatprep.subr.bf16.mxu0 %v7577_v49 }
 0xad2   : > { %5916 = vmatpush1.bf16.msra.mxu1 %v7646_v47  ;;  %v5444_v47 = vld [vmem:[%s9296_s1] sm:$0x1f] }
 0xad3   : > { %5917 = vmatprep.subr.bf16.mxu1 %v7650_v35  ;;  %v5449_v35 = vrot.slane %v5444_v47, %v8067_v2 }
 0xad4   : > { %5933 = vmatpush1.bf16.msra.mxu0 %v7575_v61  ;;  %v5325_v61 = vrot.slane %v5316_v11, %v8091_v26 }
 0xad5   : > { %5934 = vmatprep.subr.bf16.mxu0 %v7583_v10 }
 0xad6   : > { %5918 = vmatpush1.bf16.msra.mxu1 %v7652_v31  ;;  %v5457_v31 = vrot.slane %v5444_v47, %v8070_v3 }
 0xad7   : > { %6751 = vmatprep.subr.bf16.mxu1 %v7656_v62  ;;  %v5461_v62 = vrot.slane %v5444_v47, %v8094_v27 }
 0xad8   : > { %5935 = vmatpush1.bf16.msra.mxu0 %v7581_v5  ;;  %v5335_v5 = vrot.slane %v5330_v60, %v8067_v2 }
 0xad9   : > { %5936 = vmatprep.subr.bf16.mxu0 %v7589_v42 }
 0xadc   : > { %5937 = vmatpush1.bf16.msra.mxu0 %v7587_v8  ;;  %v5339_v8 = vrot.slane %v5330_v60, %v8091_v26 }
 0xadd   : > { %5938 = vmatprep.subr.bf16.mxu0 %v7595_v30 }
 0xae0   : > { %5939 = vmatpush1.bf16.msra.mxu0 %v7593_v63 }
 0xae1   : > { %5940 = vmatprep.subr.bf16.mxu0 %v7601_v9 }
 0xae4   : > { %5941 = vmatpush1.bf16.msra.mxu0 %v7599_v19 }
 0xae5   : > { %5942 = vmatprep.subr.bf16.mxu0 %v7607_v16 }
 0xae8   : > { %5943 = vmatpush1.bf16.msra.mxu0 %v7605_v12 }
 0xae9   : > { %5944 = vmatprep.subr.bf16.mxu0 %v7613_v52 }
 0xaec   : > { %5945 = vmatpush1.bf16.msra.mxu0 %v7611_v24  ;;  %v7657_v24 = vld [vmem:[%s9290_s23 + $0x10] ss:$20 sps:$4 sm:$0xff]  }
 0xaed   : > { %5946 = vmatprep.subr.bf16.mxu0 %v7619_v14 }
 0xaf0   : > { %5947 = vmatpush1.bf16.msra.mxu0 %v7617_v37  ;;  %v7658_v37 = vld [vmem:[%s9290_s23 + $0x178] ss:$20 sps:$4 sm:$0xff]  }
 0xaf1   : > { %5948 = vmatprep.subr.bf16.mxu0 %v7625_v0  ;;  %v7659_v0 = vld [vmem:[%s9290_s23 + $0x38] ss:$20 sps:$4 sm:$0xff]  }
 0xaf4   : > { %5949 = vmatpush1.bf16.msra.mxu0 %v7623_v34  ;;  %v7660_v34 = vld [vmem:[%s9290_s23 + $0x1a0] ss:$20 sps:$4 sm:$0xff]  }
 0xaf5   : > { %5950 = vmatprep.subr.bf16.mxu0 %v7631_v15  ;;  %v7661_v15 = vld [vmem:[%s9290_s23 + $0x60] ss:$20 sps:$4 sm:$0xff]  }
 0xaf8   : > { %5951 = vmatpush1.bf16.msra.mxu0 %v7629_v17  ;;  %v7662_v17 = vld [vmem:[%s9290_s23 + $0x1c8] ss:$20 sps:$4 sm:$0xff]  }
 0xaf9   : > { %5952 = vmatprep.subr.bf16.mxu0 %v7637_v25  ;;  %v7665_v25 = vld [vmem:[%s9290_s23 + $0xb0] ss:$20 sps:$4 sm:$0xff]  }
 0xafc   : > { %5953 = vmatpush1.bf16.msra.mxu0 %v7635_v56  ;;  %v7666_v56 = vld [vmem:[%s9290_s23 + $0x218] ss:$20 sps:$4 sm:$0xff]  }
 0xafd   : > { %5954 = vmatprep.subr.bf16.mxu0 %v7643_v18  ;;  %v7669_v18 = vld [vmem:[%s9290_s23 + $0x100] ss:$20 sps:$4 sm:$0xff]  }
 0xb00   : > { %5955 = vmatpush1.bf16.msra.mxu0 %v7641_v21  ;;  %v7670_v21 = vld [vmem:[%s9290_s23 + $0x268] ss:$20 sps:$4 sm:$0xff]  }
 0xb01   : > { %5956 = vmatprep.subr.bf16.mxu0 %v7649_v29  ;;  %v7734_v29 = vmov 1983009808  }
 0xb04   : > { %5957 = vmatpush1.bf16.msra.mxu0 %v7647_v32  ;;  %v6017_v32 = vunpack.c.l.s4 %v7734_v29 }
 0xb05   : > { %5958 = vmatprep.subr.bf16.mxu0 %v7655_v38  ;;  %v5453_v38 = vrot.slane %v5444_v47, %v8091_v26 }
 0xb08   : > { %5959 = vmatpush1.bf16.msra.mxu0 %v7653_v50  ;;  %v6018_v50 = vunpack.c.0.s8 %v6017_v32 }
 0xb9e   : > { %v5279_v48 = vpop.f32.mrb[0].mxu0 }
 0xb9f   : > { %v5280_v57 = vadd.f32 %v5279_v48, %v5078_v36  ;;  %v5281_v55 = vpop.f32.mrb[1].mxu0 }
 0xba0   : > { %v5282_v58 = vadd.f32 %v5281_v55, %v5082_v43  ;;  %v5283_v20 = vpop.f32.mrb[2].mxu0 }
 0xba1   : > { %v5298_v4 = vsub.f32 %v5280_v57, %v5291_v59  ;;  %v5284_v53 = vpop.f32.mrb[3].mxu0  ;;  %v6021_v59 = vsub.s32 %v6018_v50, %v8064_v1 }
 0xba2   : > { %v5299_v49 = vsub.f32 %v5282_v58, %v5295_v54 }
 0xba3   : > { %v5314_v10 = vmul.f32 %v5307_v6, %v5298_v4 }
 0xba4   : > { %v5315_v42 = vmul.f32 %v5311_v28, %v5299_v49  ;;  %v5465_v28 = vrot.slane %v5444_v47, %v1166_v41 }
 0xba5   : > { %v5328_v30 = vmul.f32 %v5321_v22, %v5314_v10 }
 0xba6   : > { %v5329_v63 = vmul.f32 %v5325_v61, %v5315_v42 }
 0xba7   : > { %v5342_v9 = vadd.f32 %v5335_v5, %v5328_v30 }
 0xba8   : > { %v5343_v19 = vadd.f32 %v5339_v8, %v5329_v63 }
 0xba9   : > { %v5344_v16 = vmax.f32 %v5342_v9, 0.0 }
 0xbaa   : > { %v5345_v12 = vmax.f32 %v5343_v19, 0.0 }
 0xbab   : > { %v5346_v14 = vpack.c.bf16 %v5344_v16, %v5344_v16 }
 0xbac   : > { %v5347_v52 = vpack.c.bf16 %v5345_v12, %v5345_v12 }
 0xbae   : > { %5919 = vmatprep.mubr.bf16.mxu1 %v5347_v52  ;;  %5960 = vmatprep.mubr.bf16.mxu0 %v5347_v52 }
 0xbaf   : > { %5920 = vmatmul.mubr.bf16.vlgmr.msra.gmra.mrb[0].mxu1 %v5346_v14  ;;  %5961 = vmatmul.mubr.bf16.vlgmr.msra.gmra.mrb[4].mxu0 %v5346_v14 }
 0xbb0   : > { %6752 = vmatpush3.bf16.msra.mxu1 %v7657_v24  ;;  %6001 = vmatprep.mubr.bf16.mxu1 %v5347_v52 }
 0xbb1   : > { %6753 = vmatprep.subr.bf16.mxu1 %v7658_v37 }
 0xbb4   : > { %6754 = vmatpush3.bf16.msra.mxu1 %v7659_v0 }
 0xbb5   : > { %6755 = vmatprep.subr.bf16.mxu1 %v7660_v34 }
 0xbb8   : > { %6756 = vmatpush3.bf16.msra.mxu1 %v7661_v15 }
 0xbb9   : > { %6757 = vmatprep.subr.bf16.mxu1 %v7662_v17 }
 0xbbc   : > { %6758 = vmatpush3.bf16.msra.mxu1 %v7663_v23 }
 0xbbd   : > { %6759 = vmatprep.subr.bf16.mxu1 %v7664_v44 }
 0xbc0   : > { %6760 = vmatpush3.bf16.msra.mxu1 %v7665_v25 }
 0xbc1   : > { %6761 = vmatprep.subr.bf16.mxu1 %v7666_v56 }
 0xbc4   : > { %6762 = vmatpush3.bf16.msra.mxu1 %v7667_v7 }
 0xbc5   : > { %6763 = vmatprep.subr.bf16.mxu1 %v7668_v13 }
 0xbc8   : > { %6764 = vmatpush3.bf16.msra.mxu1 %v7669_v18 }
 0xbc9   : > { %6765 = vmatprep.subr.bf16.mxu1 %v7670_v21 }
 0xbcc   : > { %6766 = vmatpush3.bf16.msra.mxu1 %v7671_v33 }
 0xbcf   : > { %6002 = vmatmul.mubr.bf16.vlgmr.msra.gmra.mrb[4].mxu1 %v5346_v14 }
 0xc82   : > { %v5921_v39 = vpop.f32.mrb[0].mxu1  ;;  %v5962_v45 = vpop.f32.mrb[4].mxu0 }
 0xc83   : > { %v5922_v40 = vadd.f32 %v5921_v39, %v5449_v35  ;;  %v5963_v46 = vadd.f32 %v5962_v45, %v5457_v31  ;;  %v5923_v36 = vpop.f32.mrb[1].mxu1  ;;  %v5964_v51 = vpop.f32.mrb[5].mxu0 }
 0xc84   : > { %v5924_v43 = vadd.f32 %v5923_v36, %v5453_v38  ;;  %v5965_v48 = vadd.f32 %v5964_v51, %v5461_v62  ;;  %v5925_v11 = vpop.f32.mrb[2].mxu1  ;;  %v5966_v54 = vpop.f32.mrb[6].mxu0 }
 0xc85   : > { %v5926_v2 = vpop.f32.mrb[3].mxu1  ;;  %v5967_v57 = vpop.f32.mrb[7].mxu0 }
 0xc86   : > { %v6014_v3 = vcombine.low %v5922_v40, %v5924_v43  ;;  %v6015_v6 = vcombine.low %v5963_v46, %v5965_v48 }
 0xc88   : > { %v6022_v26 = vrot.slane %v6014_v3, %v6021_v59  ;;  %v6029_v55 = vrot.slane %v6015_v6, %v6021_v59 }
 0xc8a   : > { %v6030_v58 = vcombine.low %v6022_v26, %v6029_v55 }
 0xc8c   : > { %6040 = vst [vmem:[#allocation3] sm:$0xff] %v6030_v58 }
 0xca2   : > { %v6767_v27 = vpop.f32.mrb[4].mxu1 }
 0xca3   : > { %v6768_v20 = vpop.f32.mrb[5].mxu1 }
 0xca4   : > { %v6769_v60 = vadd.f32 %v6768_v20, %v6767_v27  ;;  %v6770_v4 = vpop.f32.mrb[6].mxu1 }
 0xca5   : > { %v6771_v22 = vpop.f32.mrb[7].mxu1 }
 0xca6   : > { %v6004_v53 = vadd.f32 %v6769_v60, %v5465_v28 }
 0xca8   : > { %6679 = vst.sshfl [vmem:[#allocation3 + $0x8] sm:$0x3 pattern:$0x76325410] %v6004_v53 }
 0xca9 PF: > { %s9297_s26 = sld [smem:[#allocation7_spill]]  ;;  %s7735_s22 = smov [#allocation3]  }
 0xcaa   : > { %s6052_s2 = sshll.u32 %s7735_s22, 4  ;;  %s6053_s2 = int_to_ptr.vmem [resolvable:$true] %s6052_s2 }
 0xcab   : > { %s7674_s24 = scalar_lea.vmem %s6053_s2, 160  ;;  %p7681_p11 = scmp.lt.s32.totalorder %s6053_s2, %s6053_s2 }
 0xcac   : > { %p7675_p8 = scmp.ne.s32.totalorder %s6053_s2, %s7674_s24  ;;  %p7682_p12 = scmp.lt.s32.totalorder %s7674_s24, %s7674_s24 }
 0xcae   : > { %p7683_p13 = por %p7682_p12, %p7681_p11 }
 0xcaf   : > { %s9298_s21 = sadd.s32 4294967295, %s9297_s26  }
 0xcb0   : > { %p9191_p7 = scmp.eq.s32.totalorder %s9298_s21, 5 }
 0xcb2   : > { %p7676_p9 = pnand %p7675_p8, %p9191_p7 }
 0xcb4   : > { %p7677_p10 = pneg %p7676_p9 }
 0xcb6   : > { %p7684_p0 = pnand %p7683_p13, %p7677_p10 }
 0xcb8   : > { %7687 = shalt.err (!%p7684_p0)
}
 0xcb9   : > { %s9300_s27 = sld [smem:[#allocation25_spill]] }
 0xcbf   : > { %s7688_s7 = scalar_lea.hbm %s9300_s27, 160 }
 0xcc0   : > { %p7689_p1 = scmp.ne.s32.totalorder %s9300_s27, %s7688_s7  ;;  %p7694_p4 = scmp.lt.u32.totalorder %s7688_s7, %s9300_s27 }
 0xcc2   : > { %p7690_p2 = pnand %p7689_p1, %p9191_p7 }
 0xcc4   : > { %p7691_p3 = pneg %p7690_p2 }
 0xcc6   : > { %p7696_p5 = pnand %p7694_p4, %p7691_p3 }
 0xcc8   : > { %7699 = shalt.err (!%p7696_p5)
}
 0xcc9   : > { %6976 = dma.vmem_to_hbm [thread:$0]  (%p9191_p7), %s6053_s2, 160, %s9300_s27, [#allocation4]  }
 0xcca   : > { %7713 = dma.done.wait (%p9191_p7), [#allocation4], 160  }
 0xccb   : > { %7715 = vsyncadd (%p9191_p7), [#allocation4], 4294967136 }
 0xccc PF: > { %s9301_s4 = sld [smem:[#allocation7_spill]]  ;;  %s9303_s30 = sld [smem:[#allocation8_spill]] }
 0xcd2   : > { %s34_s24 = sadd.s32 1, %s9301_s4   ;;  %s9302_s4 = sld [smem:[#allocation6_spill]] }
 0xcd3   : > { %p31_p6 = scmp.ge.s32.totalorder %s34_s24, 8  }
 0xcd5   :  { %33 = sbr.rel (!%p31_p6) target bundleno = 20 (0x14), region = 184 }
 0xcdc   :  { %6065 = vsyncpa [#allocation4], 1 }
 0xcdd   :  { %6067 = vsyncpa [#allocation4 + $0x1], 1 }

</bundles_post_ra>
